<compile_context>
chip_gen: v7x
topology: tpu7x:2x2x1
jax: 0.10.0
libtpu: 0.0.40
codegen_flags: <defaults>
</compile_context>

<pallas_src>
import functools

import jax
import jax.numpy as jnp
from jax.experimental import pallas as pl
from jax.experimental.pallas import tpu as pltpu

BN_EPS = 1e-5
MM_TILE = 256      # max row tile for matmul kernels (MXU-bound)
EW_TILE = 512      # max row tile for memory-bound elementwise kernels
# TODO(synk): on v5e drop EW_TILE to 256 (or set vmem_limit_bytes) for very
#             wide channels; re-derive budgets against v7x's 64 MiB VMEM.


# ------------------------------ tiling helpers ------------------------------

def _choose_tile(m, max_tile):
    """Pick a row tile.

    Prefers a multiple-of-8 divisor of m (so no jnp.pad copy is needed) that
    leaves at least two grid tiles.  Falls back to a padded layout only when
    no such divisor exists.  Returns (tile, needs_pad).
    """
    if m <= 8:
        return m, False
    limit = min(max_tile, max(8, m // 2))
    best = 0
    t = 8
    while t <= limit:
        if m % t == 0:
            best = t
        t += 8
    if best:
        return best, False
    return min(max_tile, ((m + 7) // 8) * 8), True


def _pad_rows(a, tile):
    m = a.shape[0]
    mp = ((m + tile - 1) // tile) * tile
    if mp != m:
        a = jnp.pad(a, ((0, mp - m), (0, 0)))
    return a


def _pack_stats(cs, cq):
    """Pack per-channel (sum, sumsq) into rows 0/1 of a single (8, C) block."""
    n = cs.shape[1]
    row = jax.lax.broadcasted_iota(jnp.int32, (8, n), 0)
    st = jnp.where(row == 0, cs, jnp.zeros((8, n), jnp.float32))
    return jnp.where(row == 1, cq, st)


# ----------------------------- Pallas kernels -------------------------------

def _mm_bn_kernel(x_ref, w_ref, y_ref, st_ref):
    """y = x @ w (bf16 MXU, fp32 acc) + packed per-tile BN partial sums.

    Any zero-padded rows contribute zeros to the statistics, so no masking
    is required in this variant.
    """
    x = x_ref[...].astype(jnp.bfloat16)
    y = jnp.dot(x, w_ref[...], preferred_element_type=jnp.float32)
    y_ref[...] = y.astype(y_ref.dtype)
    st_ref[...] = _pack_stats(jnp.sum(y, axis=0, keepdims=True),
                              jnp.sum(y * y, axis=0, keepdims=True))


def _mm_affine_bn_kernel(x_ref, sc_ref, sh_ref, w_ref, y_ref, st_ref,
                         *, tm, m_valid):
    """y = relu(x*scale + shift) @ w, with packed BN partial sums of y."""
    a = x_ref[...].astype(jnp.float32) * sc_ref[...] + sh_ref[...]
    a = jnp.maximum(a, 0.0)
    y = jnp.dot(a.astype(jnp.bfloat16), w_ref[...],
                preferred_element_type=jnp.float32)
    y_ref[...] = y.astype(y_ref.dtype)
    st_ref[...] = _pack_stats(jnp.sum(y, axis=0, keepdims=True),
                              jnp.sum(y * y, axis=0, keepdims=True))
    if m_valid % tm:
        # Only the ragged last tile pays the mask cost: its padded input rows
        # are zero, but relu(0*scale + shift) is generally nonzero, so only
        # the statistics (the extra output rows are discarded) are recomputed.
        @pl.when(pl.program_id(0) == pl.num_programs(0) - 1)
        def _():
            valid = m_valid - pl.program_id(0) * tm
            rows = jax.lax.broadcasted_iota(jnp.int32, y.shape, 0)
            ym = jnp.where(rows < valid, y, 0.0)
            st_ref[...] = _pack_stats(jnp.sum(ym, axis=0, keepdims=True),
                                      jnp.sum(ym * ym, axis=0, keepdims=True))


def _conv2_bn_kernel(*refs, nd, tap_plan, rows):
    """3x3 conv as 9 in-kernel MXU taps accumulated in fp32, + BN partials."""
    d_refs = refs[:nd]
    w_ref = refs[nd]
    y_ref = refs[nd + 1]
    st_ref = refs[nd + 2]
    acc = None
    for t, (di, roff) in enumerate(tap_plan):
        a = d_refs[di][0, roff:roff + rows, :]              # (rows, Cin) bf16
        p = jnp.dot(a, w_ref[t], preferred_element_type=jnp.float32)
        acc = p if acc is None else acc + p
    y_ref[0, :, :] = acc.astype(y_ref.dtype)
    st_ref[...] = _pack_stats(jnp.sum(acc, axis=0, keepdims=True),
                              jnp.sum(acc * acc, axis=0, keepdims=True))


def _affine_relu_kernel(y_ref, sc_ref, sh_ref, o_ref):
    o = jnp.maximum(
        y_ref[...].astype(jnp.float32) * sc_ref[...] + sh_ref[...], 0.0)
    o_ref[...] = o.astype(o_ref.dtype)


def _res_relu_kernel(y_ref, sc_ref, sh_ref, k_ref, o_ref):
    o = (y_ref[...].astype(jnp.float32) * sc_ref[...] + sh_ref[...]
         + k_ref[...].astype(jnp.float32))
    o_ref[...] = jnp.maximum(o, 0.0).astype(o_ref.dtype)


def _res2_relu_kernel(y_ref, sc_ref, sh_ref, k_ref, ksc_ref, ksh_ref, o_ref):
    o = (y_ref[...].astype(jnp.float32) * sc_ref[...] + sh_ref[...]
         + k_ref[...].astype(jnp.float32) * ksc_ref[...] + ksh_ref[...])
    o_ref[...] = jnp.maximum(o, 0.0).astype(o_ref.dtype)


# ------------------------------ kernel wrappers ------------------------------

def pallas_matmul_bn(x, w, scale_in=None, shift_in=None,
                     out_dtype=jnp.bfloat16):
    """(M, K) @ (K, N) -> (M, N) in out_dtype plus packed BN partials (fp32).

    If scale_in/shift_in are given, relu(x*scale + shift) is applied to the
    input tile inside the kernel (fuses the previous BN affine + ReLU).
    """
    m, k = x.shape
    n = w.shape[1]
    tm, needs_pad = _choose_tile(m, MM_TILE)
    xp = _pad_rows(x, tm) if needs_pad else x
    mp = xp.shape[0]
    nt = mp // tm

    out_shapes = (jax.ShapeDtypeStruct((mp, n), out_dtype),
                  jax.ShapeDtypeStruct((nt * 8, n), jnp.float32))
    out_specs = (pl.BlockSpec((tm, n), lambda i: (i, 0)),
                 pl.BlockSpec((8, n), lambda i: (i, 0)))

    if scale_in is None:
        kernel = _mm_bn_kernel
        in_specs = [pl.BlockSpec((tm, k), lambda i: (i, 0)),
                    pl.BlockSpec((k, n), lambda i: (0, 0))]
        args = (xp, w)
    else:
        kernel = functools.partial(_mm_affine_bn_kernel, tm=tm, m_valid=m)
        in_specs = [pl.BlockSpec((tm, k), lambda i: (i, 0)),
                    pl.BlockSpec((1, k), lambda i: (0, 0)),
                    pl.BlockSpec((1, k), lambda i: (0, 0)),
                    pl.BlockSpec((k, n), lambda i: (0, 0))]
        args = (xp, scale_in.reshape(1, k).astype(jnp.float32),
                shift_in.reshape(1, k).astype(jnp.float32), w)

    y, st = pl.pallas_call(
        kernel,
        out_shape=out_shapes,
        grid=(nt,),
        in_specs=in_specs,
        out_specs=out_specs,
        compiler_params=pltpu.CompilerParams(
            dimension_semantics=("parallel",)),
    )(*args)
    return (y[:m] if needs_pad else y), st


def pallas_conv3x3_bn(a1, w_taps, stride, dilation, out_dtype=jnp.bfloat16):
    """3x3 conv (padding=dilation) + fused BN stats, without a 9x im2col.

    The activation is re-materialized once per (row-phase, kx) pair (<= 3*s
    slabs of the narrow Cmid-wide tensor).  Every tap then reads a contiguous
    row range of one slab, so the kernel does nine plain 2-D slices + matmuls
    per batch image and accumulates in fp32.
    """
    n, h, w, c = a1.shape
    cout = w_taps.shape[-1]
    s, dl = stride, dilation
    ho = (h - 1) // s + 1
    wo = (w - 1) // s + 1
    hq = (2 * dl) // s + ho                       # rows per phase slab

    row_phases = sorted({(ky * dl) % s for ky in range(3)})
    need_h = max(rp + s * (hq - 1) + 1 for rp in row_phases)
    pad_h = max(0, need_h - (h + 2 * dl))
    xp = jnp.pad(a1, ((0, 0), (dl, dl + pad_h), (dl, dl), (0, 0)))

    d_tensors, d_index = [], {}
    for rp in row_phases:
        for kx in range(3):
            sl = xp[:, rp: rp + s * (hq - 1) + 1: s,
                    kx * dl: kx * dl + s * (wo - 1) + 1: s, :]
            d_index[(rp, kx)] = len(d_tensors)
            d_tensors.append(sl.reshape(n, hq * wo, c))

    tap_plan = []
    for ky in range(3):
        rp, qy = (ky * dl) % s, (ky * dl) // s
        for kx in range(3):
            tap_plan.append((d_index[(rp, kx)], qy * wo))
    tap_plan = tuple(tap_plan)

    nd = len(d_tensors)
    rows = ho * wo
    kernel = functools.partial(_conv2_bn_kernel, nd=nd, tap_plan=tap_plan,
                               rows=rows)
    in_specs = ([pl.BlockSpec((1, hq * wo, c), lambda i: (i, 0, 0))] * nd
                + [pl.BlockSpec((9, c, cout), lambda i: (0, 0, 0))])
    out_shapes = (jax.ShapeDtypeStruct((n, rows, cout), out_dtype),
                  jax.ShapeDtypeStruct((n * 8, cout), jnp.float32))
    out_specs = (pl.BlockSpec((1, rows, cout), lambda i: (i, 0, 0)),
                 pl.BlockSpec((8, cout), lambda i: (i, 0)))

    y, st = pl.pallas_call(
        kernel,
        out_shape=out_shapes,
        grid=(n,),
        in_specs=in_specs,
        out_specs=out_specs,
        compiler_params=pltpu.CompilerParams(
            dimension_semantics=("parallel",)),
    )(*d_tensors, w_taps)
    return y.reshape(n * rows, cout), st, ho, wo


def pallas_affine_relu(y, scale, shift, out_dtype=jnp.bfloat16):
    """out = relu(y * scale + shift), per-channel scale/shift."""
    m, c = y.shape
    tm, needs_pad = _choose_tile(m, EW_TILE)
    yp = _pad_rows(y, tm) if needs_pad else y
    mp = yp.shape[0]
    out = pl.pallas_call(
        _affine_relu_kernel,
        out_shape=jax.ShapeDtypeStruct((mp, c), out_dtype),
        grid=(mp // tm,),
        in_specs=[pl.BlockSpec((tm, c), lambda i: (i, 0)),
                  pl.BlockSpec((1, c), lambda i: (0, 0)),
                  pl.BlockSpec((1, c), lambda i: (0, 0))],
        out_specs=pl.BlockSpec((tm, c), lambda i: (i, 0)),
        compiler_params=pltpu.CompilerParams(
            dimension_semantics=("parallel",)),
    )(yp, scale.reshape(1, c), shift.reshape(1, c))
    return out[:m] if needs_pad else out


def pallas_residual_relu(y, scale, shift, skip, skip_scale=None,
                         skip_shift=None, out_dtype=jnp.float32):
    """out = relu(y*scale + shift + skip[*skip_scale + skip_shift])."""
    m, c = y.shape
    tm, needs_pad = _choose_tile(m, EW_TILE)
    yp = _pad_rows(y, tm) if needs_pad else y
    kp = _pad_rows(skip, tm) if needs_pad else skip
    mp = yp.shape[0]
    row_spec = pl.BlockSpec((tm, c), lambda i: (i, 0))
    ch_spec = pl.BlockSpec((1, c), lambda i: (0, 0))
    if skip_scale is None:
        kernel = _res_relu_kernel
        in_specs = [row_spec, ch_spec, ch_spec, row_spec]
        args = (yp, scale.reshape(1, c), shift.reshape(1, c), kp)
    else:
        kernel = _res2_relu_kernel
        in_specs = [row_spec, ch_spec, ch_spec, row_spec, ch_spec, ch_spec]
        args = (yp, scale.reshape(1, c), shift.reshape(1, c), kp,
                skip_scale.reshape(1, c), skip_shift.reshape(1, c))
    out = pl.pallas_call(
        kernel,
        out_shape=jax.ShapeDtypeStruct((mp, c), out_dtype),
        grid=(mp // tm,),
        in_specs=in_specs,
        out_specs=row_spec,
        compiler_params=pltpu.CompilerParams(
            dimension_semantics=("parallel",)),
    )(*args)
    return out[:m] if needs_pad else out


# ------------------------------- BN fold (tiny) ------------------------------

def bn_fold(stats, m, gamma, beta):
    """Fold packed per-tile (sum, sumsq) partials into BN scale/shift.

    Train-mode BatchNorm (biased variance), applied later as y*scale + shift.
    # TODO(synk): single-pass E[y^2]-E[y]^2 can cancel when |mean| >> std;
    #             switch to a shifted / Welford-style fold if that matters.
    """
    st = stats.reshape(-1, 8, stats.shape[-1])
    s = jnp.sum(st[:, 0, :], axis=0)
    q = jnp.sum(st[:, 1, :], axis=0)
    mean = s / m
    var = jnp.maximum(q / m - mean * mean, 0.0)
    scale = gamma * jax.lax.rsqrt(var + BN_EPS)
    shift = beta - mean * scale
    return scale, shift


# ------------------------------- bottleneck ----------------------------------

def bottleneck(x, p, stride, dilation, has_downsample, out_dtype):
    n, h, w, cin = x.shape
    x2d = x.reshape(-1, cin)
    m0 = n * h * w

    # conv1 (1x1) + fused BN1 stats (output kept in bf16).
    y1, st1 = pallas_matmul_bn(x2d, p["w1t"])
    sc1, sh1 = bn_fold(st1, m0, p["g1"], p["b1"])

    # BN1 affine + ReLU (standalone: conv2's spatial zero padding must see
    # post-ReLU zeros, so this cannot be folded into conv2's prologue).
    a1 = pallas_affine_relu(y1, sc1, sh1, out_dtype=jnp.bfloat16)
    a1 = a1.reshape(n, h, w, -1)

    # conv2 (3x3, stride/dilation) via in-kernel 9-tap accumulation + BN2 stats
    y2, st2, ho, wo = pallas_conv3x3_bn(a1, p["w2t"], stride, dilation)
    m1 = n * ho * wo
    sc2, sh2 = bn_fold(st2, m1, p["g2"], p["b2"])

    # conv3 (1x1) with BN2 affine + ReLU fused into the prologue + BN3 stats
    y3, st3 = pallas_matmul_bn(y2, p["w3t"], sc2, sh2)
    sc3, sh3 = bn_fold(st3, m1, p["g3"], p["b3"])

    if has_downsample:
        xs = x[:, ::stride, ::stride, :] if stride > 1 else x
        ys, sts = pallas_matmul_bn(xs.reshape(-1, cin), p["dwt"])
        scd, shd = bn_fold(sts, m1, p["dg"], p["db"])
        out = pallas_residual_relu(y3, sc3, sh3, ys, scd, shd,
                                   out_dtype=out_dtype)
    else:
        out = pallas_residual_relu(y3, sc3, sh3, x2d, out_dtype=out_dtype)
    return out.reshape(n, ho, wo, -1)


def resnet_block_forward(x_nchw, params_list, *, stride, dilation):
    x = jnp.transpose(x_nchw, (0, 2, 3, 1))            # NCHW -> NHWC
    n_blocks = len(params_list)
    for idx, p in enumerate(params_list):
        # Inter-block activations stay bf16; the module output is fp32.
        odt = jnp.float32 if idx == n_blocks - 1 else jnp.bfloat16
        if idx == 0:
            x = bottleneck(x, p, stride, dilation, True, odt)
        else:
            x = bottleneck(x, p, 1, 1, False, odt)
    return jnp.transpose(x, (0, 3, 1, 2))              # NHWC -> NCHW


# ------------------------------ parameter init -------------------------------

def init_bottleneck_params(key, cin, cmid, has_downsample):
    ks = jax.random.split(key, 4)
    cexp = cmid * 4
    w1 = jax.random.normal(ks[0], (cmid, cin), jnp.float32) / jnp.sqrt(cin)
    w2 = (jax.random.normal(ks[1], (cmid, cmid, 3, 3), jnp.float32)
          / jnp.sqrt(9.0 * cmid))
    w3 = jax.random.normal(ks[2], (cexp, cmid), jnp.float32) / jnp.sqrt(cmid)
    p = {
        # weights pre-transposed / per-tap reshaped, bf16 for the MXU
        "w1t": w1.T.astype(jnp.bfloat16),                              # (Cin, Cmid)
        "w2t": jnp.transpose(w2, (2, 3, 1, 0)).reshape(9, cmid, cmid)
               .astype(jnp.bfloat16),                                  # (9, Cmid, Cmid), t = ky*3+kx
        "w3t": w3.T.astype(jnp.bfloat16),                              # (Cmid, Cexp)
        "g1": jnp.ones((cmid,), jnp.float32), "b1": jnp.zeros((cmid,), jnp.float32),
        "g2": jnp.ones((cmid,), jnp.float32), "b2": jnp.zeros((cmid,), jnp.float32),
        "g3": jnp.ones((cexp,), jnp.float32), "b3": jnp.zeros((cexp,), jnp.float32),
    }
    if has_downsample:
        wd = jax.random.normal(ks[3], (cexp, cin), jnp.float32) / jnp.sqrt(cin)
        p["dwt"] = wd.T.astype(jnp.bfloat16)                           # (Cin, Cexp)
        p["dg"] = jnp.ones((cexp,), jnp.float32)
        p["db"] = jnp.zeros((cexp,), jnp.float32)
    return p


def init_resnet_block_params(key, in_channels, out_channels, n_blocks):
    keys = jax.random.split(key, n_blocks)
    params = [init_bottleneck_params(keys[0], in_channels, out_channels, True)]
    for b in range(1, n_blocks):
        params.append(init_bottleneck_params(
            keys[b], out_channels * 4, out_channels, False))
    return params


# ------------------------------------ main -----------------------------------

if __name__ == "__main__":
    in_channels, out_channels = 4, 4
    stride, dilation, n_blocks = 2, 1, 2

    key = jax.random.PRNGKey(0)
    k_x, k_p = jax.random.split(key)
    x = jax.random.normal(k_x, (2, in_channels, 16, 16), jnp.float32)  # NCHW
    params = init_resnet_block_params(k_p, in_channels, out_channels, n_blocks)

    fwd = jax.jit(functools.partial(resnet_block_forward,
                                    stride=stride, dilation=dilation))
    out = fwd(x, params)
    jax.block_until_ready(out)

    expected = (2, out_channels * 4, 16 // stride, 16 // stride)
    assert out.shape == expected, (out.shape, expected)
    assert jnp.all(jnp.isfinite(out))
    print("KERNEL_OK")
</pallas_src>

<mosaic_0001>
module attributes {stable_mosaic.version = 11 : i64} {
  func.func @_mm_bn_kernel(%arg0: i32, %arg1: memref<256x4xf32, #tpu.memory_space<vmem>>, %arg2: memref<4x4xbf16, #tpu.memory_space<vmem>>, %arg3: memref<256x4xbf16, #tpu.memory_space<vmem>>, %arg4: memref<8x4xf32, #tpu.memory_space<vmem>>) attributes {dimension_semantics = [#tpu.dimension_semantics<parallel>], iteration_bounds = array<i64: 2>, scalar_prefetch = 0 : i64, scratch_operands = 0 : i64, tpu.core_type = #tpu.core_type<tc>, window_params = [{transform_indices = @transform_0, window_bounds = array<i64: 256, 4>}, {pipeline_mode = #tpu.pipeline_mode<synchronous>, transform_indices = @transform_1, window_bounds = array<i64: 4, 4>}, {transform_indices = @transform_2, window_bounds = array<i64: 256, 4>}, {transform_indices = @transform_3, window_bounds = array<i64: 8, 4>}]} {
    %c0 = arith.constant 0 : index
    %c0_0 = arith.constant 0 : index
    %0 = vector.load %arg1[%c0, %c0_0] : memref<256x4xf32, #tpu.memory_space<vmem>>, vector<256x4xf32>
    %1 = arith.truncf %0 : vector<256x4xf32> to vector<256x4xbf16>
    %c0_1 = arith.constant 0 : index
    %c0_2 = arith.constant 0 : index
    %2 = vector.load %arg2[%c0_1, %c0_2] : memref<4x4xbf16, #tpu.memory_space<vmem>>, vector<4x4xbf16>
    %cst = arith.constant dense<0.000000e+00> : vector<256x4xf32>
    %3 = tpu.matmul %1, %2, %cst {dimension_numbers = #tpu.dot_dimension_numbers<[1], [0], [0], [1], [0, 0, 1, 1], [], []>} : vector<256x4xbf16>, vector<4x4xbf16>, vector<256x4xf32> -> vector<256x4xf32>
    %4 = arith.truncf %3 : vector<256x4xf32> to vector<256x4xbf16>
    %c0_3 = arith.constant 0 : index
    %c0_4 = arith.constant 0 : index
    %5 = vector.load %arg3[%c0_3, %c0_4] : memref<256x4xbf16, #tpu.memory_space<vmem>>, vector<256x4xbf16>
    tpu.vector_store %arg3[%c0_3, %c0_4], %4 {strides = array<i32>} : memref<256x4xbf16, #tpu.memory_space<vmem>>, vector<256x4xbf16>,
    %cst_5 = arith.constant dense<0.000000e+00> : vector<4xf32>
    %6 = vector.multi_reduction <add>, %3, %cst_5 [0] : vector<256x4xf32> to vector<4xf32>
    %7 = vector.shape_cast %6 : vector<4xf32> to vector<1x4xf32>
    %8 = arith.mulf %3, %3 : vector<256x4xf32>
    %cst_6 = arith.constant dense<0.000000e+00> : vector<4xf32>
    %9 = vector.multi_reduction <add>, %8, %cst_6 [0] : vector<256x4xf32> to vector<4xf32>
    %10 = vector.shape_cast %9 : vector<4xf32> to vector<1x4xf32>
    %11 = tpu.iota {dimensions = array<i32: 0>} : vector<8x4xi32>
    %c0_i32 = arith.constant 0 : i32
    %12 = vector.broadcast %c0_i32 : i32 to vector<8x4xi32>
    %13 = arith.cmpi eq, %11, %12 : vector<8x4xi32>
    %cst_7 = arith.constant 0.000000e+00 : f32
    %14 = vector.broadcast %cst_7 : f32 to vector<8x4xf32>
    %15 = vector.shape_cast %7 : vector<1x4xf32> to vector<1x4xf32>
    %16 = vector.broadcast %15 : vector<1x4xf32> to vector<8x4xf32>
    %17 = arith.select %13, %16, %14 : vector<8x4xi1>, vector<8x4xf32>
    %c1_i32 = arith.constant 1 : i32
    %18 = vector.broadcast %c1_i32 : i32 to vector<8x4xi32>
    %19 = arith.cmpi eq, %11, %18 : vector<8x4xi32>
    %20 = vector.shape_cast %10 : vector<1x4xf32> to vector<1x4xf32>
    %21 = vector.broadcast %20 : vector<1x4xf32> to vector<8x4xf32>
    %22 = arith.select %19, %21, %17 : vector<8x4xi1>, vector<8x4xf32>
    %c0_8 = arith.constant 0 : index
    %c0_9 = arith.constant 0 : index
    %23 = vector.load %arg4[%c0_8, %c0_9] : memref<8x4xf32, #tpu.memory_space<vmem>>, vector<8x4xf32>
    tpu.vector_store %arg4[%c0_8, %c0_9], %22 {strides = array<i32>} : memref<8x4xf32, #tpu.memory_space<vmem>>, vector<8x4xf32>,
    return
  }
  func.func @transform_0(%arg0: i32) -> (i32, i32) {
    %c0_i32 = arith.constant 0 : i32
    %c0_i32_0 = arith.constant 0 : i32
    return %arg0, %c0_i32 : i32, i32
  }
  func.func @transform_1(%arg0: i32) -> (i32, i32) {
    %c0_i32 = arith.constant 0 : i32
    %c0_i32_0 = arith.constant 0 : i32
    %c0_i32_1 = arith.constant 0 : i32
    return %c0_i32, %c0_i32_0 : i32, i32
  }
  func.func @transform_2(%arg0: i32) -> (i32, i32) {
    %c0_i32 = arith.constant 0 : i32
    %c0_i32_0 = arith.constant 0 : i32
    return %arg0, %c0_i32 : i32, i32
  }
  func.func @transform_3(%arg0: i32) -> (i32, i32) {
    %c0_i32 = arith.constant 0 : i32
    %c0_i32_0 = arith.constant 0 : i32
    return %arg0, %c0_i32 : i32, i32
  }
}

module attributes {stable_mosaic.version = 11 : i64} {
  func.func @_affine_relu_kernel(%arg0: i32, %arg1: memref<256x4xbf16, #tpu.memory_space<vmem>>, %arg2: memref<1x4xf32, #tpu.memory_space<vmem>>, %arg3: memref<1x4xf32, #tpu.memory_space<vmem>>, %arg4: memref<256x4xbf16, #tpu.memory_space<vmem>>) attributes {dimension_semantics = [#tpu.dimension_semantics<parallel>], iteration_bounds = array<i64: 2>, scalar_prefetch = 0 : i64, scratch_operands = 0 : i64, tpu.core_type = #tpu.core_type<tc>, window_params = [{transform_indices = @transform_0, window_bounds = array<i64: 256, 4>}, {pipeline_mode = #tpu.pipeline_mode<synchronous>, transform_indices = @transform_1, window_bounds = array<i64: 1, 4>}, {pipeline_mode = #tpu.pipeline_mode<synchronous>, transform_indices = @transform_2, window_bounds = array<i64: 1, 4>}, {transform_indices = @transform_3, window_bounds = array<i64: 256, 4>}]} {
    %c0 = arith.constant 0 : index
    %c0_0 = arith.constant 0 : index
    %0 = vector.load %arg1[%c0, %c0_0] : memref<256x4xbf16, #tpu.memory_space<vmem>>, vector<256x4xbf16>
    %1 = arith.extf %0 : vector<256x4xbf16> to vector<256x4xf32>
    %c0_1 = arith.constant 0 : index
    %c0_2 = arith.constant 0 : index
    %2 = vector.load %arg2[%c0_1, %c0_2] : memref<1x4xf32, #tpu.memory_space<vmem>>, vector<1x4xf32>
    %3 = vector.broadcast %2 : vector<1x4xf32> to vector<256x4xf32>
    %4 = arith.mulf %1, %3 : vector<256x4xf32>
    %c0_3 = arith.constant 0 : index
    %c0_4 = arith.constant 0 : index
    %5 = vector.load %arg3[%c0_3, %c0_4] : memref<1x4xf32, #tpu.memory_space<vmem>>, vector<1x4xf32>
    %6 = vector.broadcast %5 : vector<1x4xf32> to vector<256x4xf32>
    %7 = arith.addf %4, %6 : vector<256x4xf32>
    %cst = arith.constant 0.000000e+00 : f32
    %8 = vector.broadcast %cst : f32 to vector<256x4xf32>
    %9 = arith.maximumf %7, %8 : vector<256x4xf32>
    %10 = arith.truncf %9 : vector<256x4xf32> to vector<256x4xbf16>
    %c0_5 = arith.constant 0 : index
    %c0_6 = arith.constant 0 : index
    %11 = vector.load %arg4[%c0_5, %c0_6] : memref<256x4xbf16, #tpu.memory_space<vmem>>, vector<256x4xbf16>
    tpu.vector_store %arg4[%c0_5, %c0_6], %10 {strides = array<i32>} : memref<256x4xbf16, #tpu.memory_space<vmem>>, vector<256x4xbf16>,
    return
  }
  func.func @transform_0(%arg0: i32) -> (i32, i32) {
    %c0_i32 = arith.constant 0 : i32
    %c0_i32_0 = arith.constant 0 : i32
    return %arg0, %c0_i32 : i32, i32
  }
  func.func @transform_1(%arg0: i32) -> (i32, i32) {
    %c0_i32 = arith.constant 0 : i32
    %c0_i32_0 = arith.constant 0 : i32
    %c0_i32_1 = arith.constant 0 : i32
    return %c0_i32, %c0_i32_0 : i32, i32
  }
  func.func @transform_2(%arg0: i32) -> (i32, i32) {
    %c0_i32 = arith.constant 0 : i32
    %c0_i32_0 = arith.constant 0 : i32
    %c0_i32_1 = arith.constant 0 : i32
    return %c0_i32, %c0_i32_0 : i32, i32
  }
  func.func @transform_3(%arg0: i32) -> (i32, i32) {
    %c0_i32 = arith.constant 0 : i32
    %c0_i32_0 = arith.constant 0 : i32
    return %arg0, %c0_i32 : i32, i32
  }
}

module attributes {stable_mosaic.version = 11 : i64} {
  func.func @_mm_affine_bn_kernel(%arg0: i32, %arg1: memref<64x4xbf16, #tpu.memory_space<vmem>>, %arg2: memref<1x4xf32, #tpu.memory_space<vmem>>, %arg3: memref<1x4xf32, #tpu.memory_space<vmem>>, %arg4: memref<4x16xbf16, #tpu.memory_space<vmem>>, %arg5: memref<64x16xbf16, #tpu.memory_space<vmem>>, %arg6: memref<8x16xf32, #tpu.memory_space<vmem>>) attributes {dimension_semantics = [#tpu.dimension_semantics<parallel>], iteration_bounds = array<i64: 2>, scalar_prefetch = 0 : i64, scratch_operands = 0 : i64, tpu.core_type = #tpu.core_type<tc>, window_params = [{transform_indices = @transform_0, window_bounds = array<i64: 64, 4>}, {pipeline_mode = #tpu.pipeline_mode<synchronous>, transform_indices = @transform_1, window_bounds = array<i64: 1, 4>}, {pipeline_mode = #tpu.pipeline_mode<synchronous>, transform_indices = @transform_2, window_bounds = array<i64: 1, 4>}, {pipeline_mode = #tpu.pipeline_mode<synchronous>, transform_indices = @transform_3, window_bounds = array<i64: 4, 16>}, {transform_indices = @transform_4, window_bounds = array<i64: 64, 16>}, {transform_indices = @transform_5, window_bounds = array<i64: 8, 16>}]} {
    %c0 = arith.constant 0 : index
    %c0_0 = arith.constant 0 : index
    %0 = vector.load %arg1[%c0, %c0_0] : memref<64x4xbf16, #tpu.memory_space<vmem>>, vector<64x4xbf16>
    %1 = arith.extf %0 : vector<64x4xbf16> to vector<64x4xf32>
    %c0_1 = arith.constant 0 : index
    %c0_2 = arith.constant 0 : index
    %2 = vector.load %arg2[%c0_1, %c0_2] : memref<1x4xf32, #tpu.memory_space<vmem>>, vector<1x4xf32>
    %3 = vector.broadcast %2 : vector<1x4xf32> to vector<64x4xf32>
    %4 = arith.mulf %1, %3 : vector<64x4xf32>
    %c0_3 = arith.constant 0 : index
    %c0_4 = arith.constant 0 : index
    %5 = vector.load %arg3[%c0_3, %c0_4] : memref<1x4xf32, #tpu.memory_space<vmem>>, vector<1x4xf32>
    %6 = vector.broadcast %5 : vector<1x4xf32> to vector<64x4xf32>
    %7 = arith.addf %4, %6 : vector<64x4xf32>
    %cst = arith.constant 0.000000e+00 : f32
    %8 = vector.broadcast %cst : f32 to vector<64x4xf32>
    %9 = arith.maximumf %7, %8 : vector<64x4xf32>
    %10 = arith.truncf %9 : vector<64x4xf32> to vector<64x4xbf16>
    %c0_5 = arith.constant 0 : index
    %c0_6 = arith.constant 0 : index
    %11 = vector.load %arg4[%c0_5, %c0_6] : memref<4x16xbf16, #tpu.memory_space<vmem>>, vector<4x16xbf16>
    %cst_7 = arith.constant dense<0.000000e+00> : vector<64x16xf32>
    %12 = tpu.matmul %10, %11, %cst_7 {dimension_numbers = #tpu.dot_dimension_numbers<[1], [0], [0], [1], [0, 0, 1, 1], [], []>} : vector<64x4xbf16>, vector<4x16xbf16>, vector<64x16xf32> -> vector<64x16xf32>
    %13 = arith.truncf %12 : vector<64x16xf32> to vector<64x16xbf16>
    %c0_8 = arith.constant 0 : index
    %c0_9 = arith.constant 0 : index
    %14 = vector.load %arg5[%c0_8, %c0_9] : memref<64x16xbf16, #tpu.memory_space<vmem>>, vector<64x16xbf16>
    tpu.vector_store %arg5[%c0_8, %c0_9], %13 {strides = array<i32>} : memref<64x16xbf16, #tpu.memory_space<vmem>>, vector<64x16xbf16>,
    %cst_10 = arith.constant dense<0.000000e+00> : vector<16xf32>
    %15 = vector.multi_reduction <add>, %12, %cst_10 [0] : vector<64x16xf32> to vector<16xf32>
    %16 = vector.shape_cast %15 : vector<16xf32> to vector<1x16xf32>
    %17 = arith.mulf %12, %12 : vector<64x16xf32>
    %cst_11 = arith.constant dense<0.000000e+00> : vector<16xf32>
    %18 = vector.multi_reduction <add>, %17, %cst_11 [0] : vector<64x16xf32> to vector<16xf32>
    %19 = vector.shape_cast %18 : vector<16xf32> to vector<1x16xf32>
    %20 = tpu.iota {dimensions = array<i32: 0>} : vector<8x16xi32>
    %c0_i32 = arith.constant 0 : i32
    %21 = vector.broadcast %c0_i32 : i32 to vector<8x16xi32>
    %22 = arith.cmpi eq, %20, %21 : vector<8x16xi32>
    %cst_12 = arith.constant 0.000000e+00 : f32
    %23 = vector.broadcast %cst_12 : f32 to vector<8x16xf32>
    %24 = vector.shape_cast %16 : vector<1x16xf32> to vector<1x16xf32>
    %25 = vector.broadcast %24 : vector<1x16xf32> to vector<8x16xf32>
    %26 = arith.select %22, %25, %23 : vector<8x16xi1>, vector<8x16xf32>
    %c1_i32 = arith.constant 1 : i32
    %27 = vector.broadcast %c1_i32 : i32 to vector<8x16xi32>
    %28 = arith.cmpi eq, %20, %27 : vector<8x16xi32>
    %29 = vector.shape_cast %19 : vector<1x16xf32> to vector<1x16xf32>
    %30 = vector.broadcast %29 : vector<1x16xf32> to vector<8x16xf32>
    %31 = arith.select %28, %30, %26 : vector<8x16xi1>, vector<8x16xf32>
    %c0_13 = arith.constant 0 : index
    %c0_14 = arith.constant 0 : index
    %32 = vector.load %arg6[%c0_13, %c0_14] : memref<8x16xf32, #tpu.memory_space<vmem>>, vector<8x16xf32>
    tpu.vector_store %arg6[%c0_13, %c0_14], %31 {strides = array<i32>} : memref<8x16xf32, #tpu.memory_space<vmem>>, vector<8x16xf32>,
    return
  }
  func.func @transform_0(%arg0: i32) -> (i32, i32) {
    %c0_i32 = arith.constant 0 : i32
    %c0_i32_0 = arith.constant 0 : i32
    return %arg0, %c0_i32 : i32, i32
  }
  func.func @transform_1(%arg0: i32) -> (i32, i32) {
    %c0_i32 = arith.constant 0 : i32
    %c0_i32_0 = arith.constant 0 : i32
    %c0_i32_1 = arith.constant 0 : i32
    return %c0_i32, %c0_i32_0 : i32, i32
  }
  func.func @transform_2(%arg0: i32) -> (i32, i32) {
    %c0_i32 = arith.constant 0 : i32
    %c0_i32_0 = arith.constant 0 : i32
    %c0_i32_1 = arith.constant 0 : i32
    return %c0_i32, %c0_i32_0 : i32, i32
  }
  func.func @transform_3(%arg0: i32) -> (i32, i32) {
    %c0_i32 = arith.constant 0 : i32
    %c0_i32_0 = arith.constant 0 : i32
    %c0_i32_1 = arith.constant 0 : i32
    return %c0_i32, %c0_i32_0 : i32, i32
  }
  func.func @transform_4(%arg0: i32) -> (i32, i32) {
    %c0_i32 = arith.constant 0 : i32
    %c0_i32_0 = arith.constant 0 : i32
    return %arg0, %c0_i32 : i32, i32
  }
  func.func @transform_5(%arg0: i32) -> (i32, i32) {
    %c0_i32 = arith.constant 0 : i32
    %c0_i32_0 = arith.constant 0 : i32
    return %arg0, %c0_i32 : i32, i32
  }
}

module attributes {stable_mosaic.version = 11 : i64} {
  func.func @_conv2_bn_kernel(%arg0: i32, %arg1: memref<1x72x4xbf16, #tpu.memory_space<vmem>>, %arg2: memref<1x72x4xbf16, #tpu.memory_space<vmem>>, %arg3: memref<1x72x4xbf16, #tpu.memory_space<vmem>>, %arg4: memref<1x72x4xbf16, #tpu.memory_space<vmem>>, %arg5: memref<1x72x4xbf16, #tpu.memory_space<vmem>>, %arg6: memref<1x72x4xbf16, #tpu.memory_space<vmem>>, %arg7: memref<9x4x4xbf16, #tpu.memory_space<vmem>>, %arg8: memref<1x64x4xbf16, #tpu.memory_space<vmem>>, %arg9: memref<8x4xf32, #tpu.memory_space<vmem>>) attributes {dimension_semantics = [#tpu.dimension_semantics<parallel>], iteration_bounds = array<i64: 2>, scalar_prefetch = 0 : i64, scratch_operands = 0 : i64, tpu.core_type = #tpu.core_type<tc>, window_params = [{transform_indices = @transform_0, window_bounds = array<i64: 1, 72, 4>}, {transform_indices = @transform_1, window_bounds = array<i64: 1, 72, 4>}, {transform_indices = @transform_2, window_bounds = array<i64: 1, 72, 4>}, {transform_indices = @transform_3, window_bounds = array<i64: 1, 72, 4>}, {transform_indices = @transform_4, window_bounds = array<i64: 1, 72, 4>}, {transform_indices = @transform_5, window_bounds = array<i64: 1, 72, 4>}, {pipeline_mode = #tpu.pipeline_mode<synchronous>, transform_indices = @transform_6, window_bounds = array<i64: 9, 4, 4>}, {transform_indices = @transform_7, window_bounds = array<i64: 1, 64, 4>}, {transform_indices = @transform_8, window_bounds = array<i64: 8, 4>}]} {
    %c0 = arith.constant 0 : index
    %c0_0 = arith.constant 0 : index
    %c0_1 = arith.constant 0 : index
    %0 = vector.load %arg1[%c0, %c0_0, %c0_1] : memref<1x72x4xbf16, #tpu.memory_space<vmem>>, vector<1x64x4xbf16>
    %1 = vector.shape_cast %0 : vector<1x64x4xbf16> to vector<64x4xbf16>
    %c0_2 = arith.constant 0 : index
    %c0_3 = arith.constant 0 : index
    %c0_4 = arith.constant 0 : index
    %2 = vector.load %arg7[%c0_2, %c0_3, %c0_4] : memref<9x4x4xbf16, #tpu.memory_space<vmem>>, vector<1x4x4xbf16>
    %3 = vector.shape_cast %2 : vector<1x4x4xbf16> to vector<4x4xbf16>
    %cst = arith.constant dense<0.000000e+00> : vector<64x4xf32>
    %4 = tpu.matmul %1, %3, %cst {dimension_numbers = #tpu.dot_dimension_numbers<[1], [0], [0], [1], [0, 0, 1, 1], [], []>} : vector<64x4xbf16>, vector<4x4xbf16>, vector<64x4xf32> -> vector<64x4xf32>
    %c0_5 = arith.constant 0 : index
    %c0_6 = arith.constant 0 : index
    %c0_7 = arith.constant 0 : index
    %5 = vector.load %arg2[%c0_5, %c0_6, %c0_7] : memref<1x72x4xbf16, #tpu.memory_space<vmem>>, vector<1x64x4xbf16>
    %6 = vector.shape_cast %5 : vector<1x64x4xbf16> to vector<64x4xbf16>
    %c1 = arith.constant 1 : index
    %c0_8 = arith.constant 0 : index
    %c0_9 = arith.constant 0 : index
    %7 = vector.load %arg7[%c1, %c0_8, %c0_9] : memref<9x4x4xbf16, #tpu.memory_space<vmem>>, vector<1x4x4xbf16>
    %8 = vector.shape_cast %7 : vector<1x4x4xbf16> to vector<4x4xbf16>
    %cst_10 = arith.constant dense<0.000000e+00> : vector<64x4xf32>
    %9 = tpu.matmul %6, %8, %cst_10 {dimension_numbers = #tpu.dot_dimension_numbers<[1], [0], [0], [1], [0, 0, 1, 1], [], []>} : vector<64x4xbf16>, vector<4x4xbf16>, vector<64x4xf32> -> vector<64x4xf32>
    %10 = arith.addf %4, %9 : vector<64x4xf32>
    %c0_11 = arith.constant 0 : index
    %c0_12 = arith.constant 0 : index
    %c0_13 = arith.constant 0 : index
    %11 = vector.load %arg3[%c0_11, %c0_12, %c0_13] : memref<1x72x4xbf16, #tpu.memory_space<vmem>>, vector<1x64x4xbf16>
    %12 = vector.shape_cast %11 : vector<1x64x4xbf16> to vector<64x4xbf16>
    %c2 = arith.constant 2 : index
    %c0_14 = arith.constant 0 : index
    %c0_15 = arith.constant 0 : index
    %13 = vector.load %arg7[%c2, %c0_14, %c0_15] : memref<9x4x4xbf16, #tpu.memory_space<vmem>>, vector<1x4x4xbf16>
    %14 = vector.shape_cast %13 : vector<1x4x4xbf16> to vector<4x4xbf16>
    %cst_16 = arith.constant dense<0.000000e+00> : vector<64x4xf32>
    %15 = tpu.matmul %12, %14, %cst_16 {dimension_numbers = #tpu.dot_dimension_numbers<[1], [0], [0], [1], [0, 0, 1, 1], [], []>} : vector<64x4xbf16>, vector<4x4xbf16>, vector<64x4xf32> -> vector<64x4xf32>
    %16 = arith.addf %10, %15 : vector<64x4xf32>
    %c0_17 = arith.constant 0 : index
    %c0_18 = arith.constant 0 : index
    %c0_19 = arith.constant 0 : index
    %17 = vector.load %arg4[%c0_17, %c0_18, %c0_19] : memref<1x72x4xbf16, #tpu.memory_space<vmem>>, vector<1x64x4xbf16>
    %18 = vector.shape_cast %17 : vector<1x64x4xbf16> to vector<64x4xbf16>
    %c3 = arith.constant 3 : index
    %c0_20 = arith.constant 0 : index
    %c0_21 = arith.constant 0 : index
    %19 = vector.load %arg7[%c3, %c0_20, %c0_21] : memref<9x4x4xbf16, #tpu.memory_space<vmem>>, vector<1x4x4xbf16>
    %20 = vector.shape_cast %19 : vector<1x4x4xbf16> to vector<4x4xbf16>
    %cst_22 = arith.constant dense<0.000000e+00> : vector<64x4xf32>
    %21 = tpu.matmul %18, %20, %cst_22 {dimension_numbers = #tpu.dot_dimension_numbers<[1], [0], [0], [1], [0, 0, 1, 1], [], []>} : vector<64x4xbf16>, vector<4x4xbf16>, vector<64x4xf32> -> vector<64x4xf32>
    %22 = arith.addf %16, %21 : vector<64x4xf32>
    %c0_23 = arith.constant 0 : index
    %c0_24 = arith.constant 0 : index
    %c0_25 = arith.constant 0 : index
    %23 = vector.load %arg5[%c0_23, %c0_24, %c0_25] : memref<1x72x4xbf16, #tpu.memory_space<vmem>>, vector<1x64x4xbf16>
    %24 = vector.shape_cast %23 : vector<1x64x4xbf16> to vector<64x4xbf16>
    %c4 = arith.constant 4 : index
    %c0_26 = arith.constant 0 : index
    %c0_27 = arith.constant 0 : index
    %25 = vector.load %arg7[%c4, %c0_26, %c0_27] : memref<9x4x4xbf16, #tpu.memory_space<vmem>>, vector<1x4x4xbf16>
    %26 = vector.shape_cast %25 : vector<1x4x4xbf16> to vector<4x4xbf16>
    %cst_28 = arith.constant dense<0.000000e+00> : vector<64x4xf32>
    %27 = tpu.matmul %24, %26, %cst_28 {dimension_numbers = #tpu.dot_dimension_numbers<[1], [0], [0], [1], [0, 0, 1, 1], [], []>} : vector<64x4xbf16>, vector<4x4xbf16>, vector<64x4xf32> -> vector<64x4xf32>
    %28 = arith.addf %22, %27 : vector<64x4xf32>
    %c0_29 = arith.constant 0 : index
    %c0_30 = arith.constant 0 : index
    %c0_31 = arith.constant 0 : index
    %29 = vector.load %arg6[%c0_29, %c0_30, %c0_31] : memref<1x72x4xbf16, #tpu.memory_space<vmem>>, vector<1x64x4xbf16>
    %30 = vector.shape_cast %29 : vector<1x64x4xbf16> to vector<64x4xbf16>
    %c5 = arith.constant 5 : index
    %c0_32 = arith.constant 0 : index
    %c0_33 = arith.constant 0 : index
    %31 = vector.load %arg7[%c5, %c0_32, %c0_33] : memref<9x4x4xbf16, #tpu.memory_space<vmem>>, vector<1x4x4xbf16>
    %32 = vector.shape_cast %31 : vector<1x4x4xbf16> to vector<4x4xbf16>
    %cst_34 = arith.constant dense<0.000000e+00> : vector<64x4xf32>
    %33 = tpu.matmul %30, %32, %cst_34 {dimension_numbers = #tpu.dot_dimension_numbers<[1], [0], [0], [1], [0, 0, 1, 1], [], []>} : vector<64x4xbf16>, vector<4x4xbf16>, vector<64x4xf32> -> vector<64x4xf32>
    %34 = arith.addf %28, %33 : vector<64x4xf32>
    %c0_35 = arith.constant 0 : index
    %c8 = arith.constant 8 : index
    %c0_36 = arith.constant 0 : index
    %35 = vector.load %arg1[%c0_35, %c8, %c0_36] : memref<1x72x4xbf16, #tpu.memory_space<vmem>>, vector<1x64x4xbf16>
    %36 = vector.shape_cast %35 : vector<1x64x4xbf16> to vector<64x4xbf16>
    %c6 = arith.constant 6 : index
    %c0_37 = arith.constant 0 : index
    %c0_38 = arith.constant 0 : index
    %37 = vector.load %arg7[%c6, %c0_37, %c0_38] : memref<9x4x4xbf16, #tpu.memory_space<vmem>>, vector<1x4x4xbf16>
    %38 = vector.shape_cast %37 : vector<1x4x4xbf16> to vector<4x4xbf16>
    %cst_39 = arith.constant dense<0.000000e+00> : vector<64x4xf32>
    %39 = tpu.matmul %36, %38, %cst_39 {dimension_numbers = #tpu.dot_dimension_numbers<[1], [0], [0], [1], [0, 0, 1, 1], [], []>} : vector<64x4xbf16>, vector<4x4xbf16>, vector<64x4xf32> -> vector<64x4xf32>
    %40 = arith.addf %34, %39 : vector<64x4xf32>
    %c0_40 = arith.constant 0 : index
    %c8_41 = arith.constant 8 : index
    %c0_42 = arith.constant 0 : index
    %41 = vector.load %arg2[%c0_40, %c8_41, %c0_42] : memref<1x72x4xbf16, #tpu.memory_space<vmem>>, vector<1x64x4xbf16>
    %42 = vector.shape_cast %41 : vector<1x64x4xbf16> to vector<64x4xbf16>
    %c7 = arith.constant 7 : index
    %c0_43 = arith.constant 0 : index
    %c0_44 = arith.constant 0 : index
    %43 = vector.load %arg7[%c7, %c0_43, %c0_44] : memref<9x4x4xbf16, #tpu.memory_space<vmem>>, vector<1x4x4xbf16>
    %44 = vector.shape_cast %43 : vector<1x4x4xbf16> to vector<4x4xbf16>
    %cst_45 = arith.constant dense<0.000000e+00> : vector<64x4xf32>
    %45 = tpu.matmul %42, %44, %cst_45 {dimension_numbers = #tpu.dot_dimension_numbers<[1], [0], [0], [1], [0, 0, 1, 1], [], []>} : vector<64x4xbf16>, vector<4x4xbf16>, vector<64x4xf32> -> vector<64x4xf32>
    %46 = arith.addf %40, %45 : vector<64x4xf32>
    %c0_46 = arith.constant 0 : index
    %c8_47 = arith.constant 8 : index
    %c0_48 = arith.constant 0 : index
    %47 = vector.load %arg3[%c0_46, %c8_47, %c0_48] : memref<1x72x4xbf16, #tpu.memory_space<vmem>>, vector<1x64x4xbf16>
    %48 = vector.shape_cast %47 : vector<1x64x4xbf16> to vector<64x4xbf16>
    %c8_49 = arith.constant 8 : index
    %c0_50 = arith.constant 0 : index
    %c0_51 = arith.constant 0 : index
    %49 = vector.load %arg7[%c8_49, %c0_50, %c0_51] : memref<9x4x4xbf16, #tpu.memory_space<vmem>>, vector<1x4x4xbf16>
    %50 = vector.shape_cast %49 : vector<1x4x4xbf16> to vector<4x4xbf16>
    %cst_52 = arith.constant dense<0.000000e+00> : vector<64x4xf32>
    %51 = tpu.matmul %48, %50, %cst_52 {dimension_numbers = #tpu.dot_dimension_numbers<[1], [0], [0], [1], [0, 0, 1, 1], [], []>} : vector<64x4xbf16>, vector<4x4xbf16>, vector<64x4xf32> -> vector<64x4xf32>
    %52 = arith.addf %46, %51 : vector<64x4xf32>
    %53 = arith.truncf %52 : vector<64x4xf32> to vector<64x4xbf16>
    %c0_53 = arith.constant 0 : index
    %c0_54 = arith.constant 0 : index
    %c0_55 = arith.constant 0 : index
    %54 = vector.load %arg8[%c0_53, %c0_54, %c0_55] : memref<1x64x4xbf16, #tpu.memory_space<vmem>>, vector<1x64x4xbf16>
    %55 = vector.shape_cast %54 : vector<1x64x4xbf16> to vector<64x4xbf16>
    %56 = vector.shape_cast %53 : vector<64x4xbf16> to vector<1x64x4xbf16>
    tpu.vector_store %arg8[%c0_53, %c0_54, %c0_55], %56 {strides = array<i32>} : memref<1x64x4xbf16, #tpu.memory_space<vmem>>, vector<1x64x4xbf16>,
    %cst_56 = arith.constant dense<0.000000e+00> : vector<4xf32>
    %57 = vector.multi_reduction <add>, %52, %cst_56 [0] : vector<64x4xf32> to vector<4xf32>
    %58 = vector.shape_cast %57 : vector<4xf32> to vector<1x4xf32>
    %59 = arith.mulf %52, %52 : vector<64x4xf32>
    %cst_57 = arith.constant dense<0.000000e+00> : vector<4xf32>
    %60 = vector.multi_reduction <add>, %59, %cst_57 [0] : vector<64x4xf32> to vector<4xf32>
    %61 = vector.shape_cast %60 : vector<4xf32> to vector<1x4xf32>
    %62 = tpu.iota {dimensions = array<i32: 0>} : vector<8x4xi32>
    %c0_i32 = arith.constant 0 : i32
    %63 = vector.broadcast %c0_i32 : i32 to vector<8x4xi32>
    %64 = arith.cmpi eq, %62, %63 : vector<8x4xi32>
    %cst_58 = arith.constant 0.000000e+00 : f32
    %65 = vector.broadcast %cst_58 : f32 to vector<8x4xf32>
    %66 = vector.shape_cast %58 : vector<1x4xf32> to vector<1x4xf32>
    %67 = vector.broadcast %66 : vector<1x4xf32> to vector<8x4xf32>
    %68 = arith.select %64, %67, %65 : vector<8x4xi1>, vector<8x4xf32>
    %c1_i32 = arith.constant 1 : i32
    %69 = vector.broadcast %c1_i32 : i32 to vector<8x4xi32>
    %70 = arith.cmpi eq, %62, %69 : vector<8x4xi32>
    %71 = vector.shape_cast %61 : vector<1x4xf32> to vector<1x4xf32>
    %72 = vector.broadcast %71 : vector<1x4xf32> to vector<8x4xf32>
    %73 = arith.select %70, %72, %68 : vector<8x4xi1>, vector<8x4xf32>
    %c0_59 = arith.constant 0 : index
    %c0_60 = arith.constant 0 : index
    %74 = vector.load %arg9[%c0_59, %c0_60] : memref<8x4xf32, #tpu.memory_space<vmem>>, vector<8x4xf32>
    tpu.vector_store %arg9[%c0_59, %c0_60], %73 {strides = array<i32>} : memref<8x4xf32, #tpu.memory_space<vmem>>, vector<8x4xf32>,
    return
  }
  func.func @transform_0(%arg0: i32) -> (i32, i32, i32) {
    %c0_i32 = arith.constant 0 : i32
    %c0_i32_0 = arith.constant 0 : i32
    %c0_i32_1 = arith.constant 0 : i32
    return %arg0, %c0_i32, %c0_i32_0 : i32, i32, i32
  }
  func.func @transform_1(%arg0: i32) -> (i32, i32, i32) {
    %c0_i32 = arith.constant 0 : i32
    %c0_i32_0 = arith.constant 0 : i32
    %c0_i32_1 = arith.constant 0 : i32
    return %arg0, %c0_i32, %c0_i32_0 : i32, i32, i32
  }
  func.func @transform_2(%arg0: i32) -> (i32, i32, i32) {
    %c0_i32 = arith.constant 0 : i32
    %c0_i32_0 = arith.constant 0 : i32
    %c0_i32_1 = arith.constant 0 : i32
    return %arg0, %c0_i32, %c0_i32_0 : i32, i32, i32
  }
  func.func @transform_3(%arg0: i32) -> (i32, i32, i32) {
    %c0_i32 = arith.constant 0 : i32
    %c0_i32_0 = arith.constant 0 : i32
    %c0_i32_1 = arith.constant 0 : i32
    return %arg0, %c0_i32, %c0_i32_0 : i32, i32, i32
  }
  func.func @transform_4(%arg0: i32) -> (i32, i32, i32) {
    %c0_i32 = arith.constant 0 : i32
    %c0_i32_0 = arith.constant 0 : i32
    %c0_i32_1 = arith.constant 0 : i32
    return %arg0, %c0_i32, %c0_i32_0 : i32, i32, i32
  }
  func.func @transform_5(%arg0: i32) -> (i32, i32, i32) {
    %c0_i32 = arith.constant 0 : i32
    %c0_i32_0 = arith.constant 0 : i32
    %c0_i32_1 = arith.constant 0 : i32
    return %arg0, %c0_i32, %c0_i32_0 : i32, i32, i32
  }
  func.func @transform_6(%arg0: i32) -> (i32, i32, i32) {
    %c0_i32 = arith.constant 0 : i32
    %c0_i32_0 = arith.constant 0 : i32
    %c0_i32_1 = arith.constant 0 : i32
    %c0_i32_2 = arith.constant 0 : i32
    return %c0_i32, %c0_i32_0, %c0_i32_1 : i32, i32, i32
  }
  func.func @transform_7(%arg0: i32) -> (i32, i32, i32) {
    %c0_i32 = arith.constant 0 : i32
    %c0_i32_0 = arith.constant 0 : i32
    %c0_i32_1 = arith.constant 0 : i32
    return %arg0, %c0_i32, %c0_i32_0 : i32, i32, i32
  }
  func.func @transform_8(%arg0: i32) -> (i32, i32) {
    %c0_i32 = arith.constant 0 : i32
    %c0_i32_0 = arith.constant 0 : i32
    return %arg0, %c0_i32 : i32, i32
  }
}

module attributes {stable_mosaic.version = 11 : i64} {
  func.func @_res2_relu_kernel(%arg0: i32, %arg1: memref<64x16xbf16, #tpu.memory_space<vmem>>, %arg2: memref<1x16xf32, #tpu.memory_space<vmem>>, %arg3: memref<1x16xf32, #tpu.memory_space<vmem>>, %arg4: memref<64x16xbf16, #tpu.memory_space<vmem>>, %arg5: memref<1x16xf32, #tpu.memory_space<vmem>>, %arg6: memref<1x16xf32, #tpu.memory_space<vmem>>, %arg7: memref<64x16xbf16, #tpu.memory_space<vmem>>) attributes {dimension_semantics = [#tpu.dimension_semantics<parallel>], iteration_bounds = array<i64: 2>, scalar_prefetch = 0 : i64, scratch_operands = 0 : i64, tpu.core_type = #tpu.core_type<tc>, window_params = [{transform_indices = @transform_0, window_bounds = array<i64: 64, 16>}, {pipeline_mode = #tpu.pipeline_mode<synchronous>, transform_indices = @transform_1, window_bounds = array<i64: 1, 16>}, {pipeline_mode = #tpu.pipeline_mode<synchronous>, transform_indices = @transform_2, window_bounds = array<i64: 1, 16>}, {transform_indices = @transform_3, window_bounds = array<i64: 64, 16>}, {pipeline_mode = #tpu.pipeline_mode<synchronous>, transform_indices = @transform_4, window_bounds = array<i64: 1, 16>}, {pipeline_mode = #tpu.pipeline_mode<synchronous>, transform_indices = @transform_5, window_bounds = array<i64: 1, 16>}, {transform_indices = @transform_6, window_bounds = array<i64: 64, 16>}]} {
    %c0 = arith.constant 0 : index
    %c0_0 = arith.constant 0 : index
    %0 = vector.load %arg1[%c0, %c0_0] : memref<64x16xbf16, #tpu.memory_space<vmem>>, vector<64x16xbf16>
    %1 = arith.extf %0 : vector<64x16xbf16> to vector<64x16xf32>
    %c0_1 = arith.constant 0 : index
    %c0_2 = arith.constant 0 : index
    %2 = vector.load %arg2[%c0_1, %c0_2] : memref<1x16xf32, #tpu.memory_space<vmem>>, vector<1x16xf32>
    %3 = vector.broadcast %2 : vector<1x16xf32> to vector<64x16xf32>
    %4 = arith.mulf %1, %3 : vector<64x16xf32>
    %c0_3 = arith.constant 0 : index
    %c0_4 = arith.constant 0 : index
    %5 = vector.load %arg3[%c0_3, %c0_4] : memref<1x16xf32, #tpu.memory_space<vmem>>, vector<1x16xf32>
    %6 = vector.broadcast %5 : vector<1x16xf32> to vector<64x16xf32>
    %7 = arith.addf %4, %6 : vector<64x16xf32>
    %c0_5 = arith.constant 0 : index
    %c0_6 = arith.constant 0 : index
    %8 = vector.load %arg4[%c0_5, %c0_6] : memref<64x16xbf16, #tpu.memory_space<vmem>>, vector<64x16xbf16>
    %9 = arith.extf %8 : vector<64x16xbf16> to vector<64x16xf32>
    %c0_7 = arith.constant 0 : index
    %c0_8 = arith.constant 0 : index
    %10 = vector.load %arg5[%c0_7, %c0_8] : memref<1x16xf32, #tpu.memory_space<vmem>>, vector<1x16xf32>
    %11 = vector.broadcast %10 : vector<1x16xf32> to vector<64x16xf32>
    %12 = arith.mulf %9, %11 : vector<64x16xf32>
    %13 = arith.addf %7, %12 : vector<64x16xf32>
    %c0_9 = arith.constant 0 : index
    %c0_10 = arith.constant 0 : index
    %14 = vector.load %arg6[%c0_9, %c0_10] : memref<1x16xf32, #tpu.memory_space<vmem>>, vector<1x16xf32>
    %15 = vector.broadcast %14 : vector<1x16xf32> to vector<64x16xf32>
    %16 = arith.addf %13, %15 : vector<64x16xf32>
    %cst = arith.constant 0.000000e+00 : f32
    %17 = vector.broadcast %cst : f32 to vector<64x16xf32>
    %18 = arith.maximumf %16, %17 : vector<64x16xf32>
    %19 = arith.truncf %18 : vector<64x16xf32> to vector<64x16xbf16>
    %c0_11 = arith.constant 0 : index
    %c0_12 = arith.constant 0 : index
    %20 = vector.load %arg7[%c0_11, %c0_12] : memref<64x16xbf16, #tpu.memory_space<vmem>>, vector<64x16xbf16>
    tpu.vector_store %arg7[%c0_11, %c0_12], %19 {strides = array<i32>} : memref<64x16xbf16, #tpu.memory_space<vmem>>, vector<64x16xbf16>,
    return
  }
  func.func @transform_0(%arg0: i32) -> (i32, i32) {
    %c0_i32 = arith.constant 0 : i32
    %c0_i32_0 = arith.constant 0 : i32
    return %arg0, %c0_i32 : i32, i32
  }
  func.func @transform_1(%arg0: i32) -> (i32, i32) {
    %c0_i32 = arith.constant 0 : i32
    %c0_i32_0 = arith.constant 0 : i32
    %c0_i32_1 = arith.constant 0 : i32
    return %c0_i32, %c0_i32_0 : i32, i32
  }
  func.func @transform_2(%arg0: i32) -> (i32, i32) {
    %c0_i32 = arith.constant 0 : i32
    %c0_i32_0 = arith.constant 0 : i32
    %c0_i32_1 = arith.constant 0 : i32
    return %c0_i32, %c0_i32_0 : i32, i32
  }
  func.func @transform_3(%arg0: i32) -> (i32, i32) {
    %c0_i32 = arith.constant 0 : i32
    %c0_i32_0 = arith.constant 0 : i32
    return %arg0, %c0_i32 : i32, i32
  }
  func.func @transform_4(%arg0: i32) -> (i32, i32) {
    %c0_i32 = arith.constant 0 : i32
    %c0_i32_0 = arith.constant 0 : i32
    %c0_i32_1 = arith.constant 0 : i32
    return %c0_i32, %c0_i32_0 : i32, i32
  }
  func.func @transform_5(%arg0: i32) -> (i32, i32) {
    %c0_i32 = arith.constant 0 : i32
    %c0_i32_0 = arith.constant 0 : i32
    %c0_i32_1 = arith.constant 0 : i32
    return %c0_i32, %c0_i32_0 : i32, i32
  }
  func.func @transform_6(%arg0: i32) -> (i32, i32) {
    %c0_i32 = arith.constant 0 : i32
    %c0_i32_0 = arith.constant 0 : i32
    return %arg0, %c0_i32 : i32, i32
  }
}

module attributes {stable_mosaic.version = 11 : i64} {
  func.func @_mm_bn_kernel(%arg0: i32, %arg1: memref<64x4xf32, #tpu.memory_space<vmem>>, %arg2: memref<4x16xbf16, #tpu.memory_space<vmem>>, %arg3: memref<64x16xbf16, #tpu.memory_space<vmem>>, %arg4: memref<8x16xf32, #tpu.memory_space<vmem>>) attributes {dimension_semantics = [#tpu.dimension_semantics<parallel>], iteration_bounds = array<i64: 2>, scalar_prefetch = 0 : i64, scratch_operands = 0 : i64, tpu.core_type = #tpu.core_type<tc>, window_params = [{transform_indices = @transform_0, window_bounds = array<i64: 64, 4>}, {pipeline_mode = #tpu.pipeline_mode<synchronous>, transform_indices = @transform_1, window_bounds = array<i64: 4, 16>}, {transform_indices = @transform_2, window_bounds = array<i64: 64, 16>}, {transform_indices = @transform_3, window_bounds = array<i64: 8, 16>}]} {
    %c0 = arith.constant 0 : index
    %c0_0 = arith.constant 0 : index
    %0 = vector.load %arg1[%c0, %c0_0] : memref<64x4xf32, #tpu.memory_space<vmem>>, vector<64x4xf32>
    %1 = arith.truncf %0 : vector<64x4xf32> to vector<64x4xbf16>
    %c0_1 = arith.constant 0 : index
    %c0_2 = arith.constant 0 : index
    %2 = vector.load %arg2[%c0_1, %c0_2] : memref<4x16xbf16, #tpu.memory_space<vmem>>, vector<4x16xbf16>
    %cst = arith.constant dense<0.000000e+00> : vector<64x16xf32>
    %3 = tpu.matmul %1, %2, %cst {dimension_numbers = #tpu.dot_dimension_numbers<[1], [0], [0], [1], [0, 0, 1, 1], [], []>} : vector<64x4xbf16>, vector<4x16xbf16>, vector<64x16xf32> -> vector<64x16xf32>
    %4 = arith.truncf %3 : vector<64x16xf32> to vector<64x16xbf16>
    %c0_3 = arith.constant 0 : index
    %c0_4 = arith.constant 0 : index
    %5 = vector.load %arg3[%c0_3, %c0_4] : memref<64x16xbf16, #tpu.memory_space<vmem>>, vector<64x16xbf16>
    tpu.vector_store %arg3[%c0_3, %c0_4], %4 {strides = array<i32>} : memref<64x16xbf16, #tpu.memory_space<vmem>>, vector<64x16xbf16>,
    %cst_5 = arith.constant dense<0.000000e+00> : vector<16xf32>
    %6 = vector.multi_reduction <add>, %3, %cst_5 [0] : vector<64x16xf32> to vector<16xf32>
    %7 = vector.shape_cast %6 : vector<16xf32> to vector<1x16xf32>
    %8 = arith.mulf %3, %3 : vector<64x16xf32>
    %cst_6 = arith.constant dense<0.000000e+00> : vector<16xf32>
    %9 = vector.multi_reduction <add>, %8, %cst_6 [0] : vector<64x16xf32> to vector<16xf32>
    %10 = vector.shape_cast %9 : vector<16xf32> to vector<1x16xf32>
    %11 = tpu.iota {dimensions = array<i32: 0>} : vector<8x16xi32>
    %c0_i32 = arith.constant 0 : i32
    %12 = vector.broadcast %c0_i32 : i32 to vector<8x16xi32>
    %13 = arith.cmpi eq, %11, %12 : vector<8x16xi32>
    %cst_7 = arith.constant 0.000000e+00 : f32
    %14 = vector.broadcast %cst_7 : f32 to vector<8x16xf32>
    %15 = vector.shape_cast %7 : vector<1x16xf32> to vector<1x16xf32>
    %16 = vector.broadcast %15 : vector<1x16xf32> to vector<8x16xf32>
    %17 = arith.select %13, %16, %14 : vector<8x16xi1>, vector<8x16xf32>
    %c1_i32 = arith.constant 1 : i32
    %18 = vector.broadcast %c1_i32 : i32 to vector<8x16xi32>
    %19 = arith.cmpi eq, %11, %18 : vector<8x16xi32>
    %20 = vector.shape_cast %10 : vector<1x16xf32> to vector<1x16xf32>
    %21 = vector.broadcast %20 : vector<1x16xf32> to vector<8x16xf32>
    %22 = arith.select %19, %21, %17 : vector<8x16xi1>, vector<8x16xf32>
    %c0_8 = arith.constant 0 : index
    %c0_9 = arith.constant 0 : index
    %23 = vector.load %arg4[%c0_8, %c0_9] : memref<8x16xf32, #tpu.memory_space<vmem>>, vector<8x16xf32>
    tpu.vector_store %arg4[%c0_8, %c0_9], %22 {strides = array<i32>} : memref<8x16xf32, #tpu.memory_space<vmem>>, vector<8x16xf32>,
    return
  }
  func.func @transform_0(%arg0: i32) -> (i32, i32) {
    %c0_i32 = arith.constant 0 : i32
    %c0_i32_0 = arith.constant 0 : i32
    return %arg0, %c0_i32 : i32, i32
  }
  func.func @transform_1(%arg0: i32) -> (i32, i32) {
    %c0_i32 = arith.constant 0 : i32
    %c0_i32_0 = arith.constant 0 : i32
    %c0_i32_1 = arith.constant 0 : i32
    return %c0_i32, %c0_i32_0 : i32, i32
  }
  func.func @transform_2(%arg0: i32) -> (i32, i32) {
    %c0_i32 = arith.constant 0 : i32
    %c0_i32_0 = arith.constant 0 : i32
    return %arg0, %c0_i32 : i32, i32
  }
  func.func @transform_3(%arg0: i32) -> (i32, i32) {
    %c0_i32 = arith.constant 0 : i32
    %c0_i32_0 = arith.constant 0 : i32
    return %arg0, %c0_i32 : i32, i32
  }
}

module attributes {stable_mosaic.version = 11 : i64} {
  func.func @_mm_bn_kernel(%arg0: i32, %arg1: memref<64x16xbf16, #tpu.memory_space<vmem>>, %arg2: memref<16x4xbf16, #tpu.memory_space<vmem>>, %arg3: memref<64x4xbf16, #tpu.memory_space<vmem>>, %arg4: memref<8x4xf32, #tpu.memory_space<vmem>>) attributes {dimension_semantics = [#tpu.dimension_semantics<parallel>], iteration_bounds = array<i64: 2>, scalar_prefetch = 0 : i64, scratch_operands = 0 : i64, tpu.core_type = #tpu.core_type<tc>, window_params = [{transform_indices = @transform_0, window_bounds = array<i64: 64, 16>}, {pipeline_mode = #tpu.pipeline_mode<synchronous>, transform_indices = @transform_1, window_bounds = array<i64: 16, 4>}, {transform_indices = @transform_2, window_bounds = array<i64: 64, 4>}, {transform_indices = @transform_3, window_bounds = array<i64: 8, 4>}]} {
    %c0 = arith.constant 0 : index
    %c0_0 = arith.constant 0 : index
    %0 = vector.load %arg1[%c0, %c0_0] : memref<64x16xbf16, #tpu.memory_space<vmem>>, vector<64x16xbf16>
    %c0_1 = arith.constant 0 : index
    %c0_2 = arith.constant 0 : index
    %1 = vector.load %arg2[%c0_1, %c0_2] : memref<16x4xbf16, #tpu.memory_space<vmem>>, vector<16x4xbf16>
    %cst = arith.constant dense<0.000000e+00> : vector<64x4xf32>
    %2 = tpu.matmul %0, %1, %cst {dimension_numbers = #tpu.dot_dimension_numbers<[1], [0], [0], [1], [0, 0, 1, 1], [], []>} : vector<64x16xbf16>, vector<16x4xbf16>, vector<64x4xf32> -> vector<64x4xf32>
    %3 = arith.truncf %2 : vector<64x4xf32> to vector<64x4xbf16>
    %c0_3 = arith.constant 0 : index
    %c0_4 = arith.constant 0 : index
    %4 = vector.load %arg3[%c0_3, %c0_4] : memref<64x4xbf16, #tpu.memory_space<vmem>>, vector<64x4xbf16>
    tpu.vector_store %arg3[%c0_3, %c0_4], %3 {strides = array<i32>} : memref<64x4xbf16, #tpu.memory_space<vmem>>, vector<64x4xbf16>,
    %cst_5 = arith.constant dense<0.000000e+00> : vector<4xf32>
    %5 = vector.multi_reduction <add>, %2, %cst_5 [0] : vector<64x4xf32> to vector<4xf32>
    %6 = vector.shape_cast %5 : vector<4xf32> to vector<1x4xf32>
    %7 = arith.mulf %2, %2 : vector<64x4xf32>
    %cst_6 = arith.constant dense<0.000000e+00> : vector<4xf32>
    %8 = vector.multi_reduction <add>, %7, %cst_6 [0] : vector<64x4xf32> to vector<4xf32>
    %9 = vector.shape_cast %8 : vector<4xf32> to vector<1x4xf32>
    %10 = tpu.iota {dimensions = array<i32: 0>} : vector<8x4xi32>
    %c0_i32 = arith.constant 0 : i32
    %11 = vector.broadcast %c0_i32 : i32 to vector<8x4xi32>
    %12 = arith.cmpi eq, %10, %11 : vector<8x4xi32>
    %cst_7 = arith.constant 0.000000e+00 : f32
    %13 = vector.broadcast %cst_7 : f32 to vector<8x4xf32>
    %14 = vector.shape_cast %6 : vector<1x4xf32> to vector<1x4xf32>
    %15 = vector.broadcast %14 : vector<1x4xf32> to vector<8x4xf32>
    %16 = arith.select %12, %15, %13 : vector<8x4xi1>, vector<8x4xf32>
    %c1_i32 = arith.constant 1 : i32
    %17 = vector.broadcast %c1_i32 : i32 to vector<8x4xi32>
    %18 = arith.cmpi eq, %10, %17 : vector<8x4xi32>
    %19 = vector.shape_cast %9 : vector<1x4xf32> to vector<1x4xf32>
    %20 = vector.broadcast %19 : vector<1x4xf32> to vector<8x4xf32>
    %21 = arith.select %18, %20, %16 : vector<8x4xi1>, vector<8x4xf32>
    %c0_8 = arith.constant 0 : index
    %c0_9 = arith.constant 0 : index
    %22 = vector.load %arg4[%c0_8, %c0_9] : memref<8x4xf32, #tpu.memory_space<vmem>>, vector<8x4xf32>
    tpu.vector_store %arg4[%c0_8, %c0_9], %21 {strides = array<i32>} : memref<8x4xf32, #tpu.memory_space<vmem>>, vector<8x4xf32>,
    return
  }
  func.func @transform_0(%arg0: i32) -> (i32, i32) {
    %c0_i32 = arith.constant 0 : i32
    %c0_i32_0 = arith.constant 0 : i32
    return %arg0, %c0_i32 : i32, i32
  }
  func.func @transform_1(%arg0: i32) -> (i32, i32) {
    %c0_i32 = arith.constant 0 : i32
    %c0_i32_0 = arith.constant 0 : i32
    %c0_i32_1 = arith.constant 0 : i32
    return %c0_i32, %c0_i32_0 : i32, i32
  }
  func.func @transform_2(%arg0: i32) -> (i32, i32) {
    %c0_i32 = arith.constant 0 : i32
    %c0_i32_0 = arith.constant 0 : i32
    return %arg0, %c0_i32 : i32, i32
  }
  func.func @transform_3(%arg0: i32) -> (i32, i32) {
    %c0_i32 = arith.constant 0 : i32
    %c0_i32_0 = arith.constant 0 : i32
    return %arg0, %c0_i32 : i32, i32
  }
}

module attributes {stable_mosaic.version = 11 : i64} {
  func.func @_affine_relu_kernel(%arg0: i32, %arg1: memref<64x4xbf16, #tpu.memory_space<vmem>>, %arg2: memref<1x4xf32, #tpu.memory_space<vmem>>, %arg3: memref<1x4xf32, #tpu.memory_space<vmem>>, %arg4: memref<64x4xbf16, #tpu.memory_space<vmem>>) attributes {dimension_semantics = [#tpu.dimension_semantics<parallel>], iteration_bounds = array<i64: 2>, scalar_prefetch = 0 : i64, scratch_operands = 0 : i64, tpu.core_type = #tpu.core_type<tc>, window_params = [{transform_indices = @transform_0, window_bounds = array<i64: 64, 4>}, {pipeline_mode = #tpu.pipeline_mode<synchronous>, transform_indices = @transform_1, window_bounds = array<i64: 1, 4>}, {pipeline_mode = #tpu.pipeline_mode<synchronous>, transform_indices = @transform_2, window_bounds = array<i64: 1, 4>}, {transform_indices = @transform_3, window_bounds = array<i64: 64, 4>}]} {
    %c0 = arith.constant 0 : index
    %c0_0 = arith.constant 0 : index
    %0 = vector.load %arg1[%c0, %c0_0] : memref<64x4xbf16, #tpu.memory_space<vmem>>, vector<64x4xbf16>
    %1 = arith.extf %0 : vector<64x4xbf16> to vector<64x4xf32>
    %c0_1 = arith.constant 0 : index
    %c0_2 = arith.constant 0 : index
    %2 = vector.load %arg2[%c0_1, %c0_2] : memref<1x4xf32, #tpu.memory_space<vmem>>, vector<1x4xf32>
    %3 = vector.broadcast %2 : vector<1x4xf32> to vector<64x4xf32>
    %4 = arith.mulf %1, %3 : vector<64x4xf32>
    %c0_3 = arith.constant 0 : index
    %c0_4 = arith.constant 0 : index
    %5 = vector.load %arg3[%c0_3, %c0_4] : memref<1x4xf32, #tpu.memory_space<vmem>>, vector<1x4xf32>
    %6 = vector.broadcast %5 : vector<1x4xf32> to vector<64x4xf32>
    %7 = arith.addf %4, %6 : vector<64x4xf32>
    %cst = arith.constant 0.000000e+00 : f32
    %8 = vector.broadcast %cst : f32 to vector<64x4xf32>
    %9 = arith.maximumf %7, %8 : vector<64x4xf32>
    %10 = arith.truncf %9 : vector<64x4xf32> to vector<64x4xbf16>
    %c0_5 = arith.constant 0 : index
    %c0_6 = arith.constant 0 : index
    %11 = vector.load %arg4[%c0_5, %c0_6] : memref<64x4xbf16, #tpu.memory_space<vmem>>, vector<64x4xbf16>
    tpu.vector_store %arg4[%c0_5, %c0_6], %10 {strides = array<i32>} : memref<64x4xbf16, #tpu.memory_space<vmem>>, vector<64x4xbf16>,
    return
  }
  func.func @transform_0(%arg0: i32) -> (i32, i32) {
    %c0_i32 = arith.constant 0 : i32
    %c0_i32_0 = arith.constant 0 : i32
    return %arg0, %c0_i32 : i32, i32
  }
  func.func @transform_1(%arg0: i32) -> (i32, i32) {
    %c0_i32 = arith.constant 0 : i32
    %c0_i32_0 = arith.constant 0 : i32
    %c0_i32_1 = arith.constant 0 : i32
    return %c0_i32, %c0_i32_0 : i32, i32
  }
  func.func @transform_2(%arg0: i32) -> (i32, i32) {
    %c0_i32 = arith.constant 0 : i32
    %c0_i32_0 = arith.constant 0 : i32
    %c0_i32_1 = arith.constant 0 : i32
    return %c0_i32, %c0_i32_0 : i32, i32
  }
  func.func @transform_3(%arg0: i32) -> (i32, i32) {
    %c0_i32 = arith.constant 0 : i32
    %c0_i32_0 = arith.constant 0 : i32
    return %arg0, %c0_i32 : i32, i32
  }
}

module attributes {stable_mosaic.version = 11 : i64} {
  func.func @_res_relu_kernel(%arg0: i32, %arg1: memref<64x16xbf16, #tpu.memory_space<vmem>>, %arg2: memref<1x16xf32, #tpu.memory_space<vmem>>, %arg3: memref<1x16xf32, #tpu.memory_space<vmem>>, %arg4: memref<64x16xbf16, #tpu.memory_space<vmem>>, %arg5: memref<64x16xf32, #tpu.memory_space<vmem>>) attributes {dimension_semantics = [#tpu.dimension_semantics<parallel>], iteration_bounds = array<i64: 2>, scalar_prefetch = 0 : i64, scratch_operands = 0 : i64, tpu.core_type = #tpu.core_type<tc>, window_params = [{transform_indices = @transform_0, window_bounds = array<i64: 64, 16>}, {pipeline_mode = #tpu.pipeline_mode<synchronous>, transform_indices = @transform_1, window_bounds = array<i64: 1, 16>}, {pipeline_mode = #tpu.pipeline_mode<synchronous>, transform_indices = @transform_2, window_bounds = array<i64: 1, 16>}, {transform_indices = @transform_3, window_bounds = array<i64: 64, 16>}, {transform_indices = @transform_4, window_bounds = array<i64: 64, 16>}]} {
    %c0 = arith.constant 0 : index
    %c0_0 = arith.constant 0 : index
    %0 = vector.load %arg1[%c0, %c0_0] : memref<64x16xbf16, #tpu.memory_space<vmem>>, vector<64x16xbf16>
    %1 = arith.extf %0 : vector<64x16xbf16> to vector<64x16xf32>
    %c0_1 = arith.constant 0 : index
    %c0_2 = arith.constant 0 : index
    %2 = vector.load %arg2[%c0_1, %c0_2] : memref<1x16xf32, #tpu.memory_space<vmem>>, vector<1x16xf32>
    %3 = vector.broadcast %2 : vector<1x16xf32> to vector<64x16xf32>
    %4 = arith.mulf %1, %3 : vector<64x16xf32>
    %c0_3 = arith.constant 0 : index
    %c0_4 = arith.constant 0 : index
    %5 = vector.load %arg3[%c0_3, %c0_4] : memref<1x16xf32, #tpu.memory_space<vmem>>, vector<1x16xf32>
    %6 = vector.broadcast %5 : vector<1x16xf32> to vector<64x16xf32>
    %7 = arith.addf %4, %6 : vector<64x16xf32>
    %c0_5 = arith.constant 0 : index
    %c0_6 = arith.constant 0 : index
    %8 = vector.load %arg4[%c0_5, %c0_6] : memref<64x16xbf16, #tpu.memory_space<vmem>>, vector<64x16xbf16>
    %9 = arith.extf %8 : vector<64x16xbf16> to vector<64x16xf32>
    %10 = arith.addf %7, %9 : vector<64x16xf32>
    %cst = arith.constant 0.000000e+00 : f32
    %11 = vector.broadcast %cst : f32 to vector<64x16xf32>
    %12 = arith.maximumf %10, %11 : vector<64x16xf32>
    %c0_7 = arith.constant 0 : index
    %c0_8 = arith.constant 0 : index
    %13 = vector.load %arg5[%c0_7, %c0_8] : memref<64x16xf32, #tpu.memory_space<vmem>>, vector<64x16xf32>
    tpu.vector_store %arg5[%c0_7, %c0_8], %12 {strides = array<i32>} : memref<64x16xf32, #tpu.memory_space<vmem>>, vector<64x16xf32>,
    return
  }
  func.func @transform_0(%arg0: i32) -> (i32, i32) {
    %c0_i32 = arith.constant 0 : i32
    %c0_i32_0 = arith.constant 0 : i32
    return %arg0, %c0_i32 : i32, i32
  }
  func.func @transform_1(%arg0: i32) -> (i32, i32) {
    %c0_i32 = arith.constant 0 : i32
    %c0_i32_0 = arith.constant 0 : i32
    %c0_i32_1 = arith.constant 0 : i32
    return %c0_i32, %c0_i32_0 : i32, i32
  }
  func.func @transform_2(%arg0: i32) -> (i32, i32) {
    %c0_i32 = arith.constant 0 : i32
    %c0_i32_0 = arith.constant 0 : i32
    %c0_i32_1 = arith.constant 0 : i32
    return %c0_i32, %c0_i32_0 : i32, i32
  }
  func.func @transform_3(%arg0: i32) -> (i32, i32) {
    %c0_i32 = arith.constant 0 : i32
    %c0_i32_0 = arith.constant 0 : i32
    return %arg0, %c0_i32 : i32, i32
  }
  func.func @transform_4(%arg0: i32) -> (i32, i32) {
    %c0_i32 = arith.constant 0 : i32
    %c0_i32_0 = arith.constant 0 : i32
    return %arg0, %c0_i32 : i32, i32
  }
}

module attributes {stable_mosaic.version = 11 : i64} {
  func.func @_conv2_bn_kernel(%arg0: i32, %arg1: memref<1x80x4xbf16, #tpu.memory_space<vmem>>, %arg2: memref<1x80x4xbf16, #tpu.memory_space<vmem>>, %arg3: memref<1x80x4xbf16, #tpu.memory_space<vmem>>, %arg4: memref<9x4x4xbf16, #tpu.memory_space<vmem>>, %arg5: memref<1x64x4xbf16, #tpu.memory_space<vmem>>, %arg6: memref<8x4xf32, #tpu.memory_space<vmem>>) attributes {dimension_semantics = [#tpu.dimension_semantics<parallel>], iteration_bounds = array<i64: 2>, scalar_prefetch = 0 : i64, scratch_operands = 0 : i64, tpu.core_type = #tpu.core_type<tc>, window_params = [{transform_indices = @transform_0, window_bounds = array<i64: 1, 80, 4>}, {transform_indices = @transform_1, window_bounds = array<i64: 1, 80, 4>}, {transform_indices = @transform_2, window_bounds = array<i64: 1, 80, 4>}, {pipeline_mode = #tpu.pipeline_mode<synchronous>, transform_indices = @transform_3, window_bounds = array<i64: 9, 4, 4>}, {transform_indices = @transform_4, window_bounds = array<i64: 1, 64, 4>}, {transform_indices = @transform_5, window_bounds = array<i64: 8, 4>}]} {
    %c0 = arith.constant 0 : index
    %c0_0 = arith.constant 0 : index
    %c0_1 = arith.constant 0 : index
    %0 = vector.load %arg1[%c0, %c0_0, %c0_1] : memref<1x80x4xbf16, #tpu.memory_space<vmem>>, vector<1x64x4xbf16>
    %1 = vector.shape_cast %0 : vector<1x64x4xbf16> to vector<64x4xbf16>
    %c0_2 = arith.constant 0 : index
    %c0_3 = arith.constant 0 : index
    %c0_4 = arith.constant 0 : index
    %2 = vector.load %arg4[%c0_2, %c0_3, %c0_4] : memref<9x4x4xbf16, #tpu.memory_space<vmem>>, vector<1x4x4xbf16>
    %3 = vector.shape_cast %2 : vector<1x4x4xbf16> to vector<4x4xbf16>
    %cst = arith.constant dense<0.000000e+00> : vector<64x4xf32>
    %4 = tpu.matmul %1, %3, %cst {dimension_numbers = #tpu.dot_dimension_numbers<[1], [0], [0], [1], [0, 0, 1, 1], [], []>} : vector<64x4xbf16>, vector<4x4xbf16>, vector<64x4xf32> -> vector<64x4xf32>
    %c0_5 = arith.constant 0 : index
    %c0_6 = arith.constant 0 : index
    %c0_7 = arith.constant 0 : index
    %5 = vector.load %arg2[%c0_5, %c0_6, %c0_7] : memref<1x80x4xbf16, #tpu.memory_space<vmem>>, vector<1x64x4xbf16>
    %6 = vector.shape_cast %5 : vector<1x64x4xbf16> to vector<64x4xbf16>
    %c1 = arith.constant 1 : index
    %c0_8 = arith.constant 0 : index
    %c0_9 = arith.constant 0 : index
    %7 = vector.load %arg4[%c1, %c0_8, %c0_9] : memref<9x4x4xbf16, #tpu.memory_space<vmem>>, vector<1x4x4xbf16>
    %8 = vector.shape_cast %7 : vector<1x4x4xbf16> to vector<4x4xbf16>
    %cst_10 = arith.constant dense<0.000000e+00> : vector<64x4xf32>
    %9 = tpu.matmul %6, %8, %cst_10 {dimension_numbers = #tpu.dot_dimension_numbers<[1], [0], [0], [1], [0, 0, 1, 1], [], []>} : vector<64x4xbf16>, vector<4x4xbf16>, vector<64x4xf32> -> vector<64x4xf32>
    %10 = arith.addf %4, %9 : vector<64x4xf32>
    %c0_11 = arith.constant 0 : index
    %c0_12 = arith.constant 0 : index
    %c0_13 = arith.constant 0 : index
    %11 = vector.load %arg3[%c0_11, %c0_12, %c0_13] : memref<1x80x4xbf16, #tpu.memory_space<vmem>>, vector<1x64x4xbf16>
    %12 = vector.shape_cast %11 : vector<1x64x4xbf16> to vector<64x4xbf16>
    %c2 = arith.constant 2 : index
    %c0_14 = arith.constant 0 : index
    %c0_15 = arith.constant 0 : index
    %13 = vector.load %arg4[%c2, %c0_14, %c0_15] : memref<9x4x4xbf16, #tpu.memory_space<vmem>>, vector<1x4x4xbf16>
    %14 = vector.shape_cast %13 : vector<1x4x4xbf16> to vector<4x4xbf16>
    %cst_16 = arith.constant dense<0.000000e+00> : vector<64x4xf32>
    %15 = tpu.matmul %12, %14, %cst_16 {dimension_numbers = #tpu.dot_dimension_numbers<[1], [0], [0], [1], [0, 0, 1, 1], [], []>} : vector<64x4xbf16>, vector<4x4xbf16>, vector<64x4xf32> -> vector<64x4xf32>
    %16 = arith.addf %10, %15 : vector<64x4xf32>
    %c0_17 = arith.constant 0 : index
    %c8 = arith.constant 8 : index
    %c0_18 = arith.constant 0 : index
    %17 = vector.load %arg1[%c0_17, %c8, %c0_18] : memref<1x80x4xbf16, #tpu.memory_space<vmem>>, vector<1x64x4xbf16>
    %18 = vector.shape_cast %17 : vector<1x64x4xbf16> to vector<64x4xbf16>
    %c3 = arith.constant 3 : index
    %c0_19 = arith.constant 0 : index
    %c0_20 = arith.constant 0 : index
    %19 = vector.load %arg4[%c3, %c0_19, %c0_20] : memref<9x4x4xbf16, #tpu.memory_space<vmem>>, vector<1x4x4xbf16>
    %20 = vector.shape_cast %19 : vector<1x4x4xbf16> to vector<4x4xbf16>
    %cst_21 = arith.constant dense<0.000000e+00> : vector<64x4xf32>
    %21 = tpu.matmul %18, %20, %cst_21 {dimension_numbers = #tpu.dot_dimension_numbers<[1], [0], [0], [1], [0, 0, 1, 1], [], []>} : vector<64x4xbf16>, vector<4x4xbf16>, vector<64x4xf32> -> vector<64x4xf32>
    %22 = arith.addf %16, %21 : vector<64x4xf32>
    %c0_22 = arith.constant 0 : index
    %c8_23 = arith.constant 8 : index
    %c0_24 = arith.constant 0 : index
    %23 = vector.load %arg2[%c0_22, %c8_23, %c0_24] : memref<1x80x4xbf16, #tpu.memory_space<vmem>>, vector<1x64x4xbf16>
    %24 = vector.shape_cast %23 : vector<1x64x4xbf16> to vector<64x4xbf16>
    %c4 = arith.constant 4 : index
    %c0_25 = arith.constant 0 : index
    %c0_26 = arith.constant 0 : index
    %25 = vector.load %arg4[%c4, %c0_25, %c0_26] : memref<9x4x4xbf16, #tpu.memory_space<vmem>>, vector<1x4x4xbf16>
    %26 = vector.shape_cast %25 : vector<1x4x4xbf16> to vector<4x4xbf16>
    %cst_27 = arith.constant dense<0.000000e+00> : vector<64x4xf32>
    %27 = tpu.matmul %24, %26, %cst_27 {dimension_numbers = #tpu.dot_dimension_numbers<[1], [0], [0], [1], [0, 0, 1, 1], [], []>} : vector<64x4xbf16>, vector<4x4xbf16>, vector<64x4xf32> -> vector<64x4xf32>
    %28 = arith.addf %22, %27 : vector<64x4xf32>
    %c0_28 = arith.constant 0 : index
    %c8_29 = arith.constant 8 : index
    %c0_30 = arith.constant 0 : index
    %29 = vector.load %arg3[%c0_28, %c8_29, %c0_30] : memref<1x80x4xbf16, #tpu.memory_space<vmem>>, vector<1x64x4xbf16>
    %30 = vector.shape_cast %29 : vector<1x64x4xbf16> to vector<64x4xbf16>
    %c5 = arith.constant 5 : index
    %c0_31 = arith.constant 0 : index
    %c0_32 = arith.constant 0 : index
    %31 = vector.load %arg4[%c5, %c0_31, %c0_32] : memref<9x4x4xbf16, #tpu.memory_space<vmem>>, vector<1x4x4xbf16>
    %32 = vector.shape_cast %31 : vector<1x4x4xbf16> to vector<4x4xbf16>
    %cst_33 = arith.constant dense<0.000000e+00> : vector<64x4xf32>
    %33 = tpu.matmul %30, %32, %cst_33 {dimension_numbers = #tpu.dot_dimension_numbers<[1], [0], [0], [1], [0, 0, 1, 1], [], []>} : vector<64x4xbf16>, vector<4x4xbf16>, vector<64x4xf32> -> vector<64x4xf32>
    %34 = arith.addf %28, %33 : vector<64x4xf32>
    %c0_34 = arith.constant 0 : index
    %c16 = arith.constant 16 : index
    %c0_35 = arith.constant 0 : index
    %35 = vector.load %arg1[%c0_34, %c16, %c0_35] : memref<1x80x4xbf16, #tpu.memory_space<vmem>>, vector<1x64x4xbf16>
    %36 = vector.shape_cast %35 : vector<1x64x4xbf16> to vector<64x4xbf16>
    %c6 = arith.constant 6 : index
    %c0_36 = arith.constant 0 : index
    %c0_37 = arith.constant 0 : index
    %37 = vector.load %arg4[%c6, %c0_36, %c0_37] : memref<9x4x4xbf16, #tpu.memory_space<vmem>>, vector<1x4x4xbf16>
    %38 = vector.shape_cast %37 : vector<1x4x4xbf16> to vector<4x4xbf16>
    %cst_38 = arith.constant dense<0.000000e+00> : vector<64x4xf32>
    %39 = tpu.matmul %36, %38, %cst_38 {dimension_numbers = #tpu.dot_dimension_numbers<[1], [0], [0], [1], [0, 0, 1, 1], [], []>} : vector<64x4xbf16>, vector<4x4xbf16>, vector<64x4xf32> -> vector<64x4xf32>
    %40 = arith.addf %34, %39 : vector<64x4xf32>
    %c0_39 = arith.constant 0 : index
    %c16_40 = arith.constant 16 : index
    %c0_41 = arith.constant 0 : index
    %41 = vector.load %arg2[%c0_39, %c16_40, %c0_41] : memref<1x80x4xbf16, #tpu.memory_space<vmem>>, vector<1x64x4xbf16>
    %42 = vector.shape_cast %41 : vector<1x64x4xbf16> to vector<64x4xbf16>
    %c7 = arith.constant 7 : index
    %c0_42 = arith.constant 0 : index
    %c0_43 = arith.constant 0 : index
    %43 = vector.load %arg4[%c7, %c0_42, %c0_43] : memref<9x4x4xbf16, #tpu.memory_space<vmem>>, vector<1x4x4xbf16>
    %44 = vector.shape_cast %43 : vector<1x4x4xbf16> to vector<4x4xbf16>
    %cst_44 = arith.constant dense<0.000000e+00> : vector<64x4xf32>
    %45 = tpu.matmul %42, %44, %cst_44 {dimension_numbers = #tpu.dot_dimension_numbers<[1], [0], [0], [1], [0, 0, 1, 1], [], []>} : vector<64x4xbf16>, vector<4x4xbf16>, vector<64x4xf32> -> vector<64x4xf32>
    %46 = arith.addf %40, %45 : vector<64x4xf32>
    %c0_45 = arith.constant 0 : index
    %c16_46 = arith.constant 16 : index
    %c0_47 = arith.constant 0 : index
    %47 = vector.load %arg3[%c0_45, %c16_46, %c0_47] : memref<1x80x4xbf16, #tpu.memory_space<vmem>>, vector<1x64x4xbf16>
    %48 = vector.shape_cast %47 : vector<1x64x4xbf16> to vector<64x4xbf16>
    %c8_48 = arith.constant 8 : index
    %c0_49 = arith.constant 0 : index
    %c0_50 = arith.constant 0 : index
    %49 = vector.load %arg4[%c8_48, %c0_49, %c0_50] : memref<9x4x4xbf16, #tpu.memory_space<vmem>>, vector<1x4x4xbf16>
    %50 = vector.shape_cast %49 : vector<1x4x4xbf16> to vector<4x4xbf16>
    %cst_51 = arith.constant dense<0.000000e+00> : vector<64x4xf32>
    %51 = tpu.matmul %48, %50, %cst_51 {dimension_numbers = #tpu.dot_dimension_numbers<[1], [0], [0], [1], [0, 0, 1, 1], [], []>} : vector<64x4xbf16>, vector<4x4xbf16>, vector<64x4xf32> -> vector<64x4xf32>
    %52 = arith.addf %46, %51 : vector<64x4xf32>
    %53 = arith.truncf %52 : vector<64x4xf32> to vector<64x4xbf16>
    %c0_52 = arith.constant 0 : index
    %c0_53 = arith.constant 0 : index
    %c0_54 = arith.constant 0 : index
    %54 = vector.load %arg5[%c0_52, %c0_53, %c0_54] : memref<1x64x4xbf16, #tpu.memory_space<vmem>>, vector<1x64x4xbf16>
    %55 = vector.shape_cast %54 : vector<1x64x4xbf16> to vector<64x4xbf16>
    %56 = vector.shape_cast %53 : vector<64x4xbf16> to vector<1x64x4xbf16>
    tpu.vector_store %arg5[%c0_52, %c0_53, %c0_54], %56 {strides = array<i32>} : memref<1x64x4xbf16, #tpu.memory_space<vmem>>, vector<1x64x4xbf16>,
    %cst_55 = arith.constant dense<0.000000e+00> : vector<4xf32>
    %57 = vector.multi_reduction <add>, %52, %cst_55 [0] : vector<64x4xf32> to vector<4xf32>
    %58 = vector.shape_cast %57 : vector<4xf32> to vector<1x4xf32>
    %59 = arith.mulf %52, %52 : vector<64x4xf32>
    %cst_56 = arith.constant dense<0.000000e+00> : vector<4xf32>
    %60 = vector.multi_reduction <add>, %59, %cst_56 [0] : vector<64x4xf32> to vector<4xf32>
    %61 = vector.shape_cast %60 : vector<4xf32> to vector<1x4xf32>
    %62 = tpu.iota {dimensions = array<i32: 0>} : vector<8x4xi32>
    %c0_i32 = arith.constant 0 : i32
    %63 = vector.broadcast %c0_i32 : i32 to vector<8x4xi32>
    %64 = arith.cmpi eq, %62, %63 : vector<8x4xi32>
    %cst_57 = arith.constant 0.000000e+00 : f32
    %65 = vector.broadcast %cst_57 : f32 to vector<8x4xf32>
    %66 = vector.shape_cast %58 : vector<1x4xf32> to vector<1x4xf32>
    %67 = vector.broadcast %66 : vector<1x4xf32> to vector<8x4xf32>
    %68 = arith.select %64, %67, %65 : vector<8x4xi1>, vector<8x4xf32>
    %c1_i32 = arith.constant 1 : i32
    %69 = vector.broadcast %c1_i32 : i32 to vector<8x4xi32>
    %70 = arith.cmpi eq, %62, %69 : vector<8x4xi32>
    %71 = vector.shape_cast %61 : vector<1x4xf32> to vector<1x4xf32>
    %72 = vector.broadcast %71 : vector<1x4xf32> to vector<8x4xf32>
    %73 = arith.select %70, %72, %68 : vector<8x4xi1>, vector<8x4xf32>
    %c0_58 = arith.constant 0 : index
    %c0_59 = arith.constant 0 : index
    %74 = vector.load %arg6[%c0_58, %c0_59] : memref<8x4xf32, #tpu.memory_space<vmem>>, vector<8x4xf32>
    tpu.vector_store %arg6[%c0_58, %c0_59], %73 {strides = array<i32>} : memref<8x4xf32, #tpu.memory_space<vmem>>, vector<8x4xf32>,
    return
  }
  func.func @transform_0(%arg0: i32) -> (i32, i32, i32) {
    %c0_i32 = arith.constant 0 : i32
    %c0_i32_0 = arith.constant 0 : i32
    %c0_i32_1 = arith.constant 0 : i32
    return %arg0, %c0_i32, %c0_i32_0 : i32, i32, i32
  }
  func.func @transform_1(%arg0: i32) -> (i32, i32, i32) {
    %c0_i32 = arith.constant 0 : i32
    %c0_i32_0 = arith.constant 0 : i32
    %c0_i32_1 = arith.constant 0 : i32
    return %arg0, %c0_i32, %c0_i32_0 : i32, i32, i32
  }
  func.func @transform_2(%arg0: i32) -> (i32, i32, i32) {
    %c0_i32 = arith.constant 0 : i32
    %c0_i32_0 = arith.constant 0 : i32
    %c0_i32_1 = arith.constant 0 : i32
    return %arg0, %c0_i32, %c0_i32_0 : i32, i32, i32
  }
  func.func @transform_3(%arg0: i32) -> (i32, i32, i32) {
    %c0_i32 = arith.constant 0 : i32
    %c0_i32_0 = arith.constant 0 : i32
    %c0_i32_1 = arith.constant 0 : i32
    %c0_i32_2 = arith.constant 0 : i32
    return %c0_i32, %c0_i32_0, %c0_i32_1 : i32, i32, i32
  }
  func.func @transform_4(%arg0: i32) -> (i32, i32, i32) {
    %c0_i32 = arith.constant 0 : i32
    %c0_i32_0 = arith.constant 0 : i32
    %c0_i32_1 = arith.constant 0 : i32
    return %arg0, %c0_i32, %c0_i32_0 : i32, i32, i32
  }
  func.func @transform_5(%arg0: i32) -> (i32, i32) {
    %c0_i32 = arith.constant 0 : i32
    %c0_i32_0 = arith.constant 0 : i32
    return %arg0, %c0_i32 : i32, i32
  }
}

</mosaic_0001>

<bundles_post_ra>
// kernel: resnet_block_forward.11
= control target key start
LH: loop header
LB: loop body
LE: loop exit
PB: predicated region body
PF: predicated region fallthrough
CT: control target
= control target key end

     0   :  { %s1057_s12 = smov 0   ;;  %s1382_s0 = inlined_call_operand.vmem [shape: f32[512,4], index: 0, kind: input, shape index: {}]   ;;  %s1383_s1 = inlined_call_operand.vmem [shape: bf16[4,4], index: 1, kind: input, shape index: {}]   ;;  %s1384_s2 = inlined_call_operand.vmem [shape: bf16[512,4], index: 2, kind: output, shape index: {0}]   ;;  %s1385_s3 = inlined_call_operand.vmem [shape: f32[16,4], index: 3, kind: output, shape index: {1}]  }
   0x1 LB: > { %s1063_s13 = sadd.s32 4294967295, %s1035_s12   ;;  %p878_p0 = scmp.ge.s32.totalorder %s1035_s12, 1  ;;  %s1035_s12 = sphi %s1057_s12, %s14_s12  }
   0x2   : > { %p141_p1 = scmp.lt.s32.totalorder %s1035_s12, 3 }
   0x4   : > { %p142_p2 = pnand %p878_p0, %p141_p1 }
   0x5   : > { %v234_v0 = vld [vmem:[%s1383_s1] sm:$0x3] (!%p142_p2)  ;;  %vm284_vm0 = vcmask (!%p142_p2), 1041408   ;;  %s879_s16 = sshll.u32 (!%p142_p2), %s1063_s13, 5  ;;  %vm235_vm1 = vcmask (!%p142_p2), 31744   ;;  %vm577_vm2 = vcmask (!%p142_p2), 27648  }
   0x6   : > { %145 = sbr.rel (%p142_p2) target bundleno = 314 (0x13a), region = 28  ;;  %1019 = vmatprep.subr.msk.bf16.mxu0 (!%p142_p2), %vm284_vm0, %v234_v0  ;;  %v286_v1 = vsel (!%p142_p2), %vm284_vm0, %v234_v0, 0  ;;  %p170_p3 = scmp.lt.s32.totalorder (!%p142_p2), %s879_s16, 63  ;;  %1020 = vmatprep.subr.msk.bf16.mxu1 (!%p142_p2), %vm284_vm0, %v234_v0 }
   0x7   : > { %984 = vmatpush3.bf16.msra.mxu0 (!%p142_p2), %v286_v1  ;;  %1018 = vmatpush3.bf16.msra.mxu1 (!%p142_p2), %v286_v1  ;;  %p181_p4 = scmp.lt.s32.totalorder (!%p142_p2), %s1063_s13, 1 }
   0xd   : > { %s1387_s16 = smov (!%p170_p3, %s879_s16), 63  ;;  %s1389_s13 = smov (!%p181_p4, %s1063_s13), 1 }
   0xe   : > { %s880_s17 = sshll.u32 %s1387_s16, 3  ;;  %s882_s21 = sshll.u32 %s1387_s16, 2 }
   0xf   : > { %s1077_s20 = scalar_lea.vmem %s1382_s0, %s880_s17  ;;  %s1131_s24 = scalar_lea.vmem %s1384_s2, %s882_s21 }
  0x10   : > { %v186_v2 = vld [vmem:[%s1077_s20] sm:$0xff]  ;;  %v187_v3 = vld [vmem:[%s1077_s20 + $0x8] sm:$0xff]  ;;  %v188_v4 = vld [vmem:[%s1077_s20 + $0x10] sm:$0xff]  ;;  %s883_s25 = sshll.u32 %s1389_s13, 3 }
  0x11   : > { %v218_v5 = vpack.c.bf16 %v187_v3, %v186_v2  ;;  %v189_v6 = vld [vmem:[%s1077_s20 + $0x18] sm:$0xff]  ;;  %v190_v7 = vld [vmem:[%s1077_s20 + $0x20] sm:$0xff]  ;;  %v191_v8 = vld [vmem:[%s1077_s20 + $0x28] sm:$0xff]  ;;  %s184_s28 = scalar_lea.vmem %s1385_s3, %s883_s25 }
  0x12   : > { %v219_v9 = vpack.c.bf16 %v189_v6, %v188_v4  ;;  %v220_v10 = vpack.c.bf16 %v191_v8, %v190_v7  ;;  %v192_v11 = vld [vmem:[%s1077_s20 + $0x30] sm:$0xff]  ;;  %v193_v12 = vld [vmem:[%s1077_s20 + $0x38] sm:$0xff]  ;;  %v194_v13 = vld [vmem:[%s1077_s20 + $0x40] sm:$0xff] }
  0x13   : > { %985 = vmatprep.mubr.msk.bf16.mxu0 %vm235_vm1, %v218_v5  ;;  %v195_v14 = vld [vmem:[%s1077_s20 + $0x48] sm:$0xff]  ;;  %v202_v15 = vld [vmem:[%s1077_s20 + $0x80] sm:$0xff]  ;;  %v204_v18 = vld [vmem:[%s1077_s20 + $0x90] sm:$0xff]  ;;  %v221_v23 = vpack.c.bf16 %v193_v12, %v192_v11 }
  0x14   : > { %986 = vmatmul.mubr.msk.bf16.vlgmr.msra.gmra.mrb[0].mxu0 %vm235_vm1, %v219_v9  ;;  %v203_v16 = vld [vmem:[%s1077_s20 + $0x88] sm:$0xff]  ;;  %v205_v19 = vld [vmem:[%s1077_s20 + $0x98] sm:$0xff]  ;;  %v206_v20 = vld [vmem:[%s1077_s20 + $0xa0] sm:$0xff]  ;;  %v222_v25 = vpack.c.bf16 %v195_v14, %v194_v13 }
  0x15   : > { %989 = vmatprep.mubr.msk.bf16.mxu0 %vm235_vm1, %v220_v10  ;;  %v226_v17 = vpack.c.bf16 %v203_v16, %v202_v15  ;;  %v227_v21 = vpack.c.bf16 %v205_v19, %v204_v18  ;;  %v207_v22 = vld [vmem:[%s1077_s20 + $0xa8] sm:$0xff]  ;;  %v208_v26 = vld [vmem:[%s1077_s20 + $0xb0] sm:$0xff]  ;;  %v209_v27 = vld [vmem:[%s1077_s20 + $0xb8] sm:$0xff] }
  0x16   : > { %v228_v24 = vpack.c.bf16 %v207_v22, %v206_v20  ;;  %v210_v28 = vld [vmem:[%s1077_s20 + $0xc0] sm:$0xff]  ;;  %v211_v29 = vld [vmem:[%s1077_s20 + $0xc8] sm:$0xff]  ;;  %v196_v30 = vld [vmem:[%s1077_s20 + $0x50] sm:$0xff]  ;;  %v229_v32 = vpack.c.bf16 %v209_v27, %v208_v26 }
  0x17   : > { %1001 = vmatprep.mubr.msk.bf16.mxu1 %vm235_vm1, %v226_v17  ;;  %v197_v31 = vld [vmem:[%s1077_s20 + $0x58] sm:$0xff]  ;;  %v198_v33 = vld [vmem:[%s1077_s20 + $0x60] sm:$0xff]  ;;  %v199_v34 = vld [vmem:[%s1077_s20 + $0x68] sm:$0xff]  ;;  %v230_v35 = vpack.c.bf16 %v211_v29, %v210_v28 }
  0x18   : > { %1002 = vmatmul.mubr.msk.bf16.vlgmr.msra.gmra.mrb[0].mxu1 %vm235_vm1, %v227_v21  ;;  %v223_v36 = vpack.c.bf16 %v197_v31, %v196_v30  ;;  %v224_v37 = vpack.c.bf16 %v199_v34, %v198_v33  ;;  %v212_v38 = vld [vmem:[%s1077_s20 + $0xd0] sm:$0xff]  ;;  %v213_v39 = vld [vmem:[%s1077_s20 + $0xd8] sm:$0xff]  ;;  %v214_v40 = vld [vmem:[%s1077_s20 + $0xe0] sm:$0xff] }
  0x19   : > { %1005 = vmatprep.mubr.msk.bf16.mxu1 %vm235_vm1, %v228_v24  ;;  %v215_v41 = vld [vmem:[%s1077_s20 + $0xe8] sm:$0xff]  ;;  %v200_v42 = vld [vmem:[%s1077_s20 + $0x70] sm:$0xff]  ;;  %v201_v43 = vld [vmem:[%s1077_s20 + $0x78] sm:$0xff]  ;;  %v231_v44 = vpack.c.bf16 %v213_v39, %v212_v38 }
  0x1a   : > { %v232_v45 = vpack.c.bf16 %v215_v41, %v214_v40  ;;  %v225_v46 = vpack.c.bf16 %v201_v43, %v200_v42  ;;  %v216_v47 = vld [vmem:[%s1077_s20 + $0xf0] sm:$0xff]  ;;  %v217_v48 = vld [vmem:[%s1077_s20 + $0xf8] sm:$0xff] }
  0x1b   : > { %v233_v49 = vpack.c.bf16 %v217_v48, %v216_v47 }
  0x1c   : > { %990 = vmatmul.mubr.msk.bf16.gmra.mrb[4].mxu0 %vm235_vm1, %v221_v23 }
  0x1d   : > { %993 = vmatprep.mubr.msk.bf16.mxu0 %vm235_vm1, %v222_v25 }
  0x20   : > { %1006 = vmatmul.mubr.msk.bf16.gmra.mrb[4].mxu1 %vm235_vm1, %v229_v32 }
  0x21   : > { %1009 = vmatprep.mubr.msk.bf16.mxu1 %vm235_vm1, %v230_v35 }
  0x24   : > { %994 = vmatmul.mubr.msk.bf16.gmra.mrb[8].mxu0 %vm235_vm1, %v223_v36 }
  0x25   : > { %997 = vmatprep.mubr.msk.bf16.mxu0 %vm235_vm1, %v224_v37 }
  0x28   : > { %1010 = vmatmul.mubr.msk.bf16.gmra.mrb[8].mxu1 %vm235_vm1, %v231_v44 }
  0x29   : > { %1013 = vmatprep.mubr.msk.bf16.mxu1 %vm235_vm1, %v232_v45 }
  0x2c   : > { %998 = vmatmul.mubr.msk.bf16.gmra.mrb[12].mxu0 %vm235_vm1, %v225_v46 }
  0x30   : > { %1014 = vmatmul.mubr.msk.bf16.gmra.mrb[12].mxu1 %vm235_vm1, %v233_v49 }
  0xe7   : > { %v987_v50 = vpop.f32.mrb[0].mxu0 }
  0xe8   : > { %v936_v51 = vpack.c.bf16 %v987_v50, %v987_v50  ;;  %v322_v52 = vpop.f32.mrb[1].mxu0  ;;  %v681_v56 = vmul.f32 %v987_v50, %v987_v50  ;;  %v613_v2 = vsel %vm235_vm1, %v987_v50, 0.0 }
  0xe9   : > { %v934_v53 = vpack.c.bf16 %v322_v52, %v322_v52  ;;  %v679_v54 = vmul.f32 %v322_v52, %v322_v52  ;;  %v988_v55 = vpop.f32.mrb[2].mxu0  ;;  %v610_v59 = vsel %vm235_vm1, %v322_v52, 0.0 }
  0xea   : > { %580 = vst.msk [vmem:[%s1131_s24 + $0x8] sm:$0xf] %vm577_vm2, %v936_v51  ;;  %v937_v57 = vpack.c.bf16 %v988_v55, %v988_v55  ;;  %v325_v58 = vpop.f32.mrb[3].mxu0  ;;  %v682_v63 = vmul.f32 %v988_v55, %v988_v55  ;;  %v714_v11 = vsel %vm235_vm1, %v681_v56, 0.0  ;;  %v615_v15 = vsel %vm235_vm1, %v988_v55, 0.0 }
  0xeb   : > { %578 = vst.msk [vmem:[%s1131_s24] sm:$0xf] %vm577_vm2, %v934_v53  ;;  %v935_v60 = vpack.c.bf16 %v325_v58, %v325_v58  ;;  %v611_v61 = vsel %vm235_vm1, %v325_v58, 0.0  ;;  %v680_v62 = vmul.f32 %v325_v58, %v325_v58  ;;  %v1141_v1 = vpop.f32.mrb[0].mxu1  ;;  %v711_v3 = vsel %vm235_vm1, %v679_v54, 0.0 }
  0xec   : > { %581 = vst.msk [vmem:[%s1131_s24 + $0xc] sm:$0xf] %vm577_vm2, %v937_v57  ;;  %v612_v0 = vadd.f32 %v611_v61, %v610_v59  ;;  %v952_v5 = vpack.c.bf16 %v1141_v1, %v1141_v1  ;;  %v1150_v6 = vpop.f32.mrb[1].mxu1  ;;  %v716_v16 = vsel %vm235_vm1, %v682_v63, 0.0 }
  0xed   : > { %579 = vst.msk [vmem:[%s1131_s24 + $0x4] sm:$0xf] %vm577_vm2, %v935_v60  ;;  %v712_v4 = vsel %vm235_vm1, %v680_v62, 0.0  ;;  %v950_v9 = vpack.c.bf16 %v1150_v6, %v1150_v6  ;;  %v1154_v10 = vpop.f32.mrb[2].mxu1 }
  0xee   : > { %v614_v7 = vadd.f32 %v613_v2, %v612_v0  ;;  %v713_v8 = vadd.f32 %v712_v4, %v711_v3  ;;  %596 = vst.msk [vmem:[%s1131_s24 + $0x48] sm:$0xf] %vm577_vm2, %v952_v5  ;;  %v953_v13 = vpack.c.bf16 %v1154_v10, %v1154_v10  ;;  %v1161_v14 = vpop.f32.mrb[3].mxu1 }
  0xef   : > { %v991_v12 = vpop.f32.mrb[4].mxu0  ;;  %594 = vst.msk [vmem:[%s1131_s24 + $0x40] sm:$0xf] %vm577_vm2, %v950_v9  ;;  %v951_v37 = vpack.c.bf16 %v1161_v14, %v1161_v14 }
  0xf0   : > { %v715_v17 = vadd.f32 %v714_v11, %v713_v8  ;;  %v940_v18 = vpack.c.bf16 %v991_v12, %v991_v12  ;;  %v338_v19 = vpop.f32.mrb[5].mxu0  ;;  %v616_v21 = vadd.f32 %v615_v15, %v614_v7  ;;  %597 = vst.msk [vmem:[%s1131_s24 + $0x4c] sm:$0xf] %vm577_vm2, %v953_v13  ;;  %v685_v31 = vmul.f32 %v991_v12, %v991_v12 }
  0xf1   : > { %v938_v20 = vpack.c.bf16 %v338_v19, %v338_v19  ;;  %v617_v22 = vsel %vm235_vm1, %v338_v19, 0.0  ;;  %v683_v23 = vmul.f32 %v338_v19, %v338_v19  ;;  %v992_v24 = vpop.f32.mrb[6].mxu0  ;;  %v621_v39 = vsel %vm235_vm1, %v991_v12, 0.0  ;;  %595 = vst.msk [vmem:[%s1131_s24 + $0x44] sm:$0xf] %vm577_vm2, %v951_v37 }
  0xf2   : > { %584 = vst.msk [vmem:[%s1131_s24 + $0x18] sm:$0xf] %vm577_vm2, %v940_v18  ;;  %v717_v25 = vadd.f32 %v716_v16, %v715_v17  ;;  %v941_v26 = vpack.c.bf16 %v992_v24, %v992_v24  ;;  %v341_v27 = vpop.f32.mrb[7].mxu0  ;;  %v618_v28 = vadd.f32 %v617_v22, %v616_v21  ;;  %v686_v40 = vmul.f32 %v992_v24, %v992_v24 }
  0xf3   : > { %582 = vst.msk [vmem:[%s1131_s24 + $0x10] sm:$0xf] %vm577_vm2, %v938_v20  ;;  %v718_v29 = vsel %vm235_vm1, %v683_v23, 0.0  ;;  %v939_v30 = vpack.c.bf16 %v341_v27, %v341_v27  ;;  %v619_v33 = vsel %vm235_vm1, %v341_v27, 0.0  ;;  %v684_v34 = vmul.f32 %v341_v27, %v341_v27  ;;  %v1178_v35 = vpop.f32.mrb[4].mxu1 }
  0xf4   : > { %v719_v32 = vadd.f32 %v718_v29, %v717_v25  ;;  %585 = vst.msk [vmem:[%s1131_s24 + $0x1c] sm:$0xf] %vm577_vm2, %v941_v26  ;;  %v620_v36 = vadd.f32 %v619_v33, %v618_v28  ;;  %v1184_v38 = vpop.f32.mrb[5].mxu1  ;;  %v956_v42 = vpack.c.bf16 %v1178_v35, %v1178_v35  ;;  %v722_v48 = vsel %vm235_vm1, %v685_v31, 0.0 }
  0xf5   : > { %583 = vst.msk [vmem:[%s1131_s24 + $0x14] sm:$0xf] %vm577_vm2, %v939_v30  ;;  %v720_v41 = vsel %vm235_vm1, %v684_v34, 0.0  ;;  %v1190_v43 = vpop.f32.mrb[6].mxu1  ;;  %v623_v49 = vsel %vm235_vm1, %v992_v24, 0.0  ;;  %v724_v57 = vsel %vm235_vm1, %v686_v40, 0.0  ;;  %v954_v9 = vpack.c.bf16 %v1184_v38, %v1184_v38 }
  0xf6   : > { %v622_v44 = vadd.f32 %v621_v39, %v620_v36  ;;  %v721_v45 = vadd.f32 %v720_v41, %v719_v32  ;;  %v1194_v47 = vpop.f32.mrb[7].mxu1  ;;  %600 = vst.msk [vmem:[%s1131_s24 + $0x58] sm:$0xf] %vm577_vm2, %v956_v42  ;;  %v957_v20 = vpack.c.bf16 %v1190_v43, %v1190_v43 }
  0xf7   : > { %v995_v46 = vpop.f32.mrb[8].mxu0  ;;  %598 = vst.msk [vmem:[%s1131_s24 + $0x50] sm:$0xf] %vm577_vm2, %v954_v9 }
  0xf8   : > { %v944_v50 = vpack.c.bf16 %v995_v46, %v995_v46  ;;  %v354_v51 = vpop.f32.mrb[9].mxu0  ;;  %v723_v52 = vadd.f32 %v722_v48, %v721_v45  ;;  %v624_v54 = vadd.f32 %v623_v49, %v622_v44  ;;  %v689_v0 = vmul.f32 %v995_v46, %v995_v46  ;;  %601 = vst.msk [vmem:[%s1131_s24 + $0x5c] sm:$0xf] %vm577_vm2, %v957_v20 }
  0xf9   : > { %v942_v53 = vpack.c.bf16 %v354_v51, %v354_v51  ;;  %v625_v55 = vsel %vm235_vm1, %v354_v51, 0.0  ;;  %v996_v56 = vpop.f32.mrb[10].mxu0  ;;  %v687_v58 = vmul.f32 %v354_v51, %v354_v51  ;;  %v629_v12 = vsel %vm235_vm1, %v995_v46, 0.0 }
  0xfa   : > { %588 = vst.msk [vmem:[%s1131_s24 + $0x28] sm:$0xf] %vm577_vm2, %v944_v50  ;;  %v945_v59 = vpack.c.bf16 %v996_v56, %v996_v56  ;;  %v357_v60 = vpop.f32.mrb[11].mxu0  ;;  %v626_v61 = vadd.f32 %v625_v55, %v624_v54  ;;  %v725_v62 = vadd.f32 %v724_v57, %v723_v52  ;;  %v690_v13 = vmul.f32 %v996_v56, %v996_v56 }
  0xfb   : > { %586 = vst.msk [vmem:[%s1131_s24 + $0x20] sm:$0xf] %vm577_vm2, %v942_v53  ;;  %v943_v63 = vpack.c.bf16 %v357_v60, %v357_v60  ;;  %v726_v2 = vsel %vm235_vm1, %v687_v58, 0.0  ;;  %v627_v3 = vsel %vm235_vm1, %v357_v60, 0.0  ;;  %v688_v4 = vmul.f32 %v357_v60, %v357_v60  ;;  %v1210_v5 = vpop.f32.mrb[8].mxu1 }
  0xfc   : > { %589 = vst.msk [vmem:[%s1131_s24 + $0x2c] sm:$0xf] %vm577_vm2, %v945_v59  ;;  %v727_v7 = vadd.f32 %v726_v2, %v725_v62  ;;  %v628_v8 = vadd.f32 %v627_v3, %v626_v61  ;;  %v1216_v11 = vpop.f32.mrb[9].mxu1  ;;  %v730_v22 = vsel %vm235_vm1, %v689_v0, 0.0  ;;  %v631_v23 = vsel %vm235_vm1, %v996_v56, 0.0 }
  0xfd   : > { %587 = vst.msk [vmem:[%s1131_s24 + $0x24] sm:$0xf] %vm577_vm2, %v943_v63  ;;  %v728_v15 = vsel %vm235_vm1, %v688_v4, 0.0  ;;  %v1220_v16 = vpop.f32.mrb[10].mxu1  ;;  %v732_v31 = vsel %vm235_vm1, %v690_v13, 0.0  ;;  %v955_v49 = vpack.c.bf16 %v1194_v47, %v1194_v47  ;;  %v695_v54 = vmul.f32 %v1150_v6, %v1150_v6 }
  0xfe   : > { %v630_v17 = vadd.f32 %v629_v12, %v628_v8  ;;  %v729_v18 = vadd.f32 %v728_v15, %v727_v7  ;;  %v1226_v21 = vpop.f32.mrb[11].mxu1  ;;  %v960_v58 = vpack.c.bf16 %v1210_v5, %v1210_v5  ;;  %v641_v62 = vsel %vm235_vm1, %v1150_v6, 0.0 }
  0xff   : > { %v999_v19 = vpop.f32.mrb[12].mxu0  ;;  %599 = vst.msk [vmem:[%s1131_s24 + $0x54] sm:$0xf] %vm577_vm2, %v955_v49  ;;  %v958_v63 = vpack.c.bf16 %v1216_v11, %v1216_v11  ;;  %v961_v3 = vpack.c.bf16 %v1220_v16, %v1220_v16  ;;  %v742_v7 = vsel %vm235_vm1, %v695_v54, 0.0  ;;  %v696_v8 = vmul.f32 %v1161_v14, %v1161_v14 }
 0x100   : > { %v948_v24 = vpack.c.bf16 %v999_v19, %v999_v19  ;;  %v370_v25 = vpop.f32.mrb[13].mxu0  ;;  %v731_v26 = vadd.f32 %v730_v22, %v729_v18  ;;  %v632_v28 = vadd.f32 %v631_v23, %v630_v17  ;;  %v693_v40 = vmul.f32 %v999_v19, %v999_v19  ;;  %604 = vst.msk [vmem:[%s1131_s24 + $0x68] sm:$0xf] %vm577_vm2, %v960_v58 }
 0x101   : > { %v946_v27 = vpack.c.bf16 %v370_v25, %v370_v25  ;;  %v633_v29 = vsel %vm235_vm1, %v370_v25, 0.0  ;;  %v1000_v30 = vpop.f32.mrb[14].mxu0  ;;  %v691_v32 = vmul.f32 %v370_v25, %v370_v25  ;;  %v637_v51 = vsel %vm235_vm1, %v999_v19, 0.0  ;;  %602 = vst.msk [vmem:[%s1131_s24 + $0x60] sm:$0xf] %vm577_vm2, %v958_v63 }
 0x102   : > { %592 = vst.msk [vmem:[%s1131_s24 + $0x38] sm:$0xf] %vm577_vm2, %v948_v24  ;;  %v949_v33 = vpack.c.bf16 %v1000_v30, %v1000_v30  ;;  %v373_v34 = vpop.f32.mrb[15].mxu0  ;;  %v634_v36 = vadd.f32 %v633_v29, %v632_v28  ;;  %v733_v37 = vadd.f32 %v732_v31, %v731_v26  ;;  %v694_v52 = vmul.f32 %v1000_v30, %v1000_v30 }
 0x103   : > { %590 = vst.msk [vmem:[%s1131_s24 + $0x30] sm:$0xf] %vm577_vm2, %v946_v27  ;;  %v947_v39 = vpack.c.bf16 %v373_v34, %v373_v34  ;;  %v734_v41 = vsel %vm235_vm1, %v691_v32, 0.0  ;;  %v635_v42 = vsel %vm235_vm1, %v373_v34, 0.0  ;;  %v692_v44 = vmul.f32 %v373_v34, %v373_v34  ;;  %v1242_v45 = vpop.f32.mrb[12].mxu1 }
 0x104   : > { %593 = vst.msk [vmem:[%s1131_s24 + $0x3c] sm:$0xf] %vm577_vm2, %v949_v33  ;;  %v735_v46 = vadd.f32 %v734_v41, %v733_v37  ;;  %v636_v48 = vadd.f32 %v635_v42, %v634_v36  ;;  %v1248_v50 = vpop.f32.mrb[13].mxu1  ;;  %v738_v60 = vsel %vm235_vm1, %v693_v40, 0.0  ;;  %v639_v61 = vsel %vm235_vm1, %v1000_v30, 0.0 }
 0x105   : > { %591 = vst.msk [vmem:[%s1131_s24 + $0x34] sm:$0xf] %vm577_vm2, %v947_v39  ;;  %v736_v53 = vsel %vm235_vm1, %v692_v44, 0.0  ;;  %v1254_v55 = vpop.f32.mrb[14].mxu1  ;;  %v740_v4 = vsel %vm235_vm1, %v694_v52, 0.0  ;;  %v959_v6 = vpack.c.bf16 %v1226_v21, %v1226_v21  ;;  %v697_v13 = vmul.f32 %v1141_v1, %v1141_v1 }
 0x106   : > { %v638_v56 = vadd.f32 %v637_v51, %v636_v48  ;;  %v737_v57 = vadd.f32 %v736_v53, %v735_v46  ;;  %v1260_v59 = vpop.f32.mrb[15].mxu1  ;;  %605 = vst.msk [vmem:[%s1131_s24 + $0x6c] sm:$0xf] %vm577_vm2, %v961_v3  ;;  %v643_v15 = vsel %vm235_vm1, %v1161_v14, 0.0  ;;  %v964_v17 = vpack.c.bf16 %v1242_v45, %v1242_v45 }
 0x107   : > { %603 = vst.msk [vmem:[%s1131_s24 + $0x64] sm:$0xf] %vm577_vm2, %v959_v6  ;;  %v645_v18 = vsel %vm235_vm1, %v1141_v1, 0.0  ;;  %v962_v22 = vpack.c.bf16 %v1248_v50, %v1248_v50  ;;  %v698_v23 = vmul.f32 %v1154_v10, %v1154_v10  ;;  %v744_v24 = vsel %vm235_vm1, %v696_v8, 0.0 }
 0x108   : > { %v739_v0 = vadd.f32 %v738_v60, %v737_v57  ;;  %v640_v2 = vadd.f32 %v639_v61, %v638_v56  ;;  %v699_v14 = vmul.f32 %v1184_v38, %v1184_v38  ;;  %608 = vst.msk [vmem:[%s1131_s24 + $0x78] sm:$0xf] %vm577_vm2, %v964_v17  ;;  %v965_v25 = vpack.c.bf16 %v1254_v55, %v1254_v55 }
 0x109   : > { %606 = vst.msk [vmem:[%s1131_s24 + $0x70] sm:$0xf] %vm577_vm2, %v962_v22  ;;  %v746_v27 = vsel %vm235_vm1, %v697_v13, 0.0  ;;  %v647_v28 = vsel %vm235_vm1, %v1154_v10, 0.0  ;;  %v649_v29 = vsel %vm235_vm1, %v1184_v38, 0.0  ;;  %v963_v30 = vpack.c.bf16 %v1260_v59, %v1260_v59 }
 0x10a   : > { %v642_v9 = vadd.f32 %v641_v62, %v640_v2  ;;  %v741_v12 = vadd.f32 %v740_v4, %v739_v0  ;;  %609 = vst.msk [vmem:[%s1131_s24 + $0x7c] sm:$0xf] %vm577_vm2, %v965_v25  ;;  %v748_v33 = vsel %vm235_vm1, %v698_v23, 0.0  ;;  %v750_v34 = vsel %vm235_vm1, %v699_v14, 0.0 }
 0x10b   : > { %v700_v36 = vmul.f32 %v1194_v47, %v1194_v47  ;;  %607 = vst.msk [vmem:[%s1131_s24 + $0x74] sm:$0xf] %vm577_vm2, %v963_v30  ;;  %v701_v38 = vmul.f32 %v1178_v35, %v1178_v35  ;;  %v651_v39 = vsel %vm235_vm1, %v1194_v47, 0.0  ;;  %v653_v42 = vsel %vm235_vm1, %v1178_v35, 0.0 }
 0x10c   : > { %v743_v19 = vadd.f32 %v742_v7, %v741_v12  ;;  %v644_v20 = vadd.f32 %v643_v15, %v642_v9  ;;  %v702_v44 = vmul.f32 %v1190_v43, %v1190_v43  ;;  %v703_v48 = vmul.f32 %v1216_v11, %v1216_v11 }
 0x10d   : > { %v752_v46 = vsel %vm235_vm1, %v700_v36, 0.0  ;;  %v754_v52 = vsel %vm235_vm1, %v701_v38, 0.0  ;;  %v655_v47 = vsel %vm235_vm1, %v1190_v43, 0.0  ;;  %v657_v53 = vsel %vm235_vm1, %v1216_v11, 0.0 }
 0x10e   : > { %v646_v1 = vadd.f32 %v645_v18, %v644_v20  ;;  %v745_v26 = vadd.f32 %v744_v24, %v743_v19  ;;  %v756_v56 = vsel %vm235_vm1, %v702_v44, 0.0  ;;  %v758_v57 = vsel %vm235_vm1, %v703_v48, 0.0 }
 0x10f   : > { %v704_v58 = vmul.f32 %v1226_v21, %v1226_v21  ;;  %v705_v62 = vmul.f32 %v1210_v5, %v1210_v5  ;;  %v659_v43 = vsel %vm235_vm1, %v1226_v21, 0.0  ;;  %v661_v11 = vsel %vm235_vm1, %v1210_v5, 0.0 }
 0x110   : > { %v747_v31 = vadd.f32 %v746_v27, %v745_v26  ;;  %v648_v32 = vadd.f32 %v647_v28, %v646_v1  ;;  %v706_v2 = vmul.f32 %v1220_v16, %v1220_v16  ;;  %v707_v4 = vmul.f32 %v1248_v50, %v1248_v50 }
 0x111   : > { %v760_v3 = vsel %vm235_vm1, %v704_v58, 0.0  ;;  %v762_v6 = vsel %vm235_vm1, %v705_v62, 0.0  ;;  %v663_v21 = vsel %vm235_vm1, %v1220_v16, 0.0  ;;  %v665_v9 = vsel %vm235_vm1, %v1248_v50, 0.0 }
 0x112   : > { %v650_v10 = vadd.f32 %v649_v29, %v648_v32  ;;  %v749_v37 = vadd.f32 %v748_v33, %v747_v31  ;;  %v764_v13 = vsel %vm235_vm1, %v706_v2, 0.0  ;;  %v766_v15 = vsel %vm235_vm1, %v707_v4, 0.0 }
 0x113   : > { %v708_v17 = vmul.f32 %v1260_v59, %v1260_v59  ;;  %v709_v20 = vmul.f32 %v1242_v45, %v1242_v45  ;;  %v667_v16 = vsel %vm235_vm1, %v1260_v59, 0.0  ;;  %v669_v23 = vsel %vm235_vm1, %v1242_v45, 0.0 }
 0x114   : > { %v751_v40 = vadd.f32 %v750_v34, %v749_v37  ;;  %v652_v41 = vadd.f32 %v651_v39, %v650_v10  ;;  %v710_v24 = vmul.f32 %v1254_v55, %v1254_v55  ;;  %v671_v27 = vsel %vm235_vm1, %v1254_v55, 0.0 }
 0x115   : > { %v768_v14 = vsel %vm235_vm1, %v708_v17, 0.0  ;;  %v770_v26 = vsel %vm235_vm1, %v709_v20, 0.0  ;;  %v780_v45 = vlaneseq }
 0x116   : > { %v654_v49 = vadd.f32 %v653_v42, %v652_v41  ;;  %v753_v51 = vadd.f32 %v752_v46, %v751_v40  ;;  %v772_v29 = vsel %vm235_vm1, %v710_v24, 0.0 }
 0x117   : > { %v781_v10 = vshrl.u32 %v780_v45, 7 }
 0x118   : > { %v755_v54 = vadd.f32 %v754_v52, %v753_v51  ;;  %v656_v35 = vadd.f32 %v655_v47, %v654_v49 }
 0x119   : > { %vm782_vm3 = vcmp.eq.s32.totalorder %v781_v10, 0  ;;  %vm784_vm4 = vcmp.eq.s32.totalorder %v781_v10, 1 }
 0x11a   : > { %v658_v60 = vadd.f32 %v657_v53, %v656_v35  ;;  %v757_v61 = vadd.f32 %v756_v56, %v755_v54 }
 0x11c   : > { %v759_v63 = vadd.f32 %v758_v57, %v757_v61  ;;  %v660_v0 = vadd.f32 %v659_v43, %v658_v60 }
 0x11e   : > { %v662_v7 = vadd.f32 %v661_v11, %v660_v0  ;;  %v761_v8 = vadd.f32 %v760_v3, %v759_v63 }
 0x120   : > { %v763_v12 = vadd.f32 %v762_v6, %v761_v8  ;;  %v664_v5 = vadd.f32 %v663_v21, %v662_v7 }
 0x122   : > { %v666_v18 = vadd.f32 %v665_v9, %v664_v5  ;;  %v765_v19 = vadd.f32 %v764_v13, %v763_v12 }
 0x124   : > { %v767_v22 = vadd.f32 %v766_v15, %v765_v19  ;;  %v668_v50 = vadd.f32 %v667_v16, %v666_v18 }
 0x126   : > { %v670_v25 = vadd.f32 %v669_v23, %v668_v50  ;;  %v769_v1 = vadd.f32 %v768_v14, %v767_v22 }
 0x128   : > { %v672_v28 = vadd.f32 %v671_v27, %v670_v25  ;;  %v771_v59 = vadd.f32 %v770_v26, %v769_v1 }
 0x12a   : > { %v673_v30 = vrot.slane %v672_v28, 4  ;;  %v773_v31 = vadd.f32 %v772_v29, %v771_v59 }
 0x12c   : > { %v674_v32 = vadd.f32 %v673_v30, %v672_v28  ;;  %v774_v33 = vrot.slane %v773_v31, 4 }
 0x12e   : > { %v675_v34 = vrot.slane %v674_v32, 2  ;;  %v775_v36 = vadd.f32 %v774_v33, %v773_v31 }
 0x130   : > { %v676_v37 = vadd.f32 %v675_v34, %v674_v32  ;;  %v776_v38 = vrot.slane %v775_v36, 2 }
 0x132   : > { %v677_v39 = vrot.slane %v676_v37, 1  ;;  %v777_v40 = vadd.f32 %v776_v38, %v775_v36 }
 0x134   : > { %v678_v55 = vadd.f32 %v677_v39, %v676_v37  ;;  %v778_v41 = vrot.slane %v777_v40, 1 }
 0x136   : > { %v779_v42 = vadd.f32 %v778_v41, %v777_v40  ;;  %v783_v44 = vsel %vm782_vm3, %v678_v55, 0.0 }
 0x138   : > { %v785_v46 = vsel %vm784_vm4, %v779_v42, %v783_v44 }
 0x139   : > { %786 = vst.msk [vmem:[%s184_s28] sm:$0xff] %vm235_vm1, %v785_v46 }
 0x13a PF: > { %s14_s12 = sadd.s32 1, %s1035_s12  }
 0x13b   : > { %p11_p5 = scmp.ge.s32.totalorder %s14_s12, 4  }
 0x13d   :  { %13 = sbr.rel (!%p11_p5) target bundleno = 1 (0x1), region = 70 }

// kernel: resnet_block_forward.12
= control target key start
LH: loop header
LB: loop body
LE: loop exit
PB: predicated region body
PF: predicated region fallthrough
CT: control target
= control target key end

     0   :  { %s757_s12 = smov 0   ;;  %s939_s0 = inlined_call_operand.vmem [shape: bf16[512,4], index: 0, kind: input, shape index: {}]   ;;  %s940_s1 = inlined_call_operand.vmem [shape: f32[1,4], index: 1, kind: input, shape index: {}]   ;;  %s941_s2 = inlined_call_operand.vmem [shape: f32[1,4], index: 2, kind: input, shape index: {}]   ;;  %s942_s3 = inlined_call_operand.vmem [shape: bf16[512,4], index: 3, kind: output, shape index: {}]  }
   0x1 LB: > { %s565_s13 = sadd.s32 4294967295, %s735_s12   ;;  %p569_p0 = scmp.ge.s32.totalorder %s735_s12, 1  ;;  %s735_s12 = sphi %s757_s12, %s13_s12  }
   0x2   : > { %p138_p1 = scmp.lt.s32.totalorder %s735_s12, 3 }
   0x4   : > { %p139_p2 = pnand %p569_p0, %p138_p1 }
   0x5   : > { %s570_s14 = sshll.u32 (!%p139_p2), %s565_s13, 5  ;;  %v778_v0 = vld [vmem:[%s940_s1] ss:$0 sm:$0xff] (!%p139_p2)  ;;  %vm476_vm0 = vcmask (!%p139_p2), 27648  }
   0x6   : > { %142 = sbr.rel (%p139_p2) target bundleno = 61 (0x3d), region = 32  ;;  %p163_p3 = scmp.lt.s32.totalorder (!%p139_p2), %s570_s14, 63  ;;  %v787_v9 = vld [vmem:[%s941_s2] ss:$0 sm:$0xff] (!%p139_p2) }
   0xd   : > { %s944_s14 = smov (!%p163_p3, %s570_s14), 63 }
   0xe   : > { %s571_s15 = sshll.u32 %s944_s14, 2 }
   0xf   : > { %s773_s18 = scalar_lea.vmem %s939_s0, %s571_s15  ;;  %s810_s25 = scalar_lea.vmem %s942_s3, %s571_s15 }
  0x10   : > { %v643_v1 = vld [vmem:[%s773_s18] sm:$0xff]   ;;  %v706_v2 = vld [vmem:[%s773_s18 + $0x8] sm:$0xff]   ;;  %v707_v3 = vld [vmem:[%s773_s18 + $0x10] sm:$0xff]  }
  0x11   : > { %v644_v4 = vunpack.c.l.bf16 %v643_v1  ;;  %v645_v5 = vunpack.c.h.bf16 %v643_v1  ;;  %v648_v6 = vunpack.c.l.bf16 %v706_v2  ;;  %v649_v7 = vunpack.c.h.bf16 %v706_v2  ;;  %v708_v8 = vld [vmem:[%s773_s18 + $0x18] sm:$0xff]   ;;  %v709_v38 = vld [vmem:[%s773_s18 + $0x20] sm:$0xff]   ;;  %v710_v39 = vld [vmem:[%s773_s18 + $0x28] sm:$0xff]  }
  0x12   : > { %v652_v10 = vunpack.c.l.bf16 %v707_v3  ;;  %v653_v11 = vunpack.c.h.bf16 %v707_v3  ;;  %v656_v12 = vunpack.c.l.bf16 %v708_v8  ;;  %v657_v13 = vunpack.c.h.bf16 %v708_v8  ;;  %v711_v44 = vld [vmem:[%s773_s18 + $0x30] sm:$0xff]   ;;  %v712_v45 = vld [vmem:[%s773_s18 + $0x38] sm:$0xff]  }
  0x13   : > { %v245_v14 = vmul.f32 %v644_v4, %v778_v0  ;;  %v246_v15 = vmul.f32 %v645_v5, %v778_v0  ;;  %v247_v16 = vmul.f32 %v648_v6, %v778_v0  ;;  %v248_v17 = vmul.f32 %v649_v7, %v778_v0 }
  0x14   : > { %v249_v18 = vmul.f32 %v652_v10, %v778_v0  ;;  %v250_v19 = vmul.f32 %v653_v11, %v778_v0  ;;  %v251_v20 = vmul.f32 %v656_v12, %v778_v0  ;;  %v252_v21 = vmul.f32 %v657_v13, %v778_v0 }
  0x15   : > { %v284_v22 = vadd.f32 %v787_v9, %v245_v14  ;;  %v285_v23 = vadd.f32 %v787_v9, %v246_v15  ;;  %v286_v24 = vadd.f32 %v787_v9, %v247_v16  ;;  %v287_v25 = vadd.f32 %v787_v9, %v248_v17 }
  0x16   : > { %v288_v26 = vadd.f32 %v787_v9, %v249_v18  ;;  %v289_v27 = vadd.f32 %v787_v9, %v250_v19  ;;  %v290_v28 = vadd.f32 %v787_v9, %v251_v20  ;;  %v291_v29 = vadd.f32 %v787_v9, %v252_v21  ;;  %v713_v20 = vld [vmem:[%s773_s18 + $0x40] sm:$0xff]   ;;  %v714_v21 = vld [vmem:[%s773_s18 + $0x48] sm:$0xff]  }
  0x17   : > { %v316_v30 = vmax.f32 %v284_v22, 0.0  ;;  %v317_v31 = vmax.f32 %v285_v23, 0.0  ;;  %v318_v32 = vmax.f32 %v286_v24, 0.0  ;;  %v319_v33 = vmax.f32 %v287_v25, 0.0 }
  0x18   : > { %v320_v34 = vmax.f32 %v288_v26, 0.0  ;;  %v321_v35 = vmax.f32 %v289_v27, 0.0  ;;  %v322_v36 = vmax.f32 %v290_v28, 0.0  ;;  %v323_v37 = vmax.f32 %v291_v29, 0.0  ;;  %v715_v26 = vld [vmem:[%s773_s18 + $0x50] sm:$0xff]   ;;  %v716_v27 = vld [vmem:[%s773_s18 + $0x58] sm:$0xff]  }
  0x19   : > { %v610_v40 = vpack.c.bf16 %v316_v30, %v316_v30  ;;  %v611_v41 = vpack.c.bf16 %v317_v31, %v317_v31  ;;  %v612_v42 = vpack.c.bf16 %v318_v32, %v318_v32  ;;  %v613_v43 = vpack.c.bf16 %v319_v33, %v319_v33 }
  0x1a   : > { %v614_v46 = vpack.c.bf16 %v320_v34, %v320_v34  ;;  %v615_v47 = vpack.c.bf16 %v321_v35, %v321_v35  ;;  %v616_v48 = vpack.c.bf16 %v322_v36, %v322_v36  ;;  %v617_v49 = vpack.c.bf16 %v323_v37, %v323_v37 }
  0x1b   : > { %477 = vst.msk [vmem:[%s810_s25] sm:$0xf] %vm476_vm0, %v610_v40  ;;  %478 = vst.msk [vmem:[%s810_s25 + $0x4] sm:$0xf] %vm476_vm0, %v611_v41  ;;  %v660_v50 = vunpack.c.l.bf16 %v709_v38  ;;  %v661_v51 = vunpack.c.h.bf16 %v709_v38  ;;  %v664_v52 = vunpack.c.l.bf16 %v710_v39  ;;  %v665_v53 = vunpack.c.h.bf16 %v710_v39 }
  0x1c   : > { %479 = vst.msk [vmem:[%s810_s25 + $0x8] sm:$0xf] %vm476_vm0, %v612_v42  ;;  %480 = vst.msk [vmem:[%s810_s25 + $0xc] sm:$0xf] %vm476_vm0, %v613_v43  ;;  %v668_v54 = vunpack.c.l.bf16 %v711_v44  ;;  %v669_v55 = vunpack.c.h.bf16 %v711_v44  ;;  %v672_v56 = vunpack.c.l.bf16 %v712_v45  ;;  %v673_v57 = vunpack.c.h.bf16 %v712_v45 }
  0x1d   : > { %481 = vst.msk [vmem:[%s810_s25 + $0x10] sm:$0xf] %vm476_vm0, %v614_v46  ;;  %482 = vst.msk [vmem:[%s810_s25 + $0x14] sm:$0xf] %vm476_vm0, %v615_v47  ;;  %v253_v58 = vmul.f32 %v660_v50, %v778_v0  ;;  %v254_v59 = vmul.f32 %v661_v51, %v778_v0  ;;  %v255_v60 = vmul.f32 %v664_v52, %v778_v0  ;;  %v676_v32 = vunpack.c.l.bf16 %v713_v20 }
  0x1e   : > { %483 = vst.msk [vmem:[%s810_s25 + $0x18] sm:$0xf] %vm476_vm0, %v616_v48  ;;  %484 = vst.msk [vmem:[%s810_s25 + $0x1c] sm:$0xf] %vm476_vm0, %v617_v49  ;;  %v256_v61 = vmul.f32 %v665_v53, %v778_v0  ;;  %v257_v62 = vmul.f32 %v668_v54, %v778_v0  ;;  %v258_v63 = vmul.f32 %v669_v55, %v778_v0  ;;  %v677_v33 = vunpack.c.h.bf16 %v713_v20 }
  0x1f   : > { %v259_v1 = vmul.f32 %v672_v56, %v778_v0  ;;  %v260_v2 = vmul.f32 %v673_v57, %v778_v0  ;;  %v292_v3 = vadd.f32 %v787_v9, %v253_v58  ;;  %v293_v4 = vadd.f32 %v787_v9, %v254_v59 }
  0x20   : > { %v294_v5 = vadd.f32 %v787_v9, %v255_v60  ;;  %v295_v6 = vadd.f32 %v787_v9, %v256_v61  ;;  %v296_v7 = vadd.f32 %v787_v9, %v257_v62  ;;  %v297_v8 = vadd.f32 %v787_v9, %v258_v63 }
  0x21   : > { %v298_v10 = vadd.f32 %v787_v9, %v259_v1  ;;  %v299_v11 = vadd.f32 %v787_v9, %v260_v2  ;;  %v324_v12 = vmax.f32 %v292_v3, 0.0  ;;  %v325_v13 = vmax.f32 %v293_v4, 0.0  ;;  %v717_v1 = vld [vmem:[%s773_s18 + $0x60] sm:$0xff]   ;;  %v718_v2 = vld [vmem:[%s773_s18 + $0x68] sm:$0xff]  }
  0x22   : > { %v326_v14 = vmax.f32 %v294_v5, 0.0  ;;  %v327_v15 = vmax.f32 %v295_v6, 0.0  ;;  %v328_v16 = vmax.f32 %v296_v7, 0.0  ;;  %v329_v17 = vmax.f32 %v297_v8, 0.0  ;;  %v719_v7 = vld [vmem:[%s773_s18 + $0x70] sm:$0xff]   ;;  %v720_v8 = vld [vmem:[%s773_s18 + $0x78] sm:$0xff]  }
  0x23   : > { %v330_v18 = vmax.f32 %v298_v10, 0.0  ;;  %v331_v19 = vmax.f32 %v299_v11, 0.0  ;;  %v618_v22 = vpack.c.bf16 %v324_v12, %v324_v12  ;;  %v619_v23 = vpack.c.bf16 %v325_v13, %v325_v13 }
  0x24   : > { %v620_v24 = vpack.c.bf16 %v326_v14, %v326_v14  ;;  %v621_v25 = vpack.c.bf16 %v327_v15, %v327_v15  ;;  %v622_v28 = vpack.c.bf16 %v328_v16, %v328_v16  ;;  %v623_v29 = vpack.c.bf16 %v329_v17, %v329_v17 }
  0x25   : > { %v624_v30 = vpack.c.bf16 %v330_v18, %v330_v18  ;;  %v625_v31 = vpack.c.bf16 %v331_v19, %v331_v19  ;;  %485 = vst.msk [vmem:[%s810_s25 + $0x20] sm:$0xf] %vm476_vm0, %v618_v22  ;;  %486 = vst.msk [vmem:[%s810_s25 + $0x24] sm:$0xf] %vm476_vm0, %v619_v23  ;;  %v680_v34 = vunpack.c.l.bf16 %v714_v21  ;;  %v681_v35 = vunpack.c.h.bf16 %v714_v21 }
  0x26   : > { %487 = vst.msk [vmem:[%s810_s25 + $0x28] sm:$0xf] %vm476_vm0, %v620_v24  ;;  %488 = vst.msk [vmem:[%s810_s25 + $0x2c] sm:$0xf] %vm476_vm0, %v621_v25  ;;  %v684_v36 = vunpack.c.l.bf16 %v715_v26  ;;  %v685_v37 = vunpack.c.h.bf16 %v715_v26  ;;  %v688_v38 = vunpack.c.l.bf16 %v716_v27  ;;  %v689_v39 = vunpack.c.h.bf16 %v716_v27 }
  0x27   : > { %489 = vst.msk [vmem:[%s810_s25 + $0x30] sm:$0xf] %vm476_vm0, %v622_v28  ;;  %490 = vst.msk [vmem:[%s810_s25 + $0x34] sm:$0xf] %vm476_vm0, %v623_v29  ;;  %v261_v40 = vmul.f32 %v676_v32, %v778_v0  ;;  %v262_v41 = vmul.f32 %v677_v33, %v778_v0  ;;  %v263_v42 = vmul.f32 %v680_v34, %v778_v0  ;;  %v692_v14 = vunpack.c.l.bf16 %v717_v1 }
  0x28   : > { %491 = vst.msk [vmem:[%s810_s25 + $0x38] sm:$0xf] %vm476_vm0, %v624_v30  ;;  %492 = vst.msk [vmem:[%s810_s25 + $0x3c] sm:$0xf] %vm476_vm0, %v625_v31  ;;  %v264_v43 = vmul.f32 %v681_v35, %v778_v0  ;;  %v265_v44 = vmul.f32 %v684_v36, %v778_v0  ;;  %v266_v45 = vmul.f32 %v685_v37, %v778_v0  ;;  %v693_v15 = vunpack.c.h.bf16 %v717_v1 }
  0x29   : > { %v267_v46 = vmul.f32 %v688_v38, %v778_v0  ;;  %v268_v47 = vmul.f32 %v689_v39, %v778_v0  ;;  %v300_v48 = vadd.f32 %v787_v9, %v261_v40  ;;  %v301_v49 = vadd.f32 %v787_v9, %v262_v41 }
  0x2a   : > { %v302_v50 = vadd.f32 %v787_v9, %v263_v42  ;;  %v303_v51 = vadd.f32 %v787_v9, %v264_v43  ;;  %v304_v52 = vadd.f32 %v787_v9, %v265_v44  ;;  %v305_v53 = vadd.f32 %v787_v9, %v266_v45 }
  0x2b   : > { %v306_v54 = vadd.f32 %v787_v9, %v267_v46  ;;  %v307_v55 = vadd.f32 %v787_v9, %v268_v47  ;;  %v332_v56 = vmax.f32 %v300_v48, 0.0  ;;  %v333_v57 = vmax.f32 %v301_v49, 0.0 }
  0x2c   : > { %v334_v58 = vmax.f32 %v302_v50, 0.0  ;;  %v335_v59 = vmax.f32 %v303_v51, 0.0  ;;  %v336_v60 = vmax.f32 %v304_v52, 0.0  ;;  %v337_v61 = vmax.f32 %v305_v53, 0.0 }
  0x2d   : > { %v338_v62 = vmax.f32 %v306_v54, 0.0  ;;  %v339_v63 = vmax.f32 %v307_v55, 0.0  ;;  %v626_v3 = vpack.c.bf16 %v332_v56, %v332_v56  ;;  %v627_v4 = vpack.c.bf16 %v333_v57, %v333_v57 }
  0x2e   : > { %v628_v5 = vpack.c.bf16 %v334_v58, %v334_v58  ;;  %v629_v6 = vpack.c.bf16 %v335_v59, %v335_v59  ;;  %v630_v10 = vpack.c.bf16 %v336_v60, %v336_v60  ;;  %v631_v11 = vpack.c.bf16 %v337_v61, %v337_v61 }
  0x2f   : > { %v632_v12 = vpack.c.bf16 %v338_v62, %v338_v62  ;;  %v633_v13 = vpack.c.bf16 %v339_v63, %v339_v63  ;;  %493 = vst.msk [vmem:[%s810_s25 + $0x40] sm:$0xf] %vm476_vm0, %v626_v3  ;;  %494 = vst.msk [vmem:[%s810_s25 + $0x44] sm:$0xf] %vm476_vm0, %v627_v4  ;;  %v696_v16 = vunpack.c.l.bf16 %v718_v2  ;;  %v697_v17 = vunpack.c.h.bf16 %v718_v2 }
  0x30   : > { %495 = vst.msk [vmem:[%s810_s25 + $0x48] sm:$0xf] %vm476_vm0, %v628_v5  ;;  %496 = vst.msk [vmem:[%s810_s25 + $0x4c] sm:$0xf] %vm476_vm0, %v629_v6  ;;  %v700_v18 = vunpack.c.l.bf16 %v719_v7  ;;  %v701_v19 = vunpack.c.h.bf16 %v719_v7  ;;  %v704_v20 = vunpack.c.l.bf16 %v720_v8  ;;  %v705_v21 = vunpack.c.h.bf16 %v720_v8 }
  0x31   : > { %497 = vst.msk [vmem:[%s810_s25 + $0x50] sm:$0xf] %vm476_vm0, %v630_v10  ;;  %498 = vst.msk [vmem:[%s810_s25 + $0x54] sm:$0xf] %vm476_vm0, %v631_v11  ;;  %v269_v22 = vmul.f32 %v692_v14, %v778_v0  ;;  %v270_v23 = vmul.f32 %v693_v15, %v778_v0  ;;  %v271_v24 = vmul.f32 %v696_v16, %v778_v0 }
  0x32   : > { %499 = vst.msk [vmem:[%s810_s25 + $0x58] sm:$0xf] %vm476_vm0, %v632_v12  ;;  %500 = vst.msk [vmem:[%s810_s25 + $0x5c] sm:$0xf] %vm476_vm0, %v633_v13  ;;  %v272_v25 = vmul.f32 %v697_v17, %v778_v0  ;;  %v273_v26 = vmul.f32 %v700_v18, %v778_v0  ;;  %v274_v27 = vmul.f32 %v701_v19, %v778_v0 }
  0x33   : > { %v275_v28 = vmul.f32 %v704_v20, %v778_v0  ;;  %v276_v29 = vmul.f32 %v705_v21, %v778_v0  ;;  %v308_v30 = vadd.f32 %v787_v9, %v269_v22  ;;  %v309_v31 = vadd.f32 %v787_v9, %v270_v23 }
  0x34   : > { %v310_v32 = vadd.f32 %v787_v9, %v271_v24  ;;  %v311_v33 = vadd.f32 %v787_v9, %v272_v25  ;;  %v312_v34 = vadd.f32 %v787_v9, %v273_v26  ;;  %v313_v35 = vadd.f32 %v787_v9, %v274_v27 }
  0x35   : > { %v314_v36 = vadd.f32 %v787_v9, %v275_v28  ;;  %v315_v37 = vadd.f32 %v787_v9, %v276_v29  ;;  %v340_v38 = vmax.f32 %v308_v30, 0.0  ;;  %v341_v39 = vmax.f32 %v309_v31, 0.0 }
  0x36   : > { %v342_v0 = vmax.f32 %v310_v32, 0.0  ;;  %v343_v40 = vmax.f32 %v311_v33, 0.0  ;;  %v344_v41 = vmax.f32 %v312_v34, 0.0  ;;  %v345_v42 = vmax.f32 %v313_v35, 0.0 }
  0x37   : > { %v346_v43 = vmax.f32 %v314_v36, 0.0  ;;  %v347_v44 = vmax.f32 %v315_v37, 0.0  ;;  %v634_v45 = vpack.c.bf16 %v340_v38, %v340_v38  ;;  %v635_v46 = vpack.c.bf16 %v341_v39, %v341_v39 }
  0x38   : > { %v636_v47 = vpack.c.bf16 %v342_v0, %v342_v0  ;;  %v637_v9 = vpack.c.bf16 %v343_v40, %v343_v40  ;;  %v638_v48 = vpack.c.bf16 %v344_v41, %v344_v41  ;;  %v639_v49 = vpack.c.bf16 %v345_v42, %v345_v42 }
  0x39   : > { %v640_v50 = vpack.c.bf16 %v346_v43, %v346_v43  ;;  %v641_v51 = vpack.c.bf16 %v347_v44, %v347_v44  ;;  %501 = vst.msk [vmem:[%s810_s25 + $0x60] sm:$0xf] %vm476_vm0, %v634_v45  ;;  %502 = vst.msk [vmem:[%s810_s25 + $0x64] sm:$0xf] %vm476_vm0, %v635_v46 }
  0x3a   : > { %503 = vst.msk [vmem:[%s810_s25 + $0x68] sm:$0xf] %vm476_vm0, %v636_v47  ;;  %504 = vst.msk [vmem:[%s810_s25 + $0x6c] sm:$0xf] %vm476_vm0, %v637_v9 }
  0x3b   : > { %505 = vst.msk [vmem:[%s810_s25 + $0x70] sm:$0xf] %vm476_vm0, %v638_v48  ;;  %506 = vst.msk [vmem:[%s810_s25 + $0x74] sm:$0xf] %vm476_vm0, %v639_v49 }
  0x3c   : > { %507 = vst.msk [vmem:[%s810_s25 + $0x78] sm:$0xf] %vm476_vm0, %v640_v50  ;;  %508 = vst.msk [vmem:[%s810_s25 + $0x7c] sm:$0xf] %vm476_vm0, %v641_v51 }
  0x3d PF: > { %s13_s12 = sadd.s32 1, %s735_s12  }
  0x3e   : > { %p10_p4 = scmp.ge.s32.totalorder %s13_s12, 4  }
  0x40   :  { %12 = sbr.rel (!%p10_p4) target bundleno = 1 (0x1), region = 62 }

// kernel: resnet_block_forward.14
= control target key start
LH: loop header
LB: loop body
LE: loop exit
PB: predicated region body
PF: predicated region fallthrough
CT: control target
= control target key end

     0   :  { %s685_s18 = smov 0   ;;  %s765_s0 = inlined_call_operand.vmem [shape: bf16[128,4], index: 0, kind: input, shape index: {}]   ;;  %s766_s1 = inlined_call_operand.vmem [shape: f32[1,4], index: 1, kind: input, shape index: {}]   ;;  %s767_s2 = inlined_call_operand.vmem [shape: f32[1,4], index: 2, kind: input, shape index: {}]   ;;  %s768_s3 = inlined_call_operand.vmem [shape: bf16[4,16], index: 3, kind: input, shape index: {}]   ;;  %s769_s4 = inlined_call_operand.vmem [shape: bf16[128,16], index: 4, kind: output, shape index: {0}]   ;;  %s770_s5 = inlined_call_operand.vmem [shape: f32[16,16], index: 5, kind: output, shape index: {1}]  }
   0x1 LB: > { %s691_s19 = sadd.s32 4294967295, %s653_s18   ;;  %p571_p0 = scmp.ge.s32.totalorder %s653_s18, 1  ;;  %s653_s18 = sphi %s685_s18, %s16_s18  }
   0x2   : > { %p191_p1 = scmp.lt.s32.totalorder %s653_s18, 3 }
   0x4   : > { %p192_p2 = pnand %p571_p0, %p191_p1 }
   0x5   : > { %v298_v0 = vld [vmem:[%s768_s3] sm:$0x3] (!%p192_p2)  ;;  %vm312_vm0 = vcmask (!%p192_p2), 1041408   ;;  %s572_s22 = sshll.u32 (!%p192_p2), %s691_s19, 3  ;;  %vm299_vm1 = vcmask (!%p192_p2), 31744   ;;  %vm413_vm2 = vcmask (!%p192_p2), 125952  }
   0x6   : > { %195 = sbr.rel (%p192_p2) target bundleno = 274 (0x112), region = 36  ;;  %637 = vmatprep.subr.msk.bf16.mxu0 (!%p192_p2), %vm312_vm0, %v298_v0  ;;  %v314_v1 = vsel (!%p192_p2), %vm312_vm0, %v298_v0, 0  ;;  %p224_p3 = scmp.lt.s32.totalorder (!%p192_p2), %s572_s22, 15  ;;  %638 = vmatprep.subr.msk.bf16.mxu1 (!%p192_p2), %vm312_vm0, %v298_v0  ;;  %v577_v2 = vld [vmem:[%s766_s1] ss:$0 sm:$0xff] (!%p192_p2)  ;;  %vm422_vm3 = vcmask (!%p192_p2), 130048  }
   0x7   : > { %626 = vmatpush3.bf16.msra.mxu0 (!%p192_p2), %v314_v1  ;;  %636 = vmatpush3.bf16.msra.mxu1 (!%p192_p2), %v314_v1  ;;  %v578_v11 = vld [vmem:[%s767_s2] ss:$0 sm:$0xff] (!%p192_p2)  ;;  %p235_p4 = scmp.lt.s32.totalorder (!%p192_p2), %s691_s19, 1 }
   0xd   : > { %s772_s22 = smov (!%p224_p3, %s572_s22), 15  ;;  %s774_s19 = smov (!%p235_p4, %s691_s19), 1 }
   0xe   : > { %s573_s23 = sshll.u32 %s772_s22, 2  ;;  %s576_s9 = sshll.u32 %s774_s19, 3 }
   0xf   : > { %s227_s26 = scalar_lea.vmem %s765_s0, %s573_s23  ;;  %s722_s8 = scalar_lea.vmem %s769_s4, %s573_s23 }
  0x10   : > { %v602_v3 = vld [vmem:[%s227_s26] sm:$0xff]   ;;  %v617_v4 = vld [vmem:[%s227_s26 + $0x8] sm:$0xff]   ;;  %v618_v5 = vld [vmem:[%s227_s26 + $0x10] sm:$0xff]   ;;  %s238_s12 = scalar_lea.vmem %s770_s5, %s576_s9 }
  0x11   : > { %v603_v6 = vunpack.c.l.bf16 %v602_v3  ;;  %v604_v7 = vunpack.c.h.bf16 %v602_v3  ;;  %v607_v8 = vunpack.c.l.bf16 %v617_v4  ;;  %v608_v9 = vunpack.c.h.bf16 %v617_v4  ;;  %v619_v10 = vld [vmem:[%s227_s26 + $0x18] sm:$0xff]  }
  0x12   : > { %v611_v12 = vunpack.c.l.bf16 %v618_v5  ;;  %v612_v13 = vunpack.c.h.bf16 %v618_v5  ;;  %v615_v14 = vunpack.c.l.bf16 %v619_v10  ;;  %v616_v15 = vunpack.c.h.bf16 %v619_v10 }
  0x13   : > { %v263_v16 = vmul.f32 %v603_v6, %v577_v2  ;;  %v264_v17 = vmul.f32 %v604_v7, %v577_v2  ;;  %v265_v18 = vmul.f32 %v607_v8, %v577_v2  ;;  %v266_v19 = vmul.f32 %v608_v9, %v577_v2 }
  0x14   : > { %v267_v20 = vmul.f32 %v611_v12, %v577_v2  ;;  %v268_v21 = vmul.f32 %v612_v13, %v577_v2  ;;  %v269_v22 = vmul.f32 %v615_v14, %v577_v2  ;;  %v270_v23 = vmul.f32 %v616_v15, %v577_v2 }
  0x15   : > { %v278_v24 = vadd.f32 %v578_v11, %v263_v16  ;;  %v279_v25 = vadd.f32 %v578_v11, %v264_v17  ;;  %v280_v26 = vadd.f32 %v578_v11, %v265_v18  ;;  %v281_v27 = vadd.f32 %v578_v11, %v266_v19 }
  0x16   : > { %v282_v28 = vadd.f32 %v578_v11, %v267_v20  ;;  %v283_v29 = vadd.f32 %v578_v11, %v268_v21  ;;  %v284_v30 = vadd.f32 %v578_v11, %v269_v22  ;;  %v285_v31 = vadd.f32 %v578_v11, %v270_v23 }
  0x17   : > { %v286_v32 = vmax.f32 %v278_v24, 0.0  ;;  %v287_v33 = vmax.f32 %v279_v25, 0.0  ;;  %v288_v34 = vmax.f32 %v280_v26, 0.0  ;;  %v289_v35 = vmax.f32 %v281_v27, 0.0 }
  0x18   : > { %v290_v36 = vmax.f32 %v282_v28, 0.0  ;;  %v291_v37 = vmax.f32 %v283_v29, 0.0  ;;  %v292_v38 = vmax.f32 %v284_v30, 0.0  ;;  %v293_v39 = vmax.f32 %v285_v31, 0.0 }
  0x19   : > { %v294_v40 = vpack.c.bf16 %v287_v33, %v286_v32  ;;  %v295_v41 = vpack.c.bf16 %v289_v35, %v288_v34  ;;  %v473_v35 = vlaneseq }
  0x1a   : > { %v296_v42 = vpack.c.bf16 %v291_v37, %v290_v36  ;;  %v297_v43 = vpack.c.bf16 %v293_v39, %v292_v38 }
  0x1b   : > { %627 = vmatprep.mubr.msk.bf16.mxu0 %vm299_vm1, %v294_v40  ;;  %v474_v40 = vshrl.u32 %v473_v35, 7 }
  0x1c   : > { %628 = vmatmul.mubr.msk.bf16.vlgmr.msra.gmra.mrb[0].mxu0 %vm299_vm1, %v295_v41  ;;  %631 = vmatprep.mubr.msk.bf16.mxu1 %vm299_vm1, %v296_v42 }
  0x1d   : > { %632 = vmatmul.mubr.msk.bf16.vlgmr.msra.gmra.mrb[0].mxu1 %vm299_vm1, %v297_v43  ;;  %vm475_vm4 = vcmp.eq.s32.totalorder %v474_v40, 0  ;;  %vm477_vm5 = vcmp.eq.s32.totalorder %v474_v40, 1 }
  0xef   : > { %v629_v44 = vpop.f32.mrb[0].mxu0 }
  0xf0   : > { %v595_v45 = vpack.c.bf16 %v629_v44, %v629_v44  ;;  %v350_v46 = vpop.f32.mrb[1].mxu0  ;;  %v633_v47 = vpop.f32.mrb[0].mxu1  ;;  %v446_v53 = vmul.f32 %v629_v44, %v629_v44  ;;  %v426_v62 = vsel %vm422_vm3, %v629_v44, 0.0 }
  0xf1   : > { %v593_v48 = vpack.c.bf16 %v350_v46, %v350_v46  ;;  %v444_v49 = vmul.f32 %v350_v46, %v350_v46  ;;  %v630_v50 = vpop.f32.mrb[2].mxu0  ;;  %v599_v51 = vpack.c.bf16 %v633_v47, %v633_v47  ;;  %v366_v52 = vpop.f32.mrb[1].mxu1  ;;  %v423_v57 = vsel %vm422_vm3, %v350_v46, 0.0 }
  0xf2   : > { %416 = vst.msk [vmem:[%s722_s8 + $0x8] sm:$0xf] %vm413_vm2, %v595_v45  ;;  %v596_v54 = vpack.c.bf16 %v630_v50, %v630_v50  ;;  %v353_v55 = vpop.f32.mrb[3].mxu0  ;;  %v634_v56 = vpop.f32.mrb[2].mxu1  ;;  %v447_v63 = vmul.f32 %v630_v50, %v630_v50  ;;  %v597_v3 = vpack.c.bf16 %v366_v52, %v366_v52  ;;  %v448_v4 = vmul.f32 %v366_v52, %v366_v52 }
  0xf3   : > { %414 = vst.msk [vmem:[%s722_s8] sm:$0xf] %vm413_vm2, %v593_v48  ;;  %v594_v58 = vpack.c.bf16 %v353_v55, %v353_v55  ;;  %v424_v59 = vsel %vm422_vm3, %v353_v55, 0.0  ;;  %v445_v60 = vmul.f32 %v353_v55, %v353_v55  ;;  %420 = vst.msk [vmem:[%s722_s8 + $0x18] sm:$0xf] %vm413_vm2, %v599_v51  ;;  %v369_v61 = vpop.f32.mrb[3].mxu1  ;;  %v600_v7 = vpack.c.bf16 %v634_v56, %v634_v56 }
  0xf4   : > { %417 = vst.msk [vmem:[%s722_s8 + $0xc] sm:$0xf] %vm413_vm2, %v596_v54  ;;  %v425_v0 = vadd.f32 %v424_v59, %v423_v57  ;;  %v452_v1 = vsel %vm422_vm3, %v444_v49, 0.0  ;;  %v455_v8 = vsel %vm422_vm3, %v446_v53, 0.0  ;;  %v428_v9 = vsel %vm422_vm3, %v630_v50, 0.0 }
  0xf5   : > { %415 = vst.msk [vmem:[%s722_s8 + $0x4] sm:$0xf] %vm413_vm2, %v594_v58  ;;  %v453_v2 = vsel %vm422_vm3, %v445_v60, 0.0  ;;  %418 = vst.msk [vmem:[%s722_s8 + $0x10] sm:$0xf] %vm413_vm2, %v597_v3  ;;  %v430_v10 = vsel %vm422_vm3, %v366_v52, 0.0  ;;  %v598_v11 = vpack.c.bf16 %v369_v61, %v369_v61  ;;  %v449_v16 = vmul.f32 %v369_v61, %v369_v61 }
  0xf6   : > { %v427_v5 = vadd.f32 %v426_v62, %v425_v0  ;;  %v454_v6 = vadd.f32 %v453_v2, %v452_v1  ;;  %421 = vst.msk [vmem:[%s722_s8 + $0x1c] sm:$0xf] %vm413_vm2, %v600_v7  ;;  %v457_v14 = vsel %vm422_vm3, %v447_v63, 0.0  ;;  %v459_v15 = vsel %vm422_vm3, %v448_v4, 0.0 }
  0xf7   : > { %419 = vst.msk [vmem:[%s722_s8 + $0x14] sm:$0xf] %vm413_vm2, %v598_v11  ;;  %v450_v19 = vmul.f32 %v633_v47, %v633_v47  ;;  %v432_v20 = vsel %vm422_vm3, %v369_v61, 0.0  ;;  %v434_v23 = vsel %vm422_vm3, %v633_v47, 0.0  ;;  %v451_v24 = vmul.f32 %v634_v56, %v634_v56 }
  0xf8   : > { %v456_v12 = vadd.f32 %v455_v8, %v454_v6  ;;  %v429_v13 = vadd.f32 %v428_v9, %v427_v5  ;;  %v461_v25 = vsel %vm422_vm3, %v449_v16, 0.0  ;;  %v436_v29 = vsel %vm422_vm3, %v634_v56, 0.0 }
  0xf9   : > { %v463_v28 = vsel %vm422_vm3, %v450_v19, 0.0  ;;  %v465_v32 = vsel %vm422_vm3, %v451_v24, 0.0 }
  0xfa   : > { %v431_v17 = vadd.f32 %v430_v10, %v429_v13  ;;  %v458_v18 = vadd.f32 %v457_v14, %v456_v12 }
  0xfc   : > { %v460_v21 = vadd.f32 %v459_v15, %v458_v18  ;;  %v433_v22 = vadd.f32 %v432_v20, %v431_v17 }
  0xfe   : > { %v435_v26 = vadd.f32 %v434_v23, %v433_v22  ;;  %v462_v27 = vadd.f32 %v461_v25, %v460_v21 }
 0x100   : > { %v437_v30 = vadd.f32 %v436_v29, %v435_v26  ;;  %v464_v31 = vadd.f32 %v463_v28, %v462_v27 }
 0x102   : > { %v438_v33 = vrot.slane %v437_v30, 4  ;;  %v466_v34 = vadd.f32 %v465_v32, %v464_v31 }
 0x104   : > { %v439_v36 = vadd.f32 %v438_v33, %v437_v30  ;;  %v467_v37 = vrot.slane %v466_v34, 4 }
 0x106   : > { %v440_v38 = vrot.slane %v439_v36, 2  ;;  %v468_v39 = vadd.f32 %v467_v37, %v466_v34 }
 0x108   : > { %v441_v41 = vadd.f32 %v440_v38, %v439_v36  ;;  %v469_v42 = vrot.slane %v468_v39, 2 }
 0x10a   : > { %v442_v43 = vrot.slane %v441_v41, 1  ;;  %v470_v44 = vadd.f32 %v469_v42, %v468_v39 }
 0x10c   : > { %v443_v45 = vadd.f32 %v442_v43, %v441_v41  ;;  %v471_v46 = vrot.slane %v470_v44, 1 }
 0x10e   : > { %v472_v47 = vadd.f32 %v471_v46, %v470_v44  ;;  %v476_v48 = vsel %vm475_vm4, %v443_v45, 0.0 }
 0x110   : > { %v478_v49 = vsel %vm477_vm5, %v472_v47, %v476_v48 }
 0x111   : > { %479 = vst.msk [vmem:[%s238_s12] sm:$0xff] %vm422_vm3, %v478_v49 }
 0x112 PF: > { %s16_s18 = sadd.s32 1, %s653_s18  }
 0x113   : > { %p13_p5 = scmp.ge.s32.totalorder %s16_s18, 4  }
 0x115   :  { %15 = sbr.rel (!%p13_p5) target bundleno = 1 (0x1), region = 78 }

// kernel: resnet_block_forward.16
= control target key start
LH: loop header
LB: loop body
LE: loop exit
PB: predicated region body
PF: predicated region fallthrough
CT: control target
= control target key end

     0   :  { %s616_s21 = smov 0   ;;  %s713_s0 = inlined_call_operand.vmem [shape: bf16[128,16], index: 0, kind: input, shape index: {}]   ;;  %s714_s1 = inlined_call_operand.vmem [shape: f32[1,16], index: 1, kind: input, shape index: {}]   ;;  %s715_s2 = inlined_call_operand.vmem [shape: f32[1,16], index: 2, kind: input, shape index: {}]   ;;  %s716_s3 = inlined_call_operand.vmem [shape: bf16[128,16], index: 3, kind: input, shape index: {}]   ;;  %s717_s4 = inlined_call_operand.vmem [shape: f32[1,16], index: 4, kind: input, shape index: {}]   ;;  %s718_s5 = inlined_call_operand.vmem [shape: f32[1,16], index: 5, kind: input, shape index: {}]   ;;  %s719_s6 = inlined_call_operand.vmem [shape: bf16[128,16], index: 6, kind: output, shape index: {}]  }
   0x1 LB: > { %s494_s22 = sadd.s32 4294967295, %s579_s21   ;;  %p498_p0 = scmp.ge.s32.totalorder %s579_s21, 1  ;;  %s579_s21 = sphi %s616_s21, %s16_s21  }
   0x2   : > { %p224_p1 = scmp.lt.s32.totalorder %s579_s21, 3 }
   0x4   : > { %p225_p2 = pnand %p498_p0, %p224_p1 }
   0x5   : > { %s499_s23 = sshll.u32 (!%p225_p2), %s494_s22, 3  ;;  %v641_v0 = vld [vmem:[%s714_s1] ss:$0 sm:$0xff] (!%p225_p2)  ;;  %vm417_vm0 = vcmask (!%p225_p2), 125952  }
   0x6   : > { %228 = sbr.rel (%p225_p2) target bundleno = 45 (0x2d), region = 44  ;;  %p260_p3 = scmp.lt.s32.totalorder (!%p225_p2), %s499_s23, 15  ;;  %v646_v1 = vld [vmem:[%s717_s4] ss:$0 sm:$0xff] (!%p225_p2) }
   0x7   : > { %v655_v10 = vld [vmem:[%s715_s2] ss:$0 sm:$0xff] (!%p225_p2) }
   0x8   : > { %v508_v29 = vld [vmem:[%s718_s5] ss:$0 sm:$0xff] (!%p225_p2) }
   0xd   : > { %s721_s23 = smov (!%p260_p3, %s499_s23), 15 }
   0xe   : > { %s624_s24 = sshll.u32 %s721_s23, 2 }
   0xf   : > { %s630_s27 = scalar_lea.vmem %s713_s0, %s624_s24  ;;  %s636_s30 = scalar_lea.vmem %s716_s3, %s624_s24 }
  0x10   : > { %v528_v2 = vld [vmem:[%s630_s27] sm:$0xff]   ;;  %v559_v4 = vld [vmem:[%s630_s27 + $0x8] sm:$0xff]   ;;  %v560_v15 = vld [vmem:[%s630_s27 + $0x10] sm:$0xff]   ;;  %s687_s17 = scalar_lea.vmem %s719_s6, %s624_s24 }
  0x11   : > { %v544_v3 = vld [vmem:[%s636_s30] sm:$0xff]   ;;  %v529_v5 = vunpack.c.l.bf16 %v528_v2  ;;  %v530_v7 = vunpack.c.h.bf16 %v528_v2  ;;  %v562_v9 = vld [vmem:[%s636_s30 + $0x8] sm:$0xff]   ;;  %v533_v11 = vunpack.c.l.bf16 %v559_v4  ;;  %v534_v13 = vunpack.c.h.bf16 %v559_v4  ;;  %v563_v16 = vld [vmem:[%s636_s30 + $0x10] sm:$0xff]  }
  0x12   : > { %v545_v6 = vunpack.c.l.bf16 %v544_v3  ;;  %v546_v8 = vunpack.c.h.bf16 %v544_v3  ;;  %v549_v12 = vunpack.c.l.bf16 %v562_v9  ;;  %v550_v14 = vunpack.c.h.bf16 %v562_v9  ;;  %v561_v34 = vld [vmem:[%s630_s27 + $0x18] sm:$0xff]  }
  0x13   : > { %v300_v17 = vmul.f32 %v529_v5, %v641_v0  ;;  %v301_v19 = vmul.f32 %v530_v7, %v641_v0  ;;  %v302_v21 = vmul.f32 %v533_v11, %v641_v0  ;;  %v303_v23 = vmul.f32 %v534_v13, %v641_v0  ;;  %v564_v39 = vld [vmem:[%s636_s30 + $0x18] sm:$0xff]  }
  0x14   : > { %v346_v18 = vmul.f32 %v545_v6, %v646_v1  ;;  %v347_v20 = vmul.f32 %v546_v8, %v646_v1  ;;  %v348_v22 = vmul.f32 %v549_v12, %v646_v1  ;;  %v349_v24 = vmul.f32 %v550_v14, %v646_v1 }
  0x15   : > { %v315_v25 = vadd.f32 %v655_v10, %v300_v17  ;;  %v316_v26 = vadd.f32 %v655_v10, %v301_v19  ;;  %v537_v27 = vunpack.c.l.bf16 %v560_v15  ;;  %v553_v28 = vunpack.c.l.bf16 %v563_v16 }
  0x16   : > { %v317_v30 = vadd.f32 %v655_v10, %v302_v21  ;;  %v318_v31 = vadd.f32 %v655_v10, %v303_v23  ;;  %v538_v32 = vunpack.c.h.bf16 %v560_v15  ;;  %v554_v33 = vunpack.c.h.bf16 %v563_v16 }
  0x17   : > { %v354_v35 = vadd.f32 %v346_v18, %v315_v25  ;;  %v355_v36 = vadd.f32 %v347_v20, %v316_v26  ;;  %v304_v37 = vmul.f32 %v537_v27, %v641_v0  ;;  %v350_v38 = vmul.f32 %v553_v28, %v646_v1 }
  0x18   : > { %v356_v40 = vadd.f32 %v348_v22, %v317_v30  ;;  %v357_v41 = vadd.f32 %v349_v24, %v318_v31  ;;  %v305_v42 = vmul.f32 %v538_v32, %v641_v0  ;;  %v351_v43 = vmul.f32 %v554_v33, %v646_v1 }
  0x19   : > { %v369_v44 = vadd.f32 %v508_v29, %v354_v35  ;;  %v370_v45 = vadd.f32 %v508_v29, %v355_v36  ;;  %v319_v46 = vadd.f32 %v655_v10, %v304_v37  ;;  %v541_v47 = vunpack.c.l.bf16 %v561_v34 }
  0x1a   : > { %v371_v48 = vadd.f32 %v508_v29, %v356_v40  ;;  %v372_v49 = vadd.f32 %v508_v29, %v357_v41  ;;  %v320_v50 = vadd.f32 %v655_v10, %v305_v42  ;;  %v557_v51 = vunpack.c.l.bf16 %v564_v39 }
  0x1b   : > { %v377_v52 = vmax.f32 %v369_v44, 0.0  ;;  %v378_v53 = vmax.f32 %v370_v45, 0.0  ;;  %v358_v54 = vadd.f32 %v350_v38, %v319_v46  ;;  %v306_v55 = vmul.f32 %v541_v47, %v641_v0 }
  0x1c   : > { %v379_v56 = vmax.f32 %v371_v48, 0.0  ;;  %v380_v57 = vmax.f32 %v372_v49, 0.0  ;;  %v359_v58 = vadd.f32 %v351_v43, %v320_v50  ;;  %v352_v59 = vmul.f32 %v557_v51, %v646_v1 }
  0x1d   : > { %v519_v60 = vpack.c.bf16 %v377_v52, %v377_v52  ;;  %v520_v61 = vpack.c.bf16 %v378_v53, %v378_v53  ;;  %v373_v62 = vadd.f32 %v508_v29, %v358_v54  ;;  %v321_v63 = vadd.f32 %v655_v10, %v306_v55 }
  0x1e   : > { %v521_v2 = vpack.c.bf16 %v379_v56, %v379_v56  ;;  %v522_v3 = vpack.c.bf16 %v380_v57, %v380_v57  ;;  %v374_v4 = vadd.f32 %v508_v29, %v359_v58  ;;  %v542_v5 = vunpack.c.h.bf16 %v561_v34 }
  0x1f   : > { %418 = vst.msk [vmem:[%s687_s17] sm:$0xf] %vm417_vm0, %v519_v60  ;;  %419 = vst.msk [vmem:[%s687_s17 + $0x4] sm:$0xf] %vm417_vm0, %v520_v61  ;;  %v381_v6 = vmax.f32 %v373_v62, 0.0  ;;  %v360_v7 = vadd.f32 %v352_v59, %v321_v63  ;;  %v558_v8 = vunpack.c.h.bf16 %v564_v39 }
  0x20   : > { %420 = vst.msk [vmem:[%s687_s17 + $0x8] sm:$0xf] %vm417_vm0, %v521_v2  ;;  %421 = vst.msk [vmem:[%s687_s17 + $0xc] sm:$0xf] %vm417_vm0, %v522_v3  ;;  %v382_v9 = vmax.f32 %v374_v4, 0.0  ;;  %v307_v11 = vmul.f32 %v542_v5, %v641_v0 }
  0x21   : > { %v523_v12 = vpack.c.bf16 %v381_v6, %v381_v6  ;;  %v375_v13 = vadd.f32 %v508_v29, %v360_v7  ;;  %v353_v14 = vmul.f32 %v558_v8, %v646_v1 }
  0x22   : > { %v524_v15 = vpack.c.bf16 %v382_v9, %v382_v9  ;;  %v322_v16 = vadd.f32 %v655_v10, %v307_v11 }
  0x23   : > { %422 = vst.msk [vmem:[%s687_s17 + $0x10] sm:$0xf] %vm417_vm0, %v523_v12  ;;  %v383_v17 = vmax.f32 %v375_v13, 0.0 }
  0x24   : > { %423 = vst.msk [vmem:[%s687_s17 + $0x14] sm:$0xf] %vm417_vm0, %v524_v15  ;;  %v361_v18 = vadd.f32 %v353_v14, %v322_v16 }
  0x25   : > { %v525_v19 = vpack.c.bf16 %v383_v17, %v383_v17 }
  0x26   : > { %v376_v20 = vadd.f32 %v508_v29, %v361_v18 }
  0x27   : > { %424 = vst.msk [vmem:[%s687_s17 + $0x18] sm:$0xf] %vm417_vm0, %v525_v19 }
  0x28   : > { %v384_v21 = vmax.f32 %v376_v20, 0.0 }
  0x2a   : > { %v526_v22 = vpack.c.bf16 %v384_v21, %v384_v21 }
  0x2c   : > { %425 = vst.msk [vmem:[%s687_s17 + $0x1c] sm:$0xf] %vm417_vm0, %v526_v22 }
  0x2d PF: > { %s16_s21 = sadd.s32 1, %s579_s21  }
  0x2e   : > { %p13_p4 = scmp.ge.s32.totalorder %s16_s21, 4  }
  0x30   :  { %15 = sbr.rel (!%p13_p4) target bundleno = 1 (0x1), region = 77 }

// kernel: resnet_block_forward.13
= control target key start
LH: loop header
LB: loop body
LE: loop exit
PB: predicated region body
PF: predicated region fallthrough
CT: control target
= control target key end

     0   :  { %s2131_s27 = smov 0   ;;  %s2353_s0 = inlined_call_operand.vmem [shape: bf16[2,72,4], index: 0, kind: input, shape index: {}]   ;;  %s2354_s1 = inlined_call_operand.vmem [shape: bf16[2,72,4], index: 1, kind: input, shape index: {}]   ;;  %s2355_s2 = inlined_call_operand.vmem [shape: bf16[2,72,4], index: 2, kind: input, shape index: {}]   ;;  %s2356_s3 = inlined_call_operand.vmem [shape: bf16[2,72,4], index: 3, kind: input, shape index: {}]   ;;  %s2357_s4 = inlined_call_operand.vmem [shape: bf16[2,72,4], index: 4, kind: input, shape index: {}]   ;;  %s2358_s5 = inlined_call_operand.vmem [shape: bf16[2,72,4], index: 5, kind: input, shape index: {}]   ;;  %s2359_s6 = inlined_call_operand.vmem [shape: bf16[9,4,4], index: 6, kind: input, shape index: {}]   ;;  %s2360_s7 = inlined_call_operand.vmem [shape: bf16[2,64,4], index: 7, kind: output, shape index: {0}]   ;;  %s2361_s8 = inlined_call_operand.vmem [shape: f32[16,4], index: 8, kind: output, shape index: {1}]  }
   0x1 LB: > { %s1709_s28 = sadd.s32 4294967295, %s2084_s27   ;;  %p1713_p0 = scmp.ge.s32.totalorder %s2084_s27, 1  ;;  %s2084_s27 = sphi %s2131_s27, %s19_s27  }
   0x2   : > { %p315_p1 = scmp.lt.s32.totalorder %s2084_s27, 3 }
   0x4   : > { %p316_p2 = pnand %p1713_p0, %p315_p1 }
   0x5   : > { %v1723_v0 = vld [vmem:[%s2359_s6 + $0x2] sm:$0x3] (!%p316_p2)  ;;  %vm470_vm0 = vcmask (!%p316_p2), 1041408   ;;  %v2145_v1 = vld [vmem:[%s2359_s6 + $0x8] sm:$0x3] (!%p316_p2)  ;;  %p378_p3 = scmp.lt.s32.totalorder (!%p316_p2), %s1709_s28, 1 }
   0x6   : > { %319 = sbr.rel (%p316_p2) target bundleno = 328 (0x148), region = 48  ;;  %2023 = vmatprep.subr.msk.bf16.mxu1 (!%p316_p2), %vm470_vm0, %v1723_v0  ;;  %2027 = vmatprep.subr.msk.bf16.mxu0 (!%p316_p2), %vm470_vm0, %v2145_v1  ;;  %v472_v2 = vsel (!%p316_p2), %vm470_vm0, %v1723_v0, 0  ;;  %v2153_v3 = vsel (!%p316_p2), %vm470_vm0, %v2145_v1, 0  ;;  %v426_v4 = vld [vmem:[%s2359_s6] sm:$0x3] (!%p316_p2)  ;;  %vm457_vm1 = vcmask (!%p316_p2), 31744  }
   0x7   : > { %1868 = vmatpush3.bf16.msra.mxu1 (!%p316_p2), %v472_v2  ;;  %1908 = vmatpush3.bf16.msra.mxu0 (!%p316_p2), %v2153_v3  ;;  %v1767_v5 = vld [vmem:[%s2359_s6 + $0xa] sm:$0x3] (!%p316_p2)  ;;  %v572_v9 = vsel (!%p316_p2), %vm470_vm0, %v426_v4, 0  ;;  %v1776_v10 = vld [vmem:[%s2359_s6 + $0xc] sm:$0x3] (!%p316_p2)  ;;  %vm1497_vm2 = vcmask (!%p316_p2), 27648  }
   0x8   : > { %2024 = vmatprep.subr.msk.bf16.mxu1 (!%p316_p2), %vm470_vm0, %v426_v4  ;;  %2029 = vmatprep.subr.msk.bf16.mxu0 (!%p316_p2), %vm470_vm0, %v1767_v5  ;;  %v1740_v11 = vld [vmem:[%s2359_s6 + $0x4] sm:$0x3] (!%p316_p2)  ;;  %v1036_v13 = vsel (!%p316_p2), %vm470_vm0, %v1767_v5, 0  ;;  %v1154_v19 = vsel (!%p316_p2), %vm470_vm0, %v1776_v10, 0  ;;  %v1785_v21 = vld [vmem:[%s2359_s6 + $0xe] sm:$0x3] (!%p316_p2) }
   0x9   : > { %v682_v24 = vsel (!%p316_p2), %vm470_vm0, %v1740_v11, 0  ;;  %v1749_v25 = vld [vmem:[%s2359_s6 + $0x6] sm:$0x3] (!%p316_p2)  ;;  %v1272_v31 = vsel (!%p316_p2), %vm470_vm0, %v1785_v21, 0  ;;  %v1794_v33 = vld [vmem:[%s2359_s6 + $0x10] sm:$0x3] (!%p316_p2) }
   0xa   : > { %v800_v36 = vsel (!%p316_p2), %vm470_vm0, %v1749_v25, 0  ;;  %v1390_v43 = vsel (!%p316_p2), %vm470_vm0, %v1794_v33, 0 }
   0xd   : > { %s2363_s28 = smov (!%p378_p3, %s1709_s28), 1 }
   0xe   : > { %s2167_s15 = smul.u32 36, %s2363_s28 }
  0x10   : > { %s2173_s18 = scalar_lea.vmem %s2354_s1, %s2167_s15  ;;  %s2179_s21 = scalar_lea.vmem %s2357_s4, %s2167_s15 }
  0x11   : > { %v2042_v6 = vld [vmem:[%s2173_s18] sm:$0xff]   ;;  %v2044_v8 = vld [vmem:[%s2173_s18 + $0x8] sm:$0xff]   ;;  %s2199_s30 = scalar_lea.vmem %s2358_s5, %s2167_s15  ;;  %v2046_v14 = vld [vmem:[%s2173_s18 + $0x10] sm:$0xff]   ;;  %s2210_s11 = scalar_lea.vmem %s2353_s0, %s2167_s15 }
  0x12   : > { %v2043_v7 = vld [vmem:[%s2179_s21] sm:$0xff]   ;;  %1869 = vmatprep.mubr.msk.bf16.mxu1 %vm457_vm1, %v2042_v6  ;;  %v2045_v12 = vld [vmem:[%s2179_s21 + $0x8] sm:$0xff]   ;;  %v2047_v16 = vld [vmem:[%s2173_s18 + $0x18] sm:$0xff]   ;;  %s2229_s17 = scalar_lea.vmem %s2355_s2, %s2167_s15  ;;  %s2249_s24 = scalar_lea.vmem %s2356_s3, %s2167_s15 }
  0x13   : > { %1909 = vmatprep.mubr.msk.bf16.mxu0 %vm457_vm1, %v2043_v7  ;;  %1870 = vmatmul.mubr.msk.bf16.vlgmr.msra.gmra.mrb[0].mxu1 %vm457_vm1, %v2044_v8  ;;  %v2048_v15 = vld [vmem:[%s2199_s30] sm:$0xff]   ;;  %v2049_v18 = vld [vmem:[%s2199_s30 + $0x8] sm:$0xff]   ;;  %v2052_v20 = vld [vmem:[%s2199_s30 + $0x10] sm:$0xff]  }
  0x14   : > { %1878 = vmatpush3.bf16.msra.mxu1 %v572_v9  ;;  %1910 = vmatmul.mubr.msk.bf16.vlgmr.msra.gmra.mrb[0].mxu0 %vm457_vm1, %v2045_v12  ;;  %v2050_v17 = vld [vmem:[%s2210_s11] sm:$0xff]   ;;  %v2051_v22 = vld [vmem:[%s2210_s11 + $0x8] sm:$0xff]   ;;  %v2054_v23 = vld [vmem:[%s2210_s11 + $0x10] sm:$0xff]  }
  0x15   : > { %1918 = vmatpush3.bf16.msra.mxu0 %v1036_v13  ;;  %1873 = vmatprep.mubr.msk.bf16.mxu1 %vm457_vm1, %v2046_v14  ;;  %v2053_v26 = vld [vmem:[%s2199_s30 + $0x18] sm:$0xff]   ;;  %v2056_v27 = vld [vmem:[%s2210_s11 + $0x4] sm:$0xff]   ;;  %v2057_v30 = vld [vmem:[%s2210_s11 + $0xc] sm:$0xff]  }
  0x16   : > { %2030 = vmatprep.subr.msk.bf16.mxu0 %vm470_vm0, %v1776_v10  ;;  %2025 = vmatprep.subr.msk.bf16.mxu1 %vm470_vm0, %v1740_v11  ;;  %v2055_v28 = vld [vmem:[%s2210_s11 + $0x18] sm:$0xff]   ;;  %v2058_v29 = vld [vmem:[%s2229_s17] sm:$0xff]   ;;  %v2059_v34 = vld [vmem:[%s2229_s17 + $0x8] sm:$0xff]  }
  0x17   : > { %1919 = vmatprep.mubr.msk.bf16.mxu0 %vm457_vm1, %v2048_v15  ;;  %v2060_v32 = vld [vmem:[%s2210_s11 + $0x14] sm:$0xff]   ;;  %v2061_v37 = vld [vmem:[%s2210_s11 + $0x1c] sm:$0xff]   ;;  %v2064_v38 = vld [vmem:[%s2173_s18 + $0x4] sm:$0xff]  }
  0x18   : > { %v2062_v35 = vld [vmem:[%s2229_s17 + $0x10] sm:$0xff]   ;;  %v2063_v39 = vld [vmem:[%s2229_s17 + $0x18] sm:$0xff]   ;;  %v2066_v40 = vld [vmem:[%s2249_s24] sm:$0xff]  }
  0x19   : > { %v2065_v41 = vld [vmem:[%s2173_s18 + $0xc] sm:$0xff]   ;;  %v2068_v42 = vld [vmem:[%s2173_s18 + $0x14] sm:$0xff]   ;;  %v2069_v46 = vld [vmem:[%s2173_s18 + $0x1c] sm:$0xff]   ;;  %s1813_s18 = sshll.u32 %s2363_s28, 5 }
  0x1a   : > { %v2067_v44 = vld [vmem:[%s2249_s24 + $0x8] sm:$0xff]   ;;  %v2070_v45 = vld [vmem:[%s2249_s24 + $0x10] sm:$0xff]   ;;  %v2071_v48 = vld [vmem:[%s2249_s24 + $0x18] sm:$0xff]   ;;  %s2311_s30 = scalar_lea.vmem %s2360_s7, %s1813_s18 }
  0x1b   : > { %1874 = vmatmul.mubr.msk.bf16.gmra.mrb[4].mxu1 %vm457_vm1, %v2047_v16  ;;  %v2072_v47 = vld [vmem:[%s2229_s17 + $0x4] sm:$0xff]   ;;  %v2074_v49 = vld [vmem:[%s2179_s21 + $0x10] sm:$0xff]   ;;  %v2076_v52 = vld [vmem:[%s2179_s21 + $0x18] sm:$0xff]   ;;  %s1722_s21 = sshll.u32 %s2363_s28, 3 }
  0x1c   : > { %1879 = vmatprep.mubr.msk.bf16.mxu1 %vm457_vm1, %v2050_v17  ;;  %v2073_v50 = vld [vmem:[%s2229_s17 + $0xc] sm:$0xff]   ;;  %v2075_v51 = vld [vmem:[%s2229_s17 + $0x14] sm:$0xff]   ;;  %v2077_v53 = vld [vmem:[%s2229_s17 + $0x1c] sm:$0xff]   ;;  %s416_s11 = scalar_lea.vmem %s2361_s8, %s1722_s21 }
  0x20   : > { %1920 = vmatmul.mubr.msk.bf16.vlgmr.msra.gmra.mrb[0].mxu0 %vm457_vm1, %v2049_v18 }
  0x21   : > { %1928 = vmatpush3.bf16.msra.mxu0 %v1154_v19  ;;  %1923 = vmatprep.mubr.msk.bf16.mxu0 %vm457_vm1, %v2052_v20 }
  0x22   : > { %2031 = vmatprep.subr.msk.bf16.mxu0 %vm470_vm0, %v1785_v21 }
  0x23   : > { %1880 = vmatmul.mubr.msk.bf16.vlgmr.msra.gmra.mrb[0].mxu1 %vm457_vm1, %v2051_v22 }
  0x24   : > { %1888 = vmatpush3.bf16.msra.mxu1 %v682_v24  ;;  %1883 = vmatprep.mubr.msk.bf16.mxu1 %vm457_vm1, %v2054_v23 }
  0x25   : > { %2026 = vmatprep.subr.msk.bf16.mxu1 %vm470_vm0, %v1749_v25 }
  0x28   : > { %1924 = vmatmul.mubr.msk.bf16.gmra.mrb[4].mxu0 %vm457_vm1, %v2053_v26 }
  0x29   : > { %1929 = vmatprep.mubr.msk.bf16.mxu0 %vm457_vm1, %v2056_v27 }
  0x2b   : > { %1884 = vmatmul.mubr.msk.bf16.gmra.mrb[4].mxu1 %vm457_vm1, %v2055_v28 }
  0x2c   : > { %1889 = vmatprep.mubr.msk.bf16.mxu1 %vm457_vm1, %v2058_v29 }
  0x30   : > { %1930 = vmatmul.mubr.msk.bf16.vlgmr.msra.gmra.mrb[0].mxu0 %vm457_vm1, %v2057_v30 }
  0x31   : > { %1938 = vmatpush3.bf16.msra.mxu0 %v1272_v31  ;;  %1933 = vmatprep.mubr.msk.bf16.mxu0 %vm457_vm1, %v2060_v32 }
  0x32   : > { %2032 = vmatprep.subr.msk.bf16.mxu0 %vm470_vm0, %v1794_v33 }
  0x33   : > { %1890 = vmatmul.mubr.msk.bf16.vlgmr.msra.gmra.mrb[0].mxu1 %vm457_vm1, %v2059_v34 }
  0x34   : > { %1898 = vmatpush3.bf16.msra.mxu1 %v800_v36  ;;  %1893 = vmatprep.mubr.msk.bf16.mxu1 %vm457_vm1, %v2062_v35 }
  0x35   : > { %2028 = vmatprep.subr.msk.bf16.mxu1 %vm470_vm0, %v2145_v1 }
  0x38   : > { %1934 = vmatmul.mubr.msk.bf16.gmra.mrb[4].mxu0 %vm457_vm1, %v2061_v37 }
  0x39   : > { %1939 = vmatprep.mubr.msk.bf16.mxu0 %vm457_vm1, %v2064_v38 }
  0x3b   : > { %1894 = vmatmul.mubr.msk.bf16.gmra.mrb[4].mxu1 %vm457_vm1, %v2063_v39 }
  0x3c   : > { %1899 = vmatprep.mubr.msk.bf16.mxu1 %vm457_vm1, %v2066_v40 }
  0x40   : > { %1940 = vmatmul.mubr.msk.bf16.vlgmr.msra.gmra.mrb[0].mxu0 %vm457_vm1, %v2065_v41 }
  0x41   : > { %1948 = vmatpush3.bf16.msra.mxu0 %v1390_v43  ;;  %1943 = vmatprep.mubr.msk.bf16.mxu0 %vm457_vm1, %v2068_v42 }
  0x43   : > { %1900 = vmatmul.mubr.msk.bf16.vlgmr.msra.gmra.mrb[0].mxu1 %vm457_vm1, %v2067_v44 }
  0x44   : > { %1958 = vmatpush3.bf16.msra.mxu1 %v2153_v3  ;;  %1903 = vmatprep.mubr.msk.bf16.mxu1 %vm457_vm1, %v2070_v45 }
  0x48   : > { %1944 = vmatmul.mubr.msk.bf16.gmra.mrb[4].mxu0 %vm457_vm1, %v2069_v46 }
  0x49   : > { %1949 = vmatprep.mubr.msk.bf16.mxu0 %vm457_vm1, %v2072_v47 }
  0x4b   : > { %1904 = vmatmul.mubr.msk.bf16.gmra.mrb[4].mxu1 %vm457_vm1, %v2071_v48 }
  0x4c   : > { %1913 = vmatprep.mubr.msk.bf16.mxu1 %vm457_vm1, %v2074_v49 }
  0x50   : > { %1950 = vmatmul.mubr.msk.bf16.vlgmr.msra.gmra.mrb[0].mxu0 %vm457_vm1, %v2073_v50 }
  0x51   : > { %1953 = vmatprep.mubr.msk.bf16.mxu0 %vm457_vm1, %v2075_v51 }
  0x57   : > { %1914 = vmatmul.mubr.msk.bf16.vlgmr.msra.gmra.mrb[4].mxu1 %vm457_vm1, %v2076_v52 }
  0x58   : > { %1954 = vmatmul.mubr.msk.bf16.gmra.mrb[4].mxu0 %vm457_vm1, %v2077_v53 }
 0x116   : > { %v1901_v54 = vpop.f32.mrb[0].mxu1 }
 0x117   : > { %v836_v55 = vpop.f32.mrb[1].mxu1 }
 0x118   : > { %v1902_v56 = vpop.f32.mrb[2].mxu1 }
 0x119   : > { %v839_v57 = vpop.f32.mrb[3].mxu1 }
 0x123   : > { %v1951_v58 = vpop.f32.mrb[0].mxu0 }
 0x124   : > { %v1959_v59 = vadd.f32 %v1951_v58, %v1901_v54  ;;  %v1426_v60 = vpop.f32.mrb[1].mxu0 }
 0x125   : > { %v1960_v61 = vadd.f32 %v1426_v60, %v836_v55  ;;  %v1952_v62 = vpop.f32.mrb[2].mxu0 }
 0x126   : > { %v1816_v63 = vpack.c.bf16 %v1959_v59, %v1959_v59  ;;  %v1961_v0 = vadd.f32 %v1952_v62, %v1902_v56  ;;  %v1429_v1 = vpop.f32.mrb[3].mxu0  ;;  %v1529_v5 = vmul.f32 %v1959_v59, %v1959_v59  ;;  %v1509_v14 = vsel %vm457_vm1, %v1959_v59, 0.0 }
 0x127   : > { %v1814_v2 = vpack.c.bf16 %v1960_v61, %v1960_v61  ;;  %v1527_v3 = vmul.f32 %v1960_v61, %v1960_v61  ;;  %v1962_v4 = vadd.f32 %v1429_v1, %v839_v57  ;;  %v1506_v7 = vsel %vm457_vm1, %v1960_v61, 0.0 }
 0x128   : > { %1500 = vst.msk [vmem:[%s2311_s30 + $0x8] sm:$0xf] %vm1497_vm2, %v1816_v63  ;;  %v1817_v6 = vpack.c.bf16 %v1961_v0, %v1961_v0  ;;  %v1530_v11 = vmul.f32 %v1961_v0, %v1961_v0  ;;  %v1538_v24 = vsel %vm457_vm1, %v1529_v5, 0.0  ;;  %v1511_v28 = vsel %vm457_vm1, %v1961_v0, 0.0 }
 0x129   : > { %1498 = vst.msk [vmem:[%s2311_s30] sm:$0xf] %vm1497_vm2, %v1814_v2  ;;  %v1815_v8 = vpack.c.bf16 %v1962_v4, %v1962_v4  ;;  %v1507_v9 = vsel %vm457_vm1, %v1962_v4, 0.0  ;;  %v1528_v10 = vmul.f32 %v1962_v4, %v1962_v4  ;;  %v1535_v15 = vsel %vm457_vm1, %v1527_v3, 0.0 }
 0x12a   : > { %1501 = vst.msk [vmem:[%s2311_s30 + $0xc] sm:$0xf] %vm1497_vm2, %v1817_v6  ;;  %v1508_v12 = vadd.f32 %v1507_v9, %v1506_v7  ;;  %v1915_v13 = vpop.f32.mrb[4].mxu1  ;;  %v1540_v29 = vsel %vm457_vm1, %v1530_v11, 0.0  ;;  %v1556_v61 = vlaneseq }
 0x12b   : > { %1499 = vst.msk [vmem:[%s2311_s30 + $0x4] sm:$0xf] %vm1497_vm2, %v1815_v8  ;;  %v1536_v16 = vsel %vm457_vm1, %v1528_v10, 0.0  ;;  %v1955_v17 = vpop.f32.mrb[4].mxu0  ;;  %v970_v18 = vpop.f32.mrb[5].mxu1 }
 0x12c   : > { %v1510_v19 = vadd.f32 %v1509_v14, %v1508_v12  ;;  %v1537_v20 = vadd.f32 %v1536_v16, %v1535_v15  ;;  %v1963_v21 = vadd.f32 %v1955_v17, %v1915_v13  ;;  %v1442_v22 = vpop.f32.mrb[5].mxu0  ;;  %v1916_v23 = vpop.f32.mrb[6].mxu1  ;;  %v1557_v2 = vshrl.u32 %v1556_v61, 7 }
 0x12d   : > { %v1964_v25 = vadd.f32 %v1442_v22, %v970_v18  ;;  %v1956_v26 = vpop.f32.mrb[6].mxu0  ;;  %v973_v27 = vpop.f32.mrb[7].mxu1 }
 0x12e   : > { %v1539_v30 = vadd.f32 %v1538_v24, %v1537_v20  ;;  %v1820_v31 = vpack.c.bf16 %v1963_v21, %v1963_v21  ;;  %v1445_v32 = vpop.f32.mrb[7].mxu0  ;;  %v1512_v34 = vadd.f32 %v1511_v28, %v1510_v19  ;;  %v1965_v38 = vadd.f32 %v1956_v26, %v1916_v23 }
 0x12f   : > { %v1818_v33 = vpack.c.bf16 %v1964_v25, %v1964_v25  ;;  %v1513_v35 = vsel %vm457_vm1, %v1964_v25, 0.0  ;;  %v1531_v36 = vmul.f32 %v1964_v25, %v1964_v25  ;;  %v1966_v39 = vadd.f32 %v1445_v32, %v973_v27 }
 0x130   : > { %1504 = vst.msk [vmem:[%s2311_s30 + $0x18] sm:$0xf] %vm1497_vm2, %v1820_v31  ;;  %v1541_v37 = vadd.f32 %v1540_v29, %v1539_v30  ;;  %v1514_v40 = vadd.f32 %v1513_v35, %v1512_v34  ;;  %v1821_v43 = vpack.c.bf16 %v1965_v38, %v1965_v38  ;;  %v1533_v44 = vmul.f32 %v1963_v21, %v1963_v21 }
 0x131   : > { %1502 = vst.msk [vmem:[%s2311_s30 + $0x10] sm:$0xf] %vm1497_vm2, %v1818_v33  ;;  %v1542_v41 = vsel %vm457_vm1, %v1531_v36, 0.0  ;;  %v1819_v45 = vpack.c.bf16 %v1966_v39, %v1966_v39  ;;  %v1515_v46 = vsel %vm457_vm1, %v1966_v39, 0.0  ;;  %v1532_v47 = vmul.f32 %v1966_v39, %v1966_v39 }
 0x132   : > { %v1543_v42 = vadd.f32 %v1542_v41, %v1541_v37  ;;  %1505 = vst.msk [vmem:[%s2311_s30 + $0x1c] sm:$0xf] %vm1497_vm2, %v1821_v43  ;;  %v1516_v48 = vadd.f32 %v1515_v46, %v1514_v40  ;;  %v1517_v49 = vsel %vm457_vm1, %v1963_v21, 0.0  ;;  %v1534_v50 = vmul.f32 %v1965_v38, %v1965_v38 }
 0x133   : > { %1503 = vst.msk [vmem:[%s2311_s30 + $0x14] sm:$0xf] %vm1497_vm2, %v1819_v45  ;;  %v1544_v51 = vsel %vm457_vm1, %v1532_v47, 0.0  ;;  %v1546_v54 = vsel %vm457_vm1, %v1533_v44, 0.0  ;;  %v1519_v55 = vsel %vm457_vm1, %v1965_v38, 0.0  ;;  %vm1558_vm3 = vcmp.eq.s32.totalorder %v1557_v2, 0 }
 0x134   : > { %v1518_v52 = vadd.f32 %v1517_v49, %v1516_v48  ;;  %v1545_v53 = vadd.f32 %v1544_v51, %v1543_v42  ;;  %v1548_v58 = vsel %vm457_vm1, %v1534_v50, 0.0  ;;  %vm1560_vm4 = vcmp.eq.s32.totalorder %v1557_v2, 1 }
 0x136   : > { %v1520_v56 = vadd.f32 %v1519_v55, %v1518_v52  ;;  %v1547_v57 = vadd.f32 %v1546_v54, %v1545_v53 }
 0x138   : > { %v1521_v59 = vrot.slane %v1520_v56, 4  ;;  %v1549_v60 = vadd.f32 %v1548_v58, %v1547_v57 }
 0x13a   : > { %v1522_v62 = vadd.f32 %v1521_v59, %v1520_v56  ;;  %v1550_v63 = vrot.slane %v1549_v60, 4 }
 0x13c   : > { %v1523_v0 = vrot.slane %v1522_v62, 2  ;;  %v1551_v1 = vadd.f32 %v1550_v63, %v1549_v60 }
 0x13e   : > { %v1524_v3 = vadd.f32 %v1523_v0, %v1522_v62  ;;  %v1552_v4 = vrot.slane %v1551_v1, 2 }
 0x140   : > { %v1525_v5 = vrot.slane %v1524_v3, 1  ;;  %v1553_v6 = vadd.f32 %v1552_v4, %v1551_v1 }
 0x142   : > { %v1526_v7 = vadd.f32 %v1525_v5, %v1524_v3  ;;  %v1554_v8 = vrot.slane %v1553_v6, 1 }
 0x144   : > { %v1555_v9 = vadd.f32 %v1554_v8, %v1553_v6  ;;  %v1559_v10 = vsel %vm1558_vm3, %v1526_v7, 0.0 }
 0x146   : > { %v1561_v11 = vsel %vm1560_vm4, %v1555_v9, %v1559_v10 }
 0x147   : > { %1562 = vst.msk [vmem:[%s416_s11] sm:$0xff] %vm457_vm1, %v1561_v11 }
 0x148 PF: > { %s19_s27 = sadd.s32 1, %s2084_s27  }
 0x149   : > { %p16_p4 = scmp.ge.s32.totalorder %s19_s27, 4  }
 0x14b   :  { %18 = sbr.rel (!%p16_p4) target bundleno = 1 (0x1), region = 113 }

// kernel: resnet_block_forward.15
= control target key start
LH: loop header
LB: loop body
LE: loop exit
PB: predicated region body
PF: predicated region fallthrough
CT: control target
= control target key end

     0   :  { %s554_s12 = smov 0   ;;  %s617_s0 = inlined_call_operand.vmem [shape: f32[128,4], index: 0, kind: input, shape index: {}]   ;;  %s618_s1 = inlined_call_operand.vmem [shape: bf16[4,16], index: 1, kind: input, shape index: {}]   ;;  %s619_s2 = inlined_call_operand.vmem [shape: bf16[128,16], index: 2, kind: output, shape index: {0}]   ;;  %s620_s3 = inlined_call_operand.vmem [shape: f32[16,16], index: 3, kind: output, shape index: {1}]  }
   0x1 LB: > { %s560_s13 = sadd.s32 4294967295, %s532_s12   ;;  %p471_p0 = scmp.ge.s32.totalorder %s532_s12, 1  ;;  %s532_s12 = sphi %s554_s12, %s14_s12  }
   0x2   : > { %p141_p1 = scmp.lt.s32.totalorder %s532_s12, 3 }
   0x4   : > { %p142_p2 = pnand %p471_p0, %p141_p1 }
   0x5   : > { %v198_v0 = vld [vmem:[%s618_s1] sm:$0x3] (!%p142_p2)  ;;  %vm212_vm0 = vcmask (!%p142_p2), 1041408   ;;  %s472_s16 = sshll.u32 (!%p142_p2), %s560_s13, 3  ;;  %vm199_vm1 = vcmask (!%p142_p2), 31744   ;;  %vm313_vm2 = vcmask (!%p142_p2), 125952  }
   0x6   : > { %145 = sbr.rel (%p142_p2) target bundleno = 266 (0x10a), region = 28  ;;  %516 = vmatprep.subr.msk.bf16.mxu0 (!%p142_p2), %vm212_vm0, %v198_v0  ;;  %v214_v1 = vsel (!%p142_p2), %vm212_vm0, %v198_v0, 0  ;;  %p170_p3 = scmp.lt.s32.totalorder (!%p142_p2), %s472_s16, 15  ;;  %517 = vmatprep.subr.msk.bf16.mxu1 (!%p142_p2), %vm212_vm0, %v198_v0  ;;  %vm322_vm3 = vcmask (!%p142_p2), 130048  }
   0x7   : > { %505 = vmatpush3.bf16.msra.mxu0 (!%p142_p2), %v214_v1  ;;  %515 = vmatpush3.bf16.msra.mxu1 (!%p142_p2), %v214_v1  ;;  %p181_p4 = scmp.lt.s32.totalorder (!%p142_p2), %s560_s13, 1 }
   0xd   : > { %s622_s16 = smov (!%p170_p3, %s472_s16), 15  ;;  %s624_s13 = smov (!%p181_p4, %s560_s13), 1 }
   0xe   : > { %s473_s17 = sshll.u32 %s622_s16, 3  ;;  %s475_s21 = sshll.u32 %s622_s16, 2 }
   0xf   : > { %s173_s20 = scalar_lea.vmem %s617_s0, %s473_s17  ;;  %s574_s24 = scalar_lea.vmem %s619_s2, %s475_s21 }
  0x10   : > { %v186_v2 = vld [vmem:[%s173_s20] sm:$0xff]  ;;  %v187_v3 = vld [vmem:[%s173_s20 + $0x8] sm:$0xff]  ;;  %v188_v4 = vld [vmem:[%s173_s20 + $0x10] sm:$0xff]  ;;  %s476_s25 = sshll.u32 %s624_s13, 3 }
  0x11   : > { %v194_v5 = vpack.c.bf16 %v187_v3, %v186_v2  ;;  %v189_v6 = vld [vmem:[%s173_s20 + $0x18] sm:$0xff]  ;;  %v190_v7 = vld [vmem:[%s173_s20 + $0x20] sm:$0xff]  ;;  %v191_v8 = vld [vmem:[%s173_s20 + $0x28] sm:$0xff]  ;;  %s184_s28 = scalar_lea.vmem %s620_s3, %s476_s25 }
  0x12   : > { %v195_v9 = vpack.c.bf16 %v189_v6, %v188_v4  ;;  %v196_v10 = vpack.c.bf16 %v191_v8, %v190_v7  ;;  %v192_v11 = vld [vmem:[%s173_s20 + $0x30] sm:$0xff]  ;;  %v193_v12 = vld [vmem:[%s173_s20 + $0x38] sm:$0xff] }
  0x13   : > { %506 = vmatprep.mubr.msk.bf16.mxu0 %vm199_vm1, %v194_v5  ;;  %v197_v13 = vpack.c.bf16 %v193_v12, %v192_v11  ;;  %v373_v5 = vlaneseq }
  0x14   : > { %507 = vmatmul.mubr.msk.bf16.vlgmr.msra.gmra.mrb[0].mxu0 %vm199_vm1, %v195_v9  ;;  %510 = vmatprep.mubr.msk.bf16.mxu1 %vm199_vm1, %v196_v10 }
  0x15   : > { %511 = vmatmul.mubr.msk.bf16.vlgmr.msra.gmra.mrb[0].mxu1 %vm199_vm1, %v197_v13  ;;  %v374_v10 = vshrl.u32 %v373_v5, 7 }
  0x17   : > { %vm375_vm4 = vcmp.eq.s32.totalorder %v374_v10, 0  ;;  %vm377_vm5 = vcmp.eq.s32.totalorder %v374_v10, 1 }
  0xe7   : > { %v508_v14 = vpop.f32.mrb[0].mxu0 }
  0xe8   : > { %v493_v15 = vpack.c.bf16 %v508_v14, %v508_v14  ;;  %v250_v16 = vpop.f32.mrb[1].mxu0  ;;  %v512_v17 = vpop.f32.mrb[0].mxu1  ;;  %v346_v23 = vmul.f32 %v508_v14, %v508_v14  ;;  %v326_v32 = vsel %vm322_vm3, %v508_v14, 0.0 }
  0xe9   : > { %v491_v18 = vpack.c.bf16 %v250_v16, %v250_v16  ;;  %v344_v19 = vmul.f32 %v250_v16, %v250_v16  ;;  %v509_v20 = vpop.f32.mrb[2].mxu0  ;;  %v497_v21 = vpack.c.bf16 %v512_v17, %v512_v17  ;;  %v266_v22 = vpop.f32.mrb[1].mxu1  ;;  %v323_v27 = vsel %vm322_vm3, %v250_v16, 0.0 }
  0xea   : > { %316 = vst.msk [vmem:[%s574_s24 + $0x8] sm:$0xf] %vm313_vm2, %v493_v15  ;;  %v494_v24 = vpack.c.bf16 %v509_v20, %v509_v20  ;;  %v253_v25 = vpop.f32.mrb[3].mxu0  ;;  %v513_v26 = vpop.f32.mrb[2].mxu1  ;;  %v347_v33 = vmul.f32 %v509_v20, %v509_v20  ;;  %v495_v37 = vpack.c.bf16 %v266_v22, %v266_v22  ;;  %v348_v38 = vmul.f32 %v266_v22, %v266_v22 }
  0xeb   : > { %314 = vst.msk [vmem:[%s574_s24] sm:$0xf] %vm313_vm2, %v491_v18  ;;  %v492_v28 = vpack.c.bf16 %v253_v25, %v253_v25  ;;  %v324_v29 = vsel %vm322_vm3, %v253_v25, 0.0  ;;  %v345_v30 = vmul.f32 %v253_v25, %v253_v25  ;;  %320 = vst.msk [vmem:[%s574_s24 + $0x18] sm:$0xf] %vm313_vm2, %v497_v21  ;;  %v269_v31 = vpop.f32.mrb[3].mxu1  ;;  %v498_v41 = vpack.c.bf16 %v513_v26, %v513_v26 }
  0xec   : > { %317 = vst.msk [vmem:[%s574_s24 + $0xc] sm:$0xf] %vm313_vm2, %v494_v24  ;;  %v325_v34 = vadd.f32 %v324_v29, %v323_v27  ;;  %v352_v35 = vsel %vm322_vm3, %v344_v19, 0.0  ;;  %v355_v42 = vsel %vm322_vm3, %v346_v23, 0.0  ;;  %v328_v43 = vsel %vm322_vm3, %v509_v20, 0.0 }
  0xed   : > { %315 = vst.msk [vmem:[%s574_s24 + $0x4] sm:$0xf] %vm313_vm2, %v492_v28  ;;  %v353_v36 = vsel %vm322_vm3, %v345_v30, 0.0  ;;  %318 = vst.msk [vmem:[%s574_s24 + $0x10] sm:$0xf] %vm313_vm2, %v495_v37  ;;  %v330_v44 = vsel %vm322_vm3, %v266_v22, 0.0  ;;  %v496_v45 = vpack.c.bf16 %v269_v31, %v269_v31  ;;  %v349_v50 = vmul.f32 %v269_v31, %v269_v31 }
  0xee   : > { %v327_v39 = vadd.f32 %v326_v32, %v325_v34  ;;  %v354_v40 = vadd.f32 %v353_v36, %v352_v35  ;;  %321 = vst.msk [vmem:[%s574_s24 + $0x1c] sm:$0xf] %vm313_vm2, %v498_v41  ;;  %v357_v48 = vsel %vm322_vm3, %v347_v33, 0.0  ;;  %v359_v49 = vsel %vm322_vm3, %v348_v38, 0.0 }
  0xef   : > { %319 = vst.msk [vmem:[%s574_s24 + $0x14] sm:$0xf] %vm313_vm2, %v496_v45  ;;  %v350_v53 = vmul.f32 %v512_v17, %v512_v17  ;;  %v332_v54 = vsel %vm322_vm3, %v269_v31, 0.0  ;;  %v334_v57 = vsel %vm322_vm3, %v512_v17, 0.0  ;;  %v351_v58 = vmul.f32 %v513_v26, %v513_v26 }
  0xf0   : > { %v356_v46 = vadd.f32 %v355_v42, %v354_v40  ;;  %v329_v47 = vadd.f32 %v328_v43, %v327_v39  ;;  %v361_v59 = vsel %vm322_vm3, %v349_v50, 0.0  ;;  %v336_v63 = vsel %vm322_vm3, %v513_v26, 0.0 }
  0xf1   : > { %v363_v62 = vsel %vm322_vm3, %v350_v53, 0.0  ;;  %v365_v2 = vsel %vm322_vm3, %v351_v58, 0.0 }
  0xf2   : > { %v331_v51 = vadd.f32 %v330_v44, %v329_v47  ;;  %v358_v52 = vadd.f32 %v357_v48, %v356_v46 }
  0xf4   : > { %v360_v55 = vadd.f32 %v359_v49, %v358_v52  ;;  %v333_v56 = vadd.f32 %v332_v54, %v331_v51 }
  0xf6   : > { %v335_v60 = vadd.f32 %v334_v57, %v333_v56  ;;  %v362_v61 = vadd.f32 %v361_v59, %v360_v55 }
  0xf8   : > { %v337_v0 = vadd.f32 %v336_v63, %v335_v60  ;;  %v364_v1 = vadd.f32 %v363_v62, %v362_v61 }
  0xfa   : > { %v338_v3 = vrot.slane %v337_v0, 4  ;;  %v366_v4 = vadd.f32 %v365_v2, %v364_v1 }
  0xfc   : > { %v339_v6 = vadd.f32 %v338_v3, %v337_v0  ;;  %v367_v7 = vrot.slane %v366_v4, 4 }
  0xfe   : > { %v340_v8 = vrot.slane %v339_v6, 2  ;;  %v368_v9 = vadd.f32 %v367_v7, %v366_v4 }
 0x100   : > { %v341_v11 = vadd.f32 %v340_v8, %v339_v6  ;;  %v369_v12 = vrot.slane %v368_v9, 2 }
 0x102   : > { %v342_v13 = vrot.slane %v341_v11, 1  ;;  %v370_v14 = vadd.f32 %v369_v12, %v368_v9 }
 0x104   : > { %v343_v15 = vadd.f32 %v342_v13, %v341_v11  ;;  %v371_v16 = vrot.slane %v370_v14, 1 }
 0x106   : > { %v372_v17 = vadd.f32 %v371_v16, %v370_v14  ;;  %v376_v18 = vsel %vm375_vm4, %v343_v15, 0.0 }
 0x108   : > { %v378_v19 = vsel %vm377_vm5, %v372_v17, %v376_v18 }
 0x109   : > { %379 = vst.msk [vmem:[%s184_s28] sm:$0xff] %vm322_vm3, %v378_v19 }
 0x10a PF: > { %s14_s12 = sadd.s32 1, %s532_s12  }
 0x10b   : > { %p11_p5 = scmp.ge.s32.totalorder %s14_s12, 4  }
 0x10d   :  { %13 = sbr.rel (!%p11_p5) target bundleno = 1 (0x1), region = 70 }

// kernel: resnet_block_forward.17
= control target key start
LH: loop header
LB: loop body
LE: loop exit
PB: predicated region body
PF: predicated region fallthrough
CT: control target
= control target key end

     0   :  { %s581_s12 = smov 0   ;;  %s644_s0 = inlined_call_operand.vmem [shape: bf16[128,16], index: 0, kind: input, shape index: {}]   ;;  %s645_s1 = inlined_call_operand.vmem [shape: bf16[16,4], index: 1, kind: input, shape index: {}]   ;;  %s646_s2 = inlined_call_operand.vmem [shape: bf16[128,4], index: 2, kind: output, shape index: {0}]   ;;  %s647_s3 = inlined_call_operand.vmem [shape: f32[16,4], index: 3, kind: output, shape index: {1}]  }
   0x1 LB: > { %s587_s13 = sadd.s32 4294967295, %s559_s12   ;;  %p490_p0 = scmp.ge.s32.totalorder %s559_s12, 1  ;;  %s559_s12 = sphi %s581_s12, %s14_s12  }
   0x2   : > { %p141_p1 = scmp.lt.s32.totalorder %s559_s12, 3 }
   0x4   : > { %p142_p2 = pnand %p490_p0, %p141_p1 }
   0x5   : > { %v548_v0 = vld [vmem:[%s645_s1] sm:$0xff] (!%p142_p2)   ;;  %s491_s16 = sshll.u32 (!%p142_p2), %s587_s13, 3  ;;  %vm222_vm0 = vcmask (!%p142_p2), 130048   ;;  %vm332_vm1 = vcmask (!%p142_p2), 27648   ;;  %vm341_vm2 = vcmask (!%p142_p2), 31744   ;;  %p181_p4 = scmp.lt.s32.totalorder (!%p142_p2), %s587_s13, 1  ;;  %v392_v60 = vlaneseq (!%p142_p2) }
   0x6   : > { %145 = sbr.rel (%p142_p2) target bundleno = 264 (0x108), region = 28  ;;  %p170_p3 = scmp.lt.s32.totalorder (!%p142_p2), %s491_s16, 15  ;;  %528 = vmatprep.subr.bf16.mxu0 (!%p142_p2), %v548_v0  ;;  %538 = vmatprep.subr.bf16.mxu1 (!%p142_p2), %v548_v0 }
   0x7   : > { %529 = vmatpush3.bf16.msra.mxu0 (!%p142_p2), %v548_v0  ;;  %539 = vmatpush3.bf16.msra.mxu1 (!%p142_p2), %v548_v0 }
   0xd   : > { %s649_s16 = smov (!%p170_p3, %s491_s16), 15  ;;  %s651_s13 = smov (!%p181_p4, %s587_s13), 1 }
   0xe   : > { %s492_s17 = sshll.u32 %s649_s16, 2  ;;  %s495_s24 = sshll.u32 %s651_s13, 3 }
   0xf   : > { %s173_s20 = scalar_lea.vmem %s644_s0, %s492_s17  ;;  %s601_s23 = scalar_lea.vmem %s646_s2, %s492_s17 }
  0x10   : > { %v549_v1 = vld [vmem:[%s173_s20] sm:$0xff]   ;;  %v550_v2 = vld [vmem:[%s173_s20 + $0x8] sm:$0xff]   ;;  %v551_v3 = vld [vmem:[%s173_s20 + $0x10] sm:$0xff]   ;;  %s184_s27 = scalar_lea.vmem %s647_s3, %s495_s24 }
  0x11   : > { %530 = vmatprep.mubr.msk.bf16.mxu0 %vm222_vm0, %v549_v1  ;;  %v552_v4 = vld [vmem:[%s173_s20 + $0x18] sm:$0xff]   ;;  %534 = vmatprep.mubr.msk.bf16.mxu1 %vm222_vm0, %v551_v3  ;;  %v393_v1 = vshrl.u32 %v392_v60, 7 }
  0x12   : > { %531 = vmatmul.mubr.msk.bf16.vlgmr.msra.gmra.mrb[0].mxu0 %vm222_vm0, %v550_v2  ;;  %535 = vmatmul.mubr.msk.bf16.vlgmr.msra.gmra.mrb[0].mxu1 %vm222_vm0, %v552_v4 }
  0x13   : > { %vm394_vm3 = vcmp.eq.s32.totalorder %v393_v1, 0  ;;  %vm396_vm4 = vcmp.eq.s32.totalorder %v393_v1, 1 }
  0xe5   : > { %v532_v5 = vpop.f32.mrb[0].mxu0  ;;  %v536_v11 = vpop.f32.mrb[0].mxu1 }
  0xe6   : > { %v517_v6 = vpack.c.bf16 %v532_v5, %v532_v5  ;;  %v269_v7 = vpop.f32.mrb[1].mxu0  ;;  %v365_v12 = vmul.f32 %v532_v5, %v532_v5  ;;  %v285_v15 = vpop.f32.mrb[1].mxu1  ;;  %v345_v21 = vsel %vm341_vm2, %v532_v5, 0.0  ;;  %v521_v23 = vpack.c.bf16 %v536_v11, %v536_v11 }
  0xe7   : > { %v515_v8 = vpack.c.bf16 %v269_v7, %v269_v7  ;;  %v363_v9 = vmul.f32 %v269_v7, %v269_v7  ;;  %v533_v10 = vpop.f32.mrb[2].mxu0  ;;  %v342_v16 = vsel %vm341_vm2, %v269_v7, 0.0  ;;  %v537_v20 = vpop.f32.mrb[2].mxu1  ;;  %v519_v28 = vpack.c.bf16 %v285_v15, %v285_v15 }
  0xe8   : > { %335 = vst.msk [vmem:[%s601_s23 + $0x8] sm:$0xf] %vm332_vm1, %v517_v6  ;;  %v518_v13 = vpack.c.bf16 %v533_v10, %v533_v10  ;;  %v272_v14 = vpop.f32.mrb[3].mxu0  ;;  %v288_v24 = vpop.f32.mrb[3].mxu1  ;;  %v366_v26 = vmul.f32 %v533_v10, %v533_v10  ;;  %339 = vst.msk [vmem:[%s601_s23 + $0x18] sm:$0xf] %vm332_vm1, %v521_v23  ;;  %v367_v31 = vmul.f32 %v285_v15, %v285_v15 }
  0xe9   : > { %333 = vst.msk [vmem:[%s601_s23] sm:$0xf] %vm332_vm1, %v515_v8  ;;  %v516_v17 = vpack.c.bf16 %v272_v14, %v272_v14  ;;  %v343_v18 = vsel %vm341_vm2, %v272_v14, 0.0  ;;  %v364_v19 = vmul.f32 %v272_v14, %v272_v14  ;;  %v371_v25 = vsel %vm341_vm2, %v363_v9, 0.0  ;;  %337 = vst.msk [vmem:[%s601_s23 + $0x10] sm:$0xf] %vm332_vm1, %v519_v28 }
  0xea   : > { %336 = vst.msk [vmem:[%s601_s23 + $0xc] sm:$0xf] %vm332_vm1, %v518_v13  ;;  %v344_v22 = vadd.f32 %v343_v18, %v342_v16  ;;  %v522_v32 = vpack.c.bf16 %v537_v20, %v537_v20  ;;  %v374_v33 = vsel %vm341_vm2, %v365_v12, 0.0  ;;  %v347_v34 = vsel %vm341_vm2, %v533_v10, 0.0 }
  0xeb   : > { %334 = vst.msk [vmem:[%s601_s23 + $0x4] sm:$0xf] %vm332_vm1, %v516_v17  ;;  %v372_v27 = vsel %vm341_vm2, %v364_v19, 0.0  ;;  %v349_v35 = vsel %vm341_vm2, %v285_v15, 0.0  ;;  %v520_v36 = vpack.c.bf16 %v288_v24, %v288_v24  ;;  %v376_v39 = vsel %vm341_vm2, %v366_v26, 0.0 }
  0xec   : > { %v346_v29 = vadd.f32 %v345_v21, %v344_v22  ;;  %v373_v30 = vadd.f32 %v372_v27, %v371_v25  ;;  %340 = vst.msk [vmem:[%s601_s23 + $0x1c] sm:$0xf] %vm332_vm1, %v522_v32  ;;  %v378_v40 = vsel %vm341_vm2, %v367_v31, 0.0  ;;  %v368_v41 = vmul.f32 %v288_v24, %v288_v24 }
  0xed   : > { %338 = vst.msk [vmem:[%s601_s23 + $0x14] sm:$0xf] %vm332_vm1, %v520_v36  ;;  %v369_v44 = vmul.f32 %v536_v11, %v536_v11  ;;  %v351_v45 = vsel %vm341_vm2, %v288_v24, 0.0  ;;  %v353_v48 = vsel %vm341_vm2, %v536_v11, 0.0  ;;  %v370_v49 = vmul.f32 %v537_v20, %v537_v20 }
  0xee   : > { %v375_v37 = vadd.f32 %v374_v33, %v373_v30  ;;  %v348_v38 = vadd.f32 %v347_v34, %v346_v29  ;;  %v380_v50 = vsel %vm341_vm2, %v368_v41, 0.0  ;;  %v355_v54 = vsel %vm341_vm2, %v537_v20, 0.0 }
  0xef   : > { %v382_v53 = vsel %vm341_vm2, %v369_v44, 0.0  ;;  %v384_v57 = vsel %vm341_vm2, %v370_v49, 0.0 }
  0xf0   : > { %v350_v42 = vadd.f32 %v349_v35, %v348_v38  ;;  %v377_v43 = vadd.f32 %v376_v39, %v375_v37 }
  0xf2   : > { %v379_v46 = vadd.f32 %v378_v40, %v377_v43  ;;  %v352_v47 = vadd.f32 %v351_v45, %v350_v42 }
  0xf4   : > { %v354_v51 = vadd.f32 %v353_v48, %v352_v47  ;;  %v381_v52 = vadd.f32 %v380_v50, %v379_v46 }
  0xf6   : > { %v356_v55 = vadd.f32 %v355_v54, %v354_v51  ;;  %v383_v56 = vadd.f32 %v382_v53, %v381_v52 }
  0xf8   : > { %v357_v58 = vrot.slane %v356_v55, 4  ;;  %v385_v59 = vadd.f32 %v384_v57, %v383_v56 }
  0xfa   : > { %v358_v61 = vadd.f32 %v357_v58, %v356_v55  ;;  %v386_v62 = vrot.slane %v385_v59, 4 }
  0xfc   : > { %v359_v63 = vrot.slane %v358_v61, 2  ;;  %v387_v0 = vadd.f32 %v386_v62, %v385_v59 }
  0xfe   : > { %v360_v2 = vadd.f32 %v359_v63, %v358_v61  ;;  %v388_v3 = vrot.slane %v387_v0, 2 }
 0x100   : > { %v361_v4 = vrot.slane %v360_v2, 1  ;;  %v389_v5 = vadd.f32 %v388_v3, %v387_v0 }
 0x102   : > { %v362_v6 = vadd.f32 %v361_v4, %v360_v2  ;;  %v390_v7 = vrot.slane %v389_v5, 1 }
 0x104   : > { %v391_v8 = vadd.f32 %v390_v7, %v389_v5  ;;  %v395_v9 = vsel %vm394_vm3, %v362_v6, 0.0 }
 0x106   : > { %v397_v10 = vsel %vm396_vm4, %v391_v8, %v395_v9 }
 0x107   : > { %398 = vst.msk [vmem:[%s184_s27] sm:$0xff] %vm341_vm2, %v397_v10 }
 0x108 PF: > { %s14_s12 = sadd.s32 1, %s559_s12  }
 0x109   : > { %p11_p5 = scmp.ge.s32.totalorder %s14_s12, 4  }
 0x10b   :  { %13 = sbr.rel (!%p11_p5) target bundleno = 1 (0x1), region = 70 }

// kernel: resnet_block_forward.18
= control target key start
LH: loop header
LB: loop body
LE: loop exit
PB: predicated region body
PF: predicated region fallthrough
CT: control target
= control target key end

     0   :  { %s409_s12 = smov 0   ;;  %s447_s0 = inlined_call_operand.vmem [shape: bf16[128,4], index: 0, kind: input, shape index: {}]   ;;  %s448_s1 = inlined_call_operand.vmem [shape: f32[1,4], index: 1, kind: input, shape index: {}]   ;;  %s449_s2 = inlined_call_operand.vmem [shape: f32[1,4], index: 2, kind: input, shape index: {}]   ;;  %s450_s3 = inlined_call_operand.vmem [shape: bf16[128,4], index: 3, kind: output, shape index: {}]  }
   0x1 LB: > { %s325_s13 = sadd.s32 4294967295, %s387_s12   ;;  %p329_p0 = scmp.ge.s32.totalorder %s387_s12, 1  ;;  %s387_s12 = sphi %s409_s12, %s13_s12  }
   0x2   : > { %p138_p1 = scmp.lt.s32.totalorder %s387_s12, 3 }
   0x4   : > { %p139_p2 = pnand %p329_p0, %p138_p1 }
   0x5   : > { %s330_s14 = sshll.u32 (!%p139_p2), %s325_s13, 3  ;;  %v334_v0 = vld [vmem:[%s448_s1] ss:$0 sm:$0xff] (!%p139_p2)  ;;  %vm260_vm0 = vcmask (!%p139_p2), 27648  }
   0x6   : > { %142 = sbr.rel (%p139_p2) target bundleno = 31 (0x1f), region = 32  ;;  %p163_p3 = scmp.lt.s32.totalorder (!%p139_p2), %s330_s14, 15  ;;  %v335_v9 = vld [vmem:[%s449_s2] ss:$0 sm:$0xff] (!%p139_p2) }
   0xd   : > { %s452_s14 = smov (!%p163_p3, %s330_s14), 15 }
   0xe   : > { %s331_s15 = sshll.u32 %s452_s14, 2 }
   0xf   : > { %s166_s18 = scalar_lea.vmem %s447_s0, %s331_s15  ;;  %s172_s25 = scalar_lea.vmem %s450_s3, %s331_s15 }
  0x10   : > { %v355_v1 = vld [vmem:[%s166_s18] sm:$0xff]   ;;  %v370_v2 = vld [vmem:[%s166_s18 + $0x8] sm:$0xff]   ;;  %v371_v3 = vld [vmem:[%s166_s18 + $0x10] sm:$0xff]  }
  0x11   : > { %v356_v4 = vunpack.c.l.bf16 %v355_v1  ;;  %v357_v5 = vunpack.c.h.bf16 %v355_v1  ;;  %v360_v6 = vunpack.c.l.bf16 %v370_v2  ;;  %v361_v7 = vunpack.c.h.bf16 %v370_v2  ;;  %v372_v8 = vld [vmem:[%s166_s18 + $0x18] sm:$0xff]  }
  0x12   : > { %v364_v10 = vunpack.c.l.bf16 %v371_v3  ;;  %v365_v11 = vunpack.c.h.bf16 %v371_v3  ;;  %v368_v12 = vunpack.c.l.bf16 %v372_v8  ;;  %v369_v13 = vunpack.c.h.bf16 %v372_v8 }
  0x13   : > { %v197_v14 = vmul.f32 %v356_v4, %v334_v0  ;;  %v198_v15 = vmul.f32 %v357_v5, %v334_v0  ;;  %v199_v16 = vmul.f32 %v360_v6, %v334_v0  ;;  %v200_v17 = vmul.f32 %v361_v7, %v334_v0 }
  0x14   : > { %v201_v18 = vmul.f32 %v364_v10, %v334_v0  ;;  %v202_v19 = vmul.f32 %v365_v11, %v334_v0  ;;  %v203_v20 = vmul.f32 %v368_v12, %v334_v0  ;;  %v204_v21 = vmul.f32 %v369_v13, %v334_v0 }
  0x15   : > { %v212_v22 = vadd.f32 %v335_v9, %v197_v14  ;;  %v213_v23 = vadd.f32 %v335_v9, %v198_v15  ;;  %v214_v24 = vadd.f32 %v335_v9, %v199_v16  ;;  %v215_v25 = vadd.f32 %v335_v9, %v200_v17 }
  0x16   : > { %v216_v26 = vadd.f32 %v335_v9, %v201_v18  ;;  %v217_v27 = vadd.f32 %v335_v9, %v202_v19  ;;  %v218_v28 = vadd.f32 %v335_v9, %v203_v20  ;;  %v219_v29 = vadd.f32 %v335_v9, %v204_v21 }
  0x17   : > { %v220_v30 = vmax.f32 %v212_v22, 0.0  ;;  %v221_v31 = vmax.f32 %v213_v23, 0.0  ;;  %v222_v32 = vmax.f32 %v214_v24, 0.0  ;;  %v223_v33 = vmax.f32 %v215_v25, 0.0 }
  0x18   : > { %v224_v34 = vmax.f32 %v216_v26, 0.0  ;;  %v225_v35 = vmax.f32 %v217_v27, 0.0  ;;  %v226_v36 = vmax.f32 %v218_v28, 0.0  ;;  %v227_v37 = vmax.f32 %v219_v29, 0.0 }
  0x19   : > { %v346_v38 = vpack.c.bf16 %v220_v30, %v220_v30  ;;  %v347_v39 = vpack.c.bf16 %v221_v31, %v221_v31  ;;  %v348_v40 = vpack.c.bf16 %v222_v32, %v222_v32  ;;  %v349_v41 = vpack.c.bf16 %v223_v33, %v223_v33 }
  0x1a   : > { %v350_v42 = vpack.c.bf16 %v224_v34, %v224_v34  ;;  %v351_v43 = vpack.c.bf16 %v225_v35, %v225_v35  ;;  %v352_v44 = vpack.c.bf16 %v226_v36, %v226_v36  ;;  %v353_v45 = vpack.c.bf16 %v227_v37, %v227_v37 }
  0x1b   : > { %261 = vst.msk [vmem:[%s172_s25] sm:$0xf] %vm260_vm0, %v346_v38  ;;  %262 = vst.msk [vmem:[%s172_s25 + $0x4] sm:$0xf] %vm260_vm0, %v347_v39 }
  0x1c   : > { %263 = vst.msk [vmem:[%s172_s25 + $0x8] sm:$0xf] %vm260_vm0, %v348_v40  ;;  %264 = vst.msk [vmem:[%s172_s25 + $0xc] sm:$0xf] %vm260_vm0, %v349_v41 }
  0x1d   : > { %265 = vst.msk [vmem:[%s172_s25 + $0x10] sm:$0xf] %vm260_vm0, %v350_v42  ;;  %266 = vst.msk [vmem:[%s172_s25 + $0x14] sm:$0xf] %vm260_vm0, %v351_v43 }
  0x1e   : > { %267 = vst.msk [vmem:[%s172_s25 + $0x18] sm:$0xf] %vm260_vm0, %v352_v44  ;;  %268 = vst.msk [vmem:[%s172_s25 + $0x1c] sm:$0xf] %vm260_vm0, %v353_v45 }
  0x1f PF: > { %s13_s12 = sadd.s32 1, %s387_s12  }
  0x20   : > { %p10_p4 = scmp.ge.s32.totalorder %s13_s12, 4  }
  0x22   :  { %12 = sbr.rel (!%p10_p4) target bundleno = 1 (0x1), region = 62 }

// kernel: resnet_block_forward.21
= control target key start
LH: loop header
LB: loop body
LE: loop exit
PB: predicated region body
PF: predicated region fallthrough
CT: control target
= control target key end

     0   :  { %9 = vsyncpa [#allocation3], 0  ;;  %s707_s0 = inlined_call_operand.vmem [shape: bf16[128,16], index: 0, kind: input, shape index: {}]   ;;  %s708_s1 = inlined_call_operand.vmem [shape: f32[1,16], index: 1, kind: input, shape index: {}]   ;;  %s709_s2 = inlined_call_operand.vmem [shape: f32[1,16], index: 2, kind: input, shape index: {}]   ;;  %s710_s3 = inlined_call_operand.vmem [shape: bf16[128,16], index: 3, kind: input, shape index: {}]   ;;  %s711_s4 = inlined_call_operand.hbm [shape: f32[128,16], index: 4, kind: output, shape index: {}]  }
   0x1   :  { %11 = vsyncpa [#allocation3 + $0x1], 0  ;;  %s584_s15 = smov 0   ;;  %s586_s16 = smov 0  }
   0x2   :  { %s588_s17 = smov 0   ;;  %s590_s18 = smov 0  }
   0x3 LB: > { %s605_s19 = sadd.s32 4294967295, %s554_s18   ;;  %s396_s20 = sadd.s32 4294967294, %s554_s18   ;;  %s554_s18 = sphi %s590_s18, %s717_s18   ;;  %s550_s17 = sphi %s588_s17, %s716_s17   ;;  %s546_s16 = sphi %s586_s16, %s715_s16   ;;  %s542_s15 = sphi %s584_s15, %s714_s15  }
   0x4   : > { %s609_s21 = sadd.s32 1, %s554_s18   ;;  %s118_s22 = sadd.s32 1, %s550_s17 }
   0x5   : > { %s115_s23 = ssub.s32 %s554_s18, %s609_s21  ;;  %p128_p0 = scmp.ne.s32.totalorder %s550_s17, %s546_s16 }
   0x6   : > { %p116_p1 = scmp.eq.s32.totalorder %s115_s23, 0  ;;  %p129_p2 = scmp.eq.s32.totalorder %s605_s19, 1 }
   0x7   : > { %p134_p3 = scmp.ne.s32.totalorder %s546_s16, %s542_s15  ;;  %p135_p4 = scmp.eq.s32.totalorder %s396_s20, 1 }
   0x8   : > { %s620_s24 = scalar_select %p116_p1, %s550_s17, %s118_s22  }
   0x9   : > { %p622_p5 = por %p129_p2, %p128_p0  ;;  %p626_p6 = por %p135_p4, %p134_p3 }
   0xa   : > { %p399_p7 = scmp.ge.s32.totalorder %s554_s18, 1  ;;  %p177_p8 = scmp.lt.s32.totalorder %s554_s18, 3 }
   0xc   : > { %p178_p9 = pnand %p399_p7, %p177_p8 }
   0xd   : > { %s401_s27 = sshll.u32 (!%p178_p9), %s605_s19, 3  ;;  %v405_v0 = vld [vmem:[%s708_s1] ss:$0 sm:$0xff] (!%p178_p9)  ;;  %vm299_vm0 = vcmask (!%p178_p9), 130048   ;;  %s205_s11 = sand.u32 (!%p178_p9), 1, %s546_s16  }
   0xe   : > { %181 = sbr.rel (%p178_p9) target bundleno = 57 (0x39), region = 36  ;;  %p209_p10 = scmp.lt.s32.totalorder (!%p178_p9), %s401_s27, 15  ;;  %v406_v11 = vld [vmem:[%s709_s2] ss:$0 sm:$0xff] (!%p178_p9) }
   0xf   : > { %s400_s14 = sshll.u32 (!%p178_p9), %s205_s11, 6  ;;  %s412_s23 = sshll.u32 (!%p178_p9), %s605_s19, 10 }
  0x10   : > { %s207_s20 = scalar_lea.vmem (!%p178_p9), [#allocation2], %s400_s14  ;;  %s661_s29 = scalar_lea.hbm (!%p178_p9), %s711_s4, %s412_s23 }
  0x11   : > { %s322_s22 = sshll.u32 (!%p178_p9), %s207_s20, 4  ;;  %s666_s19 = scalar_lea.sflag (!%p178_p9), [#allocation3], %s205_s11  ;;  %s655_s22 = int_to_ptr.vmem [resolvable:$true] %s322_s22 }
  0x12   : > { %s492_s30 = scalar_lea.vmem (!%p178_p9), %s655_s22, 1024 }
  0x13   : > { %p493_p11 = scmp.ne.s32.totalorder (!%p178_p9), %s655_s22, %s492_s30 }
  0x15   : > { %s719_s27 = smov (!%p209_p10, %s401_s27), 15  ;;  %p494_p12 = pnand %p493_p11, %p622_p5 }
  0x16   : > { %s402_s28 = sshll.u32 %s719_s27, 2 }
  0x17   : > { %s212_s5 = scalar_lea.vmem %s707_s0, %s402_s28  ;;  %s218_s8 = scalar_lea.vmem %s710_s3, %s402_s28 }
  0x18   : > { %v414_v1 = vld [vmem:[%s212_s5] sm:$0xff]   ;;  %v445_v3 = vld [vmem:[%s212_s5 + $0x8] sm:$0xff]   ;;  %v446_v9 = vld [vmem:[%s212_s5 + $0x10] sm:$0xff]   ;;  %p495_p13 = pneg %p494_p12 }
  0x19   : > { %v430_v2 = vld [vmem:[%s218_s8] sm:$0xff]   ;;  %v415_v4 = vunpack.c.l.bf16 %v414_v1  ;;  %v416_v6 = vunpack.c.h.bf16 %v414_v1  ;;  %v448_v8 = vld [vmem:[%s218_s8 + $0x8] sm:$0xff]   ;;  %v449_v10 = vld [vmem:[%s218_s8 + $0x10] sm:$0xff]   ;;  %v419_v12 = vunpack.c.l.bf16 %v445_v3  ;;  %v420_v14 = vunpack.c.h.bf16 %v445_v3 }
  0x1a   : > { %v431_v5 = vunpack.c.l.bf16 %v430_v2  ;;  %v432_v7 = vunpack.c.h.bf16 %v430_v2  ;;  %v435_v13 = vunpack.c.l.bf16 %v448_v8  ;;  %v436_v15 = vunpack.c.h.bf16 %v448_v8  ;;  %v447_v16 = vld [vmem:[%s212_s5 + $0x18] sm:$0xff]   ;;  %s556_s5 = smov [#allocation2]  }
  0x1b   : > { %v244_v17 = vmul.f32 %v415_v4, %v405_v0  ;;  %v245_v18 = vmul.f32 %v416_v6, %v405_v0  ;;  %v423_v19 = vunpack.c.l.bf16 %v446_v9  ;;  %v439_v20 = vunpack.c.l.bf16 %v449_v10  ;;  %v450_v21 = vld [vmem:[%s218_s8 + $0x18] sm:$0xff]   ;;  %s496_s6 = sshll.u32 %s556_s5, 4  ;;  %s497_s6 = int_to_ptr.vmem [resolvable:$false] %s496_s6 }
  0x1c   : > { %v246_v22 = vmul.f32 %v419_v12, %v405_v0  ;;  %v247_v23 = vmul.f32 %v420_v14, %v405_v0  ;;  %v424_v24 = vunpack.c.h.bf16 %v446_v9  ;;  %v440_v25 = vunpack.c.h.bf16 %v449_v10  ;;  %s498_s7 = scalar_lea.vmem %s497_s6, 2048  ;;  %p499_p0 = scmp.lt.s32.totalorder %s655_s22, %s497_s6 }
  0x1d   : > { %v259_v26 = vadd.f32 %v406_v11, %v244_v17  ;;  %v260_v27 = vadd.f32 %v406_v11, %v245_v18  ;;  %v248_v28 = vmul.f32 %v423_v19, %v405_v0  ;;  %v427_v29 = vunpack.c.l.bf16 %v447_v16  ;;  %p500_p1 = scmp.lt.s32.totalorder %s498_s7, %s492_s30 }
  0x1e   : > { %v261_v30 = vadd.f32 %v406_v11, %v246_v22  ;;  %v262_v31 = vadd.f32 %v406_v11, %v247_v23  ;;  %v249_v32 = vmul.f32 %v424_v24, %v405_v0  ;;  %v443_v33 = vunpack.c.l.bf16 %v450_v21 }
  0x1f   : > { %v283_v34 = vadd.f32 %v431_v5, %v259_v26  ;;  %v284_v35 = vadd.f32 %v432_v7, %v260_v27  ;;  %v263_v36 = vadd.f32 %v406_v11, %v248_v28  ;;  %v250_v37 = vmul.f32 %v427_v29, %v405_v0  ;;  %p501_p2 = por %p500_p1, %p499_p0 }
  0x20   : > { %v285_v38 = vadd.f32 %v435_v13, %v261_v30  ;;  %v286_v39 = vadd.f32 %v436_v15, %v262_v31  ;;  %v264_v40 = vadd.f32 %v406_v11, %v249_v32  ;;  %v428_v41 = vunpack.c.h.bf16 %v447_v16 }
  0x21   : > { %v291_v42 = vmax.f32 %v283_v34, 0.0  ;;  %v292_v43 = vmax.f32 %v284_v35, 0.0  ;;  %v287_v44 = vadd.f32 %v439_v20, %v263_v36  ;;  %v265_v45 = vadd.f32 %v406_v11, %v250_v37  ;;  %p502_p3 = pnand %p501_p2, %p495_p13 }
  0x22   : > { %v293_v46 = vmax.f32 %v285_v38, 0.0  ;;  %v294_v47 = vmax.f32 %v286_v39, 0.0  ;;  %v288_v48 = vadd.f32 %v440_v25, %v264_v40  ;;  %v251_v49 = vmul.f32 %v428_v41, %v405_v0 }
  0x23   : > { %300 = vst.msk [vmem:[%s207_s20] sm:$0xff] %vm299_vm0, %v291_v42  ;;  %301 = vst.msk [vmem:[%s207_s20 + $0x8] sm:$0xff] %vm299_vm0, %v292_v43  ;;  %v295_v50 = vmax.f32 %v287_v44, 0.0  ;;  %v289_v51 = vadd.f32 %v443_v33, %v265_v45  ;;  %v444_v52 = vunpack.c.h.bf16 %v450_v21 }
  0x24   : > { %302 = vst.msk [vmem:[%s207_s20 + $0x10] sm:$0xff] %vm299_vm0, %v293_v46  ;;  %303 = vst.msk [vmem:[%s207_s20 + $0x18] sm:$0xff] %vm299_vm0, %v294_v47  ;;  %v296_v53 = vmax.f32 %v288_v48, 0.0  ;;  %v266_v54 = vadd.f32 %v406_v11, %v251_v49 }
  0x25   : > { %304 = vst.msk [vmem:[%s207_s20 + $0x20] sm:$0xff] %vm299_vm0, %v295_v50  ;;  %v297_v55 = vmax.f32 %v289_v51, 0.0 }
  0x26   : > { %305 = vst.msk [vmem:[%s207_s20 + $0x28] sm:$0xff] %vm299_vm0, %v296_v53  ;;  %v290_v56 = vadd.f32 %v444_v52, %v266_v54 }
  0x27   : > { %306 = vst.msk [vmem:[%s207_s20 + $0x30] sm:$0xff] %vm299_vm0, %v297_v55 }
  0x28   : > { %v298_v57 = vmax.f32 %v290_v56, 0.0 }
  0x2a   : > { %307 = vst.msk [vmem:[%s207_s20 + $0x38] sm:$0xff] %vm299_vm0, %v298_v57 }
  0x2b   : > { %505 = shalt.err (!%p502_p3)
}
  0x2c   : > { %s506_s8 = scalar_lea.hbm %s661_s29, 1024  ;;  %s510_s11 = scalar_lea.hbm %s711_s4, 2048 }
  0x2d   : > { %p507_p4 = scmp.ne.s32.totalorder %s661_s29, %s506_s8  ;;  %p511_p9 = scmp.lt.u32.totalorder %s661_s29, %s711_s4 }
  0x2e   : > { %p512_p10 = scmp.lt.u32.totalorder %s510_s11, %s506_s8  ;;  %p514_p12 = scmp.lt.u32.totalorder %s506_s8, %s661_s29 }
  0x2f   : > { %p508_p7 = pnand %p507_p4, %p622_p5 }
  0x30   : > { %p513_p11 = por %p512_p10, %p511_p9 }
  0x31   : > { %p509_p8 = pneg %p508_p7 }
  0x32   : > { %p515_p13 = por %p514_p12, %p513_p11 }
  0x34   : > { %p516_p0 = pnand %p515_p13, %p509_p8 }
  0x36   : > { %519 = shalt.err (!%p516_p0)
}
  0x37   : > { %s557_s14 = smov 128   ;;  %s558_s20 = smov 8  }
  0x38   : > { %451 = dma.vmem_to_hbm [thread:$0]  (%p622_p5), %s655_s22, 1024, %s661_s29, %s666_s19, %s557_s14, %s557_s14, %s558_s20  }
  0x39 PF: > { %p457_p1 = scmp.ge.s32.totalorder %s554_s18, 2  ;;  %s337_s23 = sand.u32 1, %s542_s15  }
  0x3a   : > { %s338_s27 = scalar_lea.sflag [#allocation3], %s337_s23 }
  0x3b   : > { %p454_p2 = pnand %p457_p1, %p626_p6 }
  0x3d   : > { %537 = dma.done.wait (!%p454_p2), %s338_s27, 1024  }
  0x3e   : > { %539 = vsyncadd (!%p454_p2), %s338_s27, 4294966272  ;;  %p14_p3 = scmp.ge.s32.totalorder %s609_s21, 4   ;;  %s714_s15 = smov %s546_s16 }
  0x3f   : > { %s715_s16 = smov %s550_s17  ;;  %s716_s17 = smov %s620_s24 }
  0x40   : > { %s717_s18 = smov %s609_s21  ;;  %16 = sbr.rel (!%p14_p3) target bundleno = 3 (0x3), region = 74 }
  0x47   :  { %343 = vsyncpa [#allocation3], 1 }
  0x48   :  { %345 = vsyncpa [#allocation3 + $0x1], 1 }

// kernel: resnet_block_forward.19
= control target key start
LH: loop header
LB: loop body
LE: loop exit
PB: predicated region body
PF: predicated region fallthrough
CT: control target
= control target key end

     0   :  { %s1936_s18 = smov 0   ;;  %s2135_s0 = inlined_call_operand.vmem [shape: bf16[2,80,4], index: 0, kind: input, shape index: {}]   ;;  %s2136_s1 = inlined_call_operand.vmem [shape: bf16[2,80,4], index: 1, kind: input, shape index: {}]   ;;  %s2137_s2 = inlined_call_operand.vmem [shape: bf16[2,80,4], index: 2, kind: input, shape index: {}]   ;;  %s2138_s3 = inlined_call_operand.vmem [shape: bf16[9,4,4], index: 3, kind: input, shape index: {}]   ;;  %s2139_s4 = inlined_call_operand.vmem [shape: bf16[2,64,4], index: 4, kind: output, shape index: {0}]   ;;  %s2140_s5 = inlined_call_operand.vmem [shape: f32[16,4], index: 5, kind: output, shape index: {1}]  }
   0x1 LB: > { %s1532_s19 = sadd.s32 4294967295, %s1904_s18   ;;  %p1536_p0 = scmp.ge.s32.totalorder %s1904_s18, 1  ;;  %s1904_s18 = sphi %s1936_s18, %s16_s18  }
   0x2   : > { %p210_p1 = scmp.lt.s32.totalorder %s1904_s18, 3 }
   0x4   : > { %p211_p2 = pnand %p1536_p0, %p210_p1 }
   0x5   : > { %v1543_v0 = vld [vmem:[%s2138_s3 + $0x2] sm:$0x3] (!%p211_p2)  ;;  %vm329_vm0 = vcmask (!%p211_p2), 1041408   ;;  %v1950_v1 = vld [vmem:[%s2138_s3 + $0x8] sm:$0x3] (!%p211_p2)  ;;  %p252_p3 = scmp.lt.s32.totalorder (!%p211_p2), %s1532_s19, 1 }
   0x6   : > { %214 = sbr.rel (%p211_p2) target bundleno = 328 (0x148), region = 36  ;;  %1843 = vmatprep.subr.msk.bf16.mxu1 (!%p211_p2), %vm329_vm0, %v1543_v0  ;;  %1847 = vmatprep.subr.msk.bf16.mxu0 (!%p211_p2), %vm329_vm0, %v1950_v1  ;;  %v331_v2 = vsel (!%p211_p2), %vm329_vm0, %v1543_v0, 0  ;;  %v1958_v3 = vsel (!%p211_p2), %vm329_vm0, %v1950_v1, 0  ;;  %v285_v4 = vld [vmem:[%s2138_s3] sm:$0x3] (!%p211_p2)  ;;  %vm316_vm1 = vcmask (!%p211_p2), 31744  }
   0x7   : > { %1688 = vmatpush3.bf16.msra.mxu1 (!%p211_p2), %v331_v2  ;;  %1728 = vmatpush3.bf16.msra.mxu0 (!%p211_p2), %v1958_v3  ;;  %v1587_v5 = vld [vmem:[%s2138_s3 + $0xa] sm:$0x3] (!%p211_p2)  ;;  %v431_v9 = vsel (!%p211_p2), %vm329_vm0, %v285_v4, 0  ;;  %v1596_v10 = vld [vmem:[%s2138_s3 + $0xc] sm:$0x3] (!%p211_p2)  ;;  %vm1356_vm2 = vcmask (!%p211_p2), 27648  }
   0x8   : > { %1844 = vmatprep.subr.msk.bf16.mxu1 (!%p211_p2), %vm329_vm0, %v285_v4  ;;  %1849 = vmatprep.subr.msk.bf16.mxu0 (!%p211_p2), %vm329_vm0, %v1587_v5  ;;  %v1560_v11 = vld [vmem:[%s2138_s3 + $0x4] sm:$0x3] (!%p211_p2)  ;;  %v895_v13 = vsel (!%p211_p2), %vm329_vm0, %v1587_v5, 0  ;;  %v1013_v19 = vsel (!%p211_p2), %vm329_vm0, %v1596_v10, 0  ;;  %v1605_v21 = vld [vmem:[%s2138_s3 + $0xe] sm:$0x3] (!%p211_p2) }
   0x9   : > { %v541_v24 = vsel (!%p211_p2), %vm329_vm0, %v1560_v11, 0  ;;  %v1569_v25 = vld [vmem:[%s2138_s3 + $0x6] sm:$0x3] (!%p211_p2)  ;;  %v1131_v31 = vsel (!%p211_p2), %vm329_vm0, %v1605_v21, 0  ;;  %v1614_v33 = vld [vmem:[%s2138_s3 + $0x10] sm:$0x3] (!%p211_p2) }
   0xa   : > { %v659_v36 = vsel (!%p211_p2), %vm329_vm0, %v1569_v25, 0  ;;  %v1249_v43 = vsel (!%p211_p2), %vm329_vm0, %v1614_v33, 0 }
   0xd   : > { %s2142_s19 = smov (!%p252_p3, %s1532_s19), 1 }
   0xe   : > { %s1853_s28 = smul.u32 40, %s2142_s19  ;;  %s1633_s25 = sshll.u32 %s2142_s19, 5 }
   0xf   : > { %s1542_s29 = sshll.u32 %s2142_s19, 3 }
  0x10   : > { %s1975_s6 = scalar_lea.vmem %s2136_s1, %s1853_s28  ;;  %s1994_s13 = scalar_lea.vmem %s2137_s2, %s1853_s28 }
  0x11   : > { %v1862_v6 = vld [vmem:[%s1975_s6] sm:$0xff]   ;;  %v1864_v8 = vld [vmem:[%s1975_s6 + $0x8] sm:$0xff]   ;;  %v1866_v14 = vld [vmem:[%s1975_s6 + $0x10] sm:$0xff]   ;;  %s2004_s16 = scalar_lea.vmem %s2135_s0, %s1853_s28  ;;  %s2093_s28 = scalar_lea.vmem %s2139_s4, %s1633_s25 }
  0x12   : > { %v1863_v7 = vld [vmem:[%s1975_s6 + $0x4] sm:$0xff]   ;;  %1689 = vmatprep.mubr.msk.bf16.mxu1 %vm316_vm1, %v1862_v6  ;;  %v1865_v12 = vld [vmem:[%s1975_s6 + $0xc] sm:$0xff]   ;;  %v1867_v16 = vld [vmem:[%s1975_s6 + $0x18] sm:$0xff]   ;;  %s275_s7 = scalar_lea.vmem %s2140_s5, %s1542_s29 }
  0x13   : > { %1729 = vmatprep.mubr.msk.bf16.mxu0 %vm316_vm1, %v1863_v7  ;;  %1690 = vmatmul.mubr.msk.bf16.vlgmr.msra.gmra.mrb[0].mxu1 %vm316_vm1, %v1864_v8  ;;  %v1868_v15 = vld [vmem:[%s1994_s13 + $0x4] sm:$0xff]   ;;  %v1869_v18 = vld [vmem:[%s1994_s13 + $0xc] sm:$0xff]   ;;  %v1872_v20 = vld [vmem:[%s1994_s13 + $0x14] sm:$0xff]  }
  0x14   : > { %1698 = vmatpush3.bf16.msra.mxu1 %v431_v9  ;;  %1730 = vmatmul.mubr.msk.bf16.vlgmr.msra.gmra.mrb[0].mxu0 %vm316_vm1, %v1865_v12  ;;  %v1870_v17 = vld [vmem:[%s2004_s16] sm:$0xff]   ;;  %v1871_v22 = vld [vmem:[%s2004_s16 + $0x8] sm:$0xff]   ;;  %v1874_v23 = vld [vmem:[%s2004_s16 + $0x10] sm:$0xff]  }
  0x15   : > { %1738 = vmatpush3.bf16.msra.mxu0 %v895_v13  ;;  %1693 = vmatprep.mubr.msk.bf16.mxu1 %vm316_vm1, %v1866_v14  ;;  %v1873_v26 = vld [vmem:[%s1994_s13 + $0x1c] sm:$0xff]   ;;  %v1876_v27 = vld [vmem:[%s2004_s16 + $0x8] sm:$0xff]   ;;  %v1877_v30 = vld [vmem:[%s2004_s16 + $0x10] sm:$0xff]  }
  0x16   : > { %1850 = vmatprep.subr.msk.bf16.mxu0 %vm329_vm0, %v1596_v10  ;;  %1845 = vmatprep.subr.msk.bf16.mxu1 %vm329_vm0, %v1560_v11  ;;  %v1875_v28 = vld [vmem:[%s2004_s16 + $0x18] sm:$0xff]   ;;  %v1878_v29 = vld [vmem:[%s1994_s13] sm:$0xff]   ;;  %v1879_v34 = vld [vmem:[%s1994_s13 + $0x8] sm:$0xff]  }
  0x17   : > { %1739 = vmatprep.mubr.msk.bf16.mxu0 %vm316_vm1, %v1868_v15  ;;  %v1880_v32 = vld [vmem:[%s2004_s16 + $0x18] sm:$0xff]   ;;  %v1882_v35 = vld [vmem:[%s1994_s13 + $0x10] sm:$0xff]   ;;  %v1881_v37 = vld [vmem:[%s2004_s16 + $0x20] sm:$0xff]  }
  0x18   : > { %v1884_v38 = vld [vmem:[%s1975_s6 + $0x8] sm:$0xff]   ;;  %v1883_v39 = vld [vmem:[%s1994_s13 + $0x18] sm:$0xff]   ;;  %v1885_v41 = vld [vmem:[%s1975_s6 + $0x10] sm:$0xff]  }
  0x19   : > { %v1886_v40 = vld [vmem:[%s2004_s16 + $0x4] sm:$0xff]   ;;  %v1888_v42 = vld [vmem:[%s1975_s6 + $0x18] sm:$0xff]   ;;  %v1887_v44 = vld [vmem:[%s2004_s16 + $0xc] sm:$0xff]  }
  0x1a   : > { %v1890_v45 = vld [vmem:[%s2004_s16 + $0x14] sm:$0xff]   ;;  %v1889_v46 = vld [vmem:[%s1975_s6 + $0x20] sm:$0xff]   ;;  %v1892_v47 = vld [vmem:[%s1994_s13 + $0x8] sm:$0xff]  }
  0x1b   : > { %1694 = vmatmul.mubr.msk.bf16.gmra.mrb[4].mxu1 %vm316_vm1, %v1867_v16  ;;  %v1891_v48 = vld [vmem:[%s2004_s16 + $0x1c] sm:$0xff]   ;;  %v1894_v49 = vld [vmem:[%s1975_s6 + $0x14] sm:$0xff]  }
  0x1c   : > { %1699 = vmatprep.mubr.msk.bf16.mxu1 %vm316_vm1, %v1870_v17  ;;  %v1893_v50 = vld [vmem:[%s1994_s13 + $0x10] sm:$0xff]   ;;  %v1895_v51 = vld [vmem:[%s1994_s13 + $0x18] sm:$0xff]   ;;  %v1897_v53 = vld [vmem:[%s1994_s13 + $0x20] sm:$0xff]  }
  0x1d   : > { %v1896_v52 = vld [vmem:[%s1975_s6 + $0x1c] sm:$0xff]  }
  0x20   : > { %1740 = vmatmul.mubr.msk.bf16.vlgmr.msra.gmra.mrb[0].mxu0 %vm316_vm1, %v1869_v18 }
  0x21   : > { %1748 = vmatpush3.bf16.msra.mxu0 %v1013_v19  ;;  %1743 = vmatprep.mubr.msk.bf16.mxu0 %vm316_vm1, %v1872_v20 }
  0x22   : > { %1851 = vmatprep.subr.msk.bf16.mxu0 %vm329_vm0, %v1605_v21 }
  0x23   : > { %1700 = vmatmul.mubr.msk.bf16.vlgmr.msra.gmra.mrb[0].mxu1 %vm316_vm1, %v1871_v22 }
  0x24   : > { %1708 = vmatpush3.bf16.msra.mxu1 %v541_v24  ;;  %1703 = vmatprep.mubr.msk.bf16.mxu1 %vm316_vm1, %v1874_v23 }
  0x25   : > { %1846 = vmatprep.subr.msk.bf16.mxu1 %vm329_vm0, %v1569_v25 }
  0x28   : > { %1744 = vmatmul.mubr.msk.bf16.gmra.mrb[4].mxu0 %vm316_vm1, %v1873_v26 }
  0x29   : > { %1749 = vmatprep.mubr.msk.bf16.mxu0 %vm316_vm1, %v1876_v27 }
  0x2b   : > { %1704 = vmatmul.mubr.msk.bf16.gmra.mrb[4].mxu1 %vm316_vm1, %v1875_v28 }
  0x2c   : > { %1709 = vmatprep.mubr.msk.bf16.mxu1 %vm316_vm1, %v1878_v29 }
  0x30   : > { %1750 = vmatmul.mubr.msk.bf16.vlgmr.msra.gmra.mrb[0].mxu0 %vm316_vm1, %v1877_v30 }
  0x31   : > { %1758 = vmatpush3.bf16.msra.mxu0 %v1131_v31  ;;  %1753 = vmatprep.mubr.msk.bf16.mxu0 %vm316_vm1, %v1880_v32 }
  0x32   : > { %1852 = vmatprep.subr.msk.bf16.mxu0 %vm329_vm0, %v1614_v33 }
  0x33   : > { %1710 = vmatmul.mubr.msk.bf16.vlgmr.msra.gmra.mrb[0].mxu1 %vm316_vm1, %v1879_v34 }
  0x34   : > { %1718 = vmatpush3.bf16.msra.mxu1 %v659_v36  ;;  %1713 = vmatprep.mubr.msk.bf16.mxu1 %vm316_vm1, %v1882_v35 }
  0x35   : > { %1848 = vmatprep.subr.msk.bf16.mxu1 %vm329_vm0, %v1950_v1 }
  0x38   : > { %1754 = vmatmul.mubr.msk.bf16.gmra.mrb[4].mxu0 %vm316_vm1, %v1881_v37 }
  0x39   : > { %1759 = vmatprep.mubr.msk.bf16.mxu0 %vm316_vm1, %v1884_v38 }
  0x3b   : > { %1714 = vmatmul.mubr.msk.bf16.gmra.mrb[4].mxu1 %vm316_vm1, %v1883_v39 }
  0x3c   : > { %1719 = vmatprep.mubr.msk.bf16.mxu1 %vm316_vm1, %v1886_v40 }
  0x40   : > { %1760 = vmatmul.mubr.msk.bf16.vlgmr.msra.gmra.mrb[0].mxu0 %vm316_vm1, %v1885_v41 }
  0x41   : > { %1768 = vmatpush3.bf16.msra.mxu0 %v1249_v43  ;;  %1763 = vmatprep.mubr.msk.bf16.mxu0 %vm316_vm1, %v1888_v42 }
  0x43   : > { %1720 = vmatmul.mubr.msk.bf16.vlgmr.msra.gmra.mrb[0].mxu1 %vm316_vm1, %v1887_v44 }
  0x44   : > { %1778 = vmatpush3.bf16.msra.mxu1 %v1958_v3  ;;  %1723 = vmatprep.mubr.msk.bf16.mxu1 %vm316_vm1, %v1890_v45 }
  0x48   : > { %1764 = vmatmul.mubr.msk.bf16.gmra.mrb[4].mxu0 %vm316_vm1, %v1889_v46 }
  0x49   : > { %1769 = vmatprep.mubr.msk.bf16.mxu0 %vm316_vm1, %v1892_v47 }
  0x4b   : > { %1724 = vmatmul.mubr.msk.bf16.gmra.mrb[4].mxu1 %vm316_vm1, %v1891_v48 }
  0x4c   : > { %1733 = vmatprep.mubr.msk.bf16.mxu1 %vm316_vm1, %v1894_v49 }
  0x50   : > { %1770 = vmatmul.mubr.msk.bf16.vlgmr.msra.gmra.mrb[0].mxu0 %vm316_vm1, %v1893_v50 }
  0x51   : > { %1773 = vmatprep.mubr.msk.bf16.mxu0 %vm316_vm1, %v1895_v51 }
  0x57   : > { %1734 = vmatmul.mubr.msk.bf16.vlgmr.msra.gmra.mrb[4].mxu1 %vm316_vm1, %v1896_v52 }
  0x58   : > { %1774 = vmatmul.mubr.msk.bf16.gmra.mrb[4].mxu0 %vm316_vm1, %v1897_v53 }
 0x116   : > { %v1721_v54 = vpop.f32.mrb[0].mxu1 }
 0x117   : > { %v695_v55 = vpop.f32.mrb[1].mxu1 }
 0x118   : > { %v1722_v56 = vpop.f32.mrb[2].mxu1 }
 0x119   : > { %v698_v57 = vpop.f32.mrb[3].mxu1 }
 0x123   : > { %v1771_v58 = vpop.f32.mrb[0].mxu0 }
 0x124   : > { %v1779_v59 = vadd.f32 %v1771_v58, %v1721_v54  ;;  %v1285_v60 = vpop.f32.mrb[1].mxu0 }
 0x125   : > { %v1780_v61 = vadd.f32 %v1285_v60, %v695_v55  ;;  %v1772_v62 = vpop.f32.mrb[2].mxu0 }
 0x126   : > { %v1636_v63 = vpack.c.bf16 %v1779_v59, %v1779_v59  ;;  %v1781_v0 = vadd.f32 %v1772_v62, %v1722_v56  ;;  %v1288_v1 = vpop.f32.mrb[3].mxu0  ;;  %v1388_v5 = vmul.f32 %v1779_v59, %v1779_v59  ;;  %v1368_v14 = vsel %vm316_vm1, %v1779_v59, 0.0 }
 0x127   : > { %v1634_v2 = vpack.c.bf16 %v1780_v61, %v1780_v61  ;;  %v1386_v3 = vmul.f32 %v1780_v61, %v1780_v61  ;;  %v1782_v4 = vadd.f32 %v1288_v1, %v698_v57  ;;  %v1365_v7 = vsel %vm316_vm1, %v1780_v61, 0.0 }
 0x128   : > { %1359 = vst.msk [vmem:[%s2093_s28 + $0x8] sm:$0xf] %vm1356_vm2, %v1636_v63  ;;  %v1637_v6 = vpack.c.bf16 %v1781_v0, %v1781_v0  ;;  %v1389_v11 = vmul.f32 %v1781_v0, %v1781_v0  ;;  %v1397_v24 = vsel %vm316_vm1, %v1388_v5, 0.0  ;;  %v1370_v28 = vsel %vm316_vm1, %v1781_v0, 0.0 }
 0x129   : > { %1357 = vst.msk [vmem:[%s2093_s28] sm:$0xf] %vm1356_vm2, %v1634_v2  ;;  %v1635_v8 = vpack.c.bf16 %v1782_v4, %v1782_v4  ;;  %v1366_v9 = vsel %vm316_vm1, %v1782_v4, 0.0  ;;  %v1387_v10 = vmul.f32 %v1782_v4, %v1782_v4  ;;  %v1394_v15 = vsel %vm316_vm1, %v1386_v3, 0.0 }
 0x12a   : > { %1360 = vst.msk [vmem:[%s2093_s28 + $0xc] sm:$0xf] %vm1356_vm2, %v1637_v6  ;;  %v1367_v12 = vadd.f32 %v1366_v9, %v1365_v7  ;;  %v1735_v13 = vpop.f32.mrb[4].mxu1  ;;  %v1399_v29 = vsel %vm316_vm1, %v1389_v11, 0.0  ;;  %v1415_v61 = vlaneseq }
 0x12b   : > { %1358 = vst.msk [vmem:[%s2093_s28 + $0x4] sm:$0xf] %vm1356_vm2, %v1635_v8  ;;  %v1395_v16 = vsel %vm316_vm1, %v1387_v10, 0.0  ;;  %v1775_v17 = vpop.f32.mrb[4].mxu0  ;;  %v829_v18 = vpop.f32.mrb[5].mxu1 }
 0x12c   : > { %v1369_v19 = vadd.f32 %v1368_v14, %v1367_v12  ;;  %v1396_v20 = vadd.f32 %v1395_v16, %v1394_v15  ;;  %v1783_v21 = vadd.f32 %v1775_v17, %v1735_v13  ;;  %v1301_v22 = vpop.f32.mrb[5].mxu0  ;;  %v1736_v23 = vpop.f32.mrb[6].mxu1  ;;  %v1416_v2 = vshrl.u32 %v1415_v61, 7 }
 0x12d   : > { %v1784_v25 = vadd.f32 %v1301_v22, %v829_v18  ;;  %v1776_v26 = vpop.f32.mrb[6].mxu0  ;;  %v832_v27 = vpop.f32.mrb[7].mxu1 }
 0x12e   : > { %v1398_v30 = vadd.f32 %v1397_v24, %v1396_v20  ;;  %v1640_v31 = vpack.c.bf16 %v1783_v21, %v1783_v21  ;;  %v1304_v32 = vpop.f32.mrb[7].mxu0  ;;  %v1371_v34 = vadd.f32 %v1370_v28, %v1369_v19  ;;  %v1785_v38 = vadd.f32 %v1776_v26, %v1736_v23 }
 0x12f   : > { %v1638_v33 = vpack.c.bf16 %v1784_v25, %v1784_v25  ;;  %v1372_v35 = vsel %vm316_vm1, %v1784_v25, 0.0  ;;  %v1390_v36 = vmul.f32 %v1784_v25, %v1784_v25  ;;  %v1786_v39 = vadd.f32 %v1304_v32, %v832_v27 }
 0x130   : > { %1363 = vst.msk [vmem:[%s2093_s28 + $0x18] sm:$0xf] %vm1356_vm2, %v1640_v31  ;;  %v1400_v37 = vadd.f32 %v1399_v29, %v1398_v30  ;;  %v1373_v40 = vadd.f32 %v1372_v35, %v1371_v34  ;;  %v1641_v43 = vpack.c.bf16 %v1785_v38, %v1785_v38  ;;  %v1392_v44 = vmul.f32 %v1783_v21, %v1783_v21 }
 0x131   : > { %1361 = vst.msk [vmem:[%s2093_s28 + $0x10] sm:$0xf] %vm1356_vm2, %v1638_v33  ;;  %v1401_v41 = vsel %vm316_vm1, %v1390_v36, 0.0  ;;  %v1639_v45 = vpack.c.bf16 %v1786_v39, %v1786_v39  ;;  %v1374_v46 = vsel %vm316_vm1, %v1786_v39, 0.0  ;;  %v1391_v47 = vmul.f32 %v1786_v39, %v1786_v39 }
 0x132   : > { %v1402_v42 = vadd.f32 %v1401_v41, %v1400_v37  ;;  %1364 = vst.msk [vmem:[%s2093_s28 + $0x1c] sm:$0xf] %vm1356_vm2, %v1641_v43  ;;  %v1375_v48 = vadd.f32 %v1374_v46, %v1373_v40  ;;  %v1376_v49 = vsel %vm316_vm1, %v1783_v21, 0.0  ;;  %v1393_v50 = vmul.f32 %v1785_v38, %v1785_v38 }
 0x133   : > { %1362 = vst.msk [vmem:[%s2093_s28 + $0x14] sm:$0xf] %vm1356_vm2, %v1639_v45  ;;  %v1403_v51 = vsel %vm316_vm1, %v1391_v47, 0.0  ;;  %v1405_v54 = vsel %vm316_vm1, %v1392_v44, 0.0  ;;  %v1378_v55 = vsel %vm316_vm1, %v1785_v38, 0.0  ;;  %vm1417_vm3 = vcmp.eq.s32.totalorder %v1416_v2, 0 }
 0x134   : > { %v1377_v52 = vadd.f32 %v1376_v49, %v1375_v48  ;;  %v1404_v53 = vadd.f32 %v1403_v51, %v1402_v42  ;;  %v1407_v58 = vsel %vm316_vm1, %v1393_v50, 0.0  ;;  %vm1419_vm4 = vcmp.eq.s32.totalorder %v1416_v2, 1 }
 0x136   : > { %v1379_v56 = vadd.f32 %v1378_v55, %v1377_v52  ;;  %v1406_v57 = vadd.f32 %v1405_v54, %v1404_v53 }
 0x138   : > { %v1380_v59 = vrot.slane %v1379_v56, 4  ;;  %v1408_v60 = vadd.f32 %v1407_v58, %v1406_v57 }
 0x13a   : > { %v1381_v62 = vadd.f32 %v1380_v59, %v1379_v56  ;;  %v1409_v63 = vrot.slane %v1408_v60, 4 }
 0x13c   : > { %v1382_v0 = vrot.slane %v1381_v62, 2  ;;  %v1410_v1 = vadd.f32 %v1409_v63, %v1408_v60 }
 0x13e   : > { %v1383_v3 = vadd.f32 %v1382_v0, %v1381_v62  ;;  %v1411_v4 = vrot.slane %v1410_v1, 2 }
 0x140   : > { %v1384_v5 = vrot.slane %v1383_v3, 1  ;;  %v1412_v6 = vadd.f32 %v1411_v4, %v1410_v1 }
 0x142   : > { %v1385_v7 = vadd.f32 %v1384_v5, %v1383_v3  ;;  %v1413_v8 = vrot.slane %v1412_v6, 1 }
 0x144   : > { %v1414_v9 = vadd.f32 %v1413_v8, %v1412_v6  ;;  %v1418_v10 = vsel %vm1417_vm3, %v1385_v7, 0.0 }
 0x146   : > { %v1420_v11 = vsel %vm1419_vm4, %v1414_v9, %v1418_v10 }
 0x147   : > { %1421 = vst.msk [vmem:[%s275_s7] sm:$0xff] %vm316_vm1, %v1420_v11 }
 0x148 PF: > { %s16_s18 = sadd.s32 1, %s1904_s18  }
 0x149   : > { %p13_p4 = scmp.ge.s32.totalorder %s16_s18, 4  }
 0x14b   :  { %15 = sbr.rel (!%p13_p4) target bundleno = 1 (0x1), region = 92 }

</bundles_post_ra>
